<compile_context>
chip_gen: v6e
topology: v6e:2x2x1
jax: 0.10.0
libtpu: 0.0.40
codegen_flags: <defaults>
</compile_context>

<pallas_src>
import jax
import jax.numpy as jnp
from jax import lax
from jax.experimental import pallas as pl
from jax.experimental.pallas import tpu as pltpu

# ---- config (mirrors the PyTorch module-level constants) -------------------
N_EMBD = 64
N_HEAD = 4
BLOCK_SIZE = 8            # decoder sequence length (size of the tril buffer)
N_LAYERS = 2
HEAD_DIM = N_EMBD // N_HEAD
LN_EPS = 1e-5             # torch.nn.LayerNorm default
_NEG_BIG = -1e30          # finite "minus infinity" (exp() underflows to 0)


# ---- shared math (used by BOTH the Pallas kernel and the JAX reference) -----
def _layernorm(x, g, b):
    mu = jnp.mean(x, axis=-1, keepdims=True)
    var = jnp.mean(jnp.square(x - mu), axis=-1, keepdims=True)
    return (x - mu) * lax.rsqrt(var + LN_EPS) * g + b


def _mha_core(q, k, v, causal_mask):
    """Multi-head attention core; projections already applied.

    q: (B, Tq, C) f32, k/v: (B, Tk, C) f32.  The 1/sqrt(head_dim) scale is
    already folded into the Q projection weights.  Heads are batched along the
    leading axis (z = h*B + b) so the score matmul, the softmax reductions and
    the p@V matmul each run once for all heads.
    """
    B, Tq, C = q.shape
    qb, kb, vb = (t.astype(jnp.bfloat16) for t in (q, k, v))
    qs = jnp.concatenate(
        [qb[:, :, h * HEAD_DIM:(h + 1) * HEAD_DIM] for h in range(N_HEAD)], axis=0)
    ks = jnp.concatenate(
        [kb[:, :, h * HEAD_DIM:(h + 1) * HEAD_DIM] for h in range(N_HEAD)], axis=0)
    vs = jnp.concatenate(
        [vb[:, :, h * HEAD_DIM:(h + 1) * HEAD_DIM] for h in range(N_HEAD)], axis=0)

    wei = jnp.einsum('zqd,zkd->zqk', qs, ks,
                     preferred_element_type=jnp.float32)          # (H*B, Tq, Tk)
    if causal_mask is not None:
        wei = jnp.where(causal_mask, wei, _NEG_BIG)
    wei = jnp.exp(wei - jnp.max(wei, axis=-1, keepdims=True))
    wei = wei / jnp.sum(wei, axis=-1, keepdims=True)              # exact softmax
    # TODO(synk): attention-weight nn.Dropout(0.2) omitted (eval-mode identity).
    out = jnp.einsum('zqk,zkd->zqd', wei.astype(jnp.bfloat16), vs,
                     preferred_element_type=jnp.float32)          # (H*B, Tq, Dh)
    # merge heads back onto the lane axis: head h -> lanes [h*Dh, (h+1)*Dh)
    # TODO(synk): swap this lane concat for masked stores into VMEM scratch at scale.
    return jnp.concatenate([out[h * B:(h + 1) * B] for h in range(N_HEAD)], axis=-1)


def _decoder_math(x, enc, ln, sa_wqkv, eda_wq, eda_wkv, ff_w1, ff_w2, ff_b):
    """Full Decoder forward on plain arrays (layer loop unrolled)."""
    B, T, C = x.shape
    Tk = enc.shape[1]

    # Causal mask built once (hoisted out of all layer loops).
    rows = lax.broadcasted_iota(jnp.int32, (1, T, T), 1)
    cols = lax.broadcasted_iota(jnp.int32, (1, T, T), 2)
    causal_mask = rows >= cols

    # Cross-attn K/V of `enc` are layer-invariant: project for ALL layers with
    # ONE (B*Tk, C) @ (C, 2*C*L) matmul, slice per layer below.
    enc_kv = jnp.dot(enc.reshape(B * Tk, C).astype(jnp.bfloat16), eda_wkv,
                     preferred_element_type=jnp.float32)          # (B*Tk, 2*C*L)

    for l in range(N_LAYERS):
        lnl = ln[l]                                               # (8, C)

        # ---- x = ln1(x); x = x + sa(x, x, x, mask=True)  (fused QKV proj) ----
        x = _layernorm(x, lnl[0:1, :], lnl[1:2, :])
        qkv = jnp.dot(x.reshape(B * T, C).astype(jnp.bfloat16), sa_wqkv[l],
                      preferred_element_type=jnp.float32)         # (B*T, 3C)
        q = qkv[:, :C].reshape(B, T, C)
        k = qkv[:, C:2 * C].reshape(B, T, C)
        v = qkv[:, 2 * C:].reshape(B, T, C)
        x = x + _mha_core(q, k, v, causal_mask)

        # ---- x = ln2(x); x = x + eda(x, enc, enc)  (K/V hoisted above) ----
        x = _layernorm(x, lnl[2:3, :], lnl[3:4, :])
        q = jnp.dot(x.reshape(B * T, C).astype(jnp.bfloat16), eda_wq[l],
                    preferred_element_type=jnp.float32).reshape(B, T, C)
        k = enc_kv[:, 2 * C * l: 2 * C * l + C].reshape(B, Tk, C)
        v = enc_kv[:, 2 * C * l + C: 2 * C * (l + 1)].reshape(B, Tk, C)
        x = x + _mha_core(q, k, v, None)

        # ---- x = ln3(x); x = x + ffwd(x) ----
        x = _layernorm(x, lnl[4:5, :], lnl[5:6, :])
        x2d = x.reshape(B * T, C)
        h = jnp.dot(x2d.astype(jnp.bfloat16), ff_w1[l],
                    preferred_element_type=jnp.float32) + ff_b[l, 0:1, :]
        h = jnp.maximum(h, 0.0)
        f = jnp.dot(h.astype(jnp.bfloat16), ff_w2[l],
                    preferred_element_type=jnp.float32) + ff_b[l, 1:2, :C]
        # TODO(synk): FeedForward's trailing nn.Dropout(0.2) omitted (eval identity).
        x = x + f.reshape(B, T, C)
    return x


# ---- Pallas kernel: the WHOLE decoder in one pallas_call --------------------
def _decoder_kernel(x_ref, enc_ref, ln_ref, sa_ref, edaq_ref, edakv_ref,
                    w1_ref, w2_ref, ffb_ref, out_ref):
    out_ref[...] = _decoder_math(
        x_ref[...], enc_ref[...], ln_ref[...], sa_ref[...], edaq_ref[...],
        edakv_ref[...], w1_ref[...], w2_ref[...], ffb_ref[...])


def decoder_forward(x, enc, packed):
    """Decoder.forward: single fused pallas_call; enc passes through unchanged."""
    B, T, C = x.shape
    vmem = pl.BlockSpec(memory_space=pltpu.MemorySpace.VMEM)
    args = (x, enc, packed["ln"], packed["sa_wqkv"], packed["eda_wq"],
            packed["eda_wkv"], packed["ff_w1"], packed["ff_w2"], packed["ff_b"])
    out = pl.pallas_call(
        _decoder_kernel,
        out_shape=jax.ShapeDtypeStruct((B, T, C), jnp.float32),
        in_specs=[vmem] * len(args),
        out_specs=vmem,
    )(*args)
    return out, enc


def decoder_reference(x, enc, packed):
    """Pure-JAX reference: exactly the same math as the kernel body."""
    out = _decoder_math(x, enc, packed["ln"], packed["sa_wqkv"], packed["eda_wq"],
                        packed["eda_wkv"], packed["ff_w1"], packed["ff_w2"],
                        packed["ff_b"])
    return out, enc


# ---- deterministic parameter init + packing ---------------------------------
def init_layer_params(key):
    ks = jax.random.split(key, 16)
    w = lambda k, shp, s=0.05: jax.random.normal(k, shp, jnp.float32) * s
    return {
        # LayerNorm affine params (PyTorch default is ones/zeros; perturbed so
        # the test actually exercises the LN packing path).
        "ln1_g": 1.0 + w(ks[10], (1, N_EMBD)), "ln1_b": w(ks[11], (1, N_EMBD)),
        "ln2_g": 1.0 + w(ks[12], (1, N_EMBD)), "ln2_b": w(ks[13], (1, N_EMBD)),
        "ln3_g": 1.0 + w(ks[14], (1, N_EMBD)), "ln3_b": w(ks[15], (1, N_EMBD)),
        "sa_wq": w(ks[0], (N_EMBD, N_EMBD)),
        "sa_wk": w(ks[1], (N_EMBD, N_EMBD)),
        "sa_wv": w(ks[2], (N_EMBD, N_EMBD)),
        "eda_wq": w(ks[3], (N_EMBD, N_EMBD)),
        "eda_wk": w(ks[4], (N_EMBD, N_EMBD)),
        "eda_wv": w(ks[5], (N_EMBD, N_EMBD)),
        "ff_w1": w(ks[6], (N_EMBD, 4 * N_EMBD)),
        "ff_b1": w(ks[7], (1, 4 * N_EMBD)),
        "ff_w2": w(ks[8], (4 * N_EMBD, N_EMBD)),
        "ff_b2": w(ks[9], (1, N_EMBD)),
    }


def pack_params(layer_params):
    """Pack per-layer params into a few dense slabs.

    Weights are stored bf16 (host-side cast, per perf feedback); LN params and
    biases stay f32.  The 1/sqrt(head_dim) score scale is folded into the Q
    projection columns (exact: scale = 0.25 is a power of two).
    """
    scale = float(HEAD_DIM) ** -0.5
    pad2 = jnp.zeros((2, N_EMBD), jnp.float32)
    ln = jnp.stack([
        jnp.concatenate([p["ln1_g"], p["ln1_b"], p["ln2_g"], p["ln2_b"],
                         p["ln3_g"], p["ln3_b"], pad2], axis=0)
        for p in layer_params])                                       # (L, 8, C) f32
    sa = jnp.stack([
        jnp.concatenate([p["sa_wq"] * scale, p["sa_wk"], p["sa_wv"]], axis=1)
        for p in layer_params]).astype(jnp.bfloat16)                  # (L, C, 3C)
    eda_wq = jnp.stack([p["eda_wq"] * scale
                        for p in layer_params]).astype(jnp.bfloat16)  # (L, C, C)
    eda_wkv = jnp.concatenate(
        [jnp.concatenate([p["eda_wk"], p["eda_wv"]], axis=1) for p in layer_params],
        axis=1).astype(jnp.bfloat16)                                  # (C, 2C*L)
    ff_w1 = jnp.stack([p["ff_w1"] for p in layer_params]).astype(jnp.bfloat16)  # (L, C, 4C)
    ff_w2 = jnp.stack([p["ff_w2"] for p in layer_params]).astype(jnp.bfloat16)  # (L, 4C, C)
    ff_b = jnp.stack([
        jnp.concatenate([
            p["ff_b1"],
            jnp.concatenate([p["ff_b2"],
                             jnp.zeros((1, 3 * N_EMBD), jnp.float32)], axis=1)],
            axis=0)
        for p in layer_params])                                       # (L, 2, 4C) f32
    return {"ln": ln, "sa_wqkv": sa, "eda_wq": eda_wq, "eda_wkv": eda_wkv,
            "ff_w1": ff_w1, "ff_w2": ff_w2, "ff_b": ff_b}


if __name__ == "__main__":
    key = jax.random.PRNGKey(0)
    k_x, k_enc, k_p = jax.random.split(key, 3)

    B, T, T_ENC = 2, BLOCK_SIZE, BLOCK_SIZE
    x = jax.random.normal(k_x, (B, T, N_EMBD), jnp.float32)
    enc_in = jax.random.normal(k_enc, (B, T_ENC, N_EMBD), jnp.float32)
    layer_params = [init_layer_params(jax.random.fold_in(k_p, i))
                    for i in range(N_LAYERS)]
    packed = pack_params(layer_params)

    out_x, out_enc = decoder_forward(x, enc_in, packed)
    out_x = jax.block_until_ready(out_x)

    ref_x, _ = decoder_reference(x, enc_in, packed)
    assert out_x.shape == (B, T, N_EMBD)
    assert jnp.allclose(out_x, ref_x, rtol=1e-3, atol=1e-3), \
        float(jnp.max(jnp.abs(out_x - ref_x)))
    assert jnp.array_equal(out_enc, enc_in)

    print("KERNEL_OK")
</pallas_src>

<mosaic_0001>
module attributes {stable_mosaic.version = 11 : i64} {
  func.func @_decoder_kernel(%arg0: memref<2x8x64xf32, #tpu.memory_space<vmem>>, %arg1: memref<2x8x64xf32, #tpu.memory_space<vmem>>, %arg2: memref<2x8x64xf32, #tpu.memory_space<vmem>>, %arg3: memref<2x64x192xbf16, #tpu.memory_space<vmem>>, %arg4: memref<2x64x64xbf16, #tpu.memory_space<vmem>>, %arg5: memref<64x256xbf16, #tpu.memory_space<vmem>>, %arg6: memref<2x64x256xbf16, #tpu.memory_space<vmem>>, %arg7: memref<2x256x64xbf16, #tpu.memory_space<vmem>>, %arg8: memref<2x2x256xf32, #tpu.memory_space<vmem>>, %arg9: memref<2x8x64xf32, #tpu.memory_space<vmem>>) attributes {dimension_semantics = [], scalar_prefetch = 0 : i64, scratch_operands = 0 : i64, tpu.core_type = #tpu.core_type<tc>} {
    %c0 = arith.constant 0 : index
    %c0_0 = arith.constant 0 : index
    %c0_1 = arith.constant 0 : index
    %0 = vector.load %arg0[%c0, %c0_0, %c0_1] : memref<2x8x64xf32, #tpu.memory_space<vmem>>, vector<2x8x64xf32>
    %c0_2 = arith.constant 0 : index
    %c0_3 = arith.constant 0 : index
    %c0_4 = arith.constant 0 : index
    %1 = vector.load %arg1[%c0_2, %c0_3, %c0_4] : memref<2x8x64xf32, #tpu.memory_space<vmem>>, vector<2x8x64xf32>
    %c0_5 = arith.constant 0 : index
    %c0_6 = arith.constant 0 : index
    %c0_7 = arith.constant 0 : index
    %2 = vector.load %arg2[%c0_5, %c0_6, %c0_7] : memref<2x8x64xf32, #tpu.memory_space<vmem>>, vector<2x8x64xf32>
    %c0_8 = arith.constant 0 : index
    %c0_9 = arith.constant 0 : index
    %c0_10 = arith.constant 0 : index
    %3 = vector.load %arg3[%c0_8, %c0_9, %c0_10] : memref<2x64x192xbf16, #tpu.memory_space<vmem>>, vector<2x64x192xbf16>
    %c0_11 = arith.constant 0 : index
    %c0_12 = arith.constant 0 : index
    %c0_13 = arith.constant 0 : index
    %4 = vector.load %arg4[%c0_11, %c0_12, %c0_13] : memref<2x64x64xbf16, #tpu.memory_space<vmem>>, vector<2x64x64xbf16>
    %c0_14 = arith.constant 0 : index
    %c0_15 = arith.constant 0 : index
    %5 = vector.load %arg5[%c0_14, %c0_15] : memref<64x256xbf16, #tpu.memory_space<vmem>>, vector<64x256xbf16>
    %c0_16 = arith.constant 0 : index
    %c0_17 = arith.constant 0 : index
    %c0_18 = arith.constant 0 : index
    %6 = vector.load %arg6[%c0_16, %c0_17, %c0_18] : memref<2x64x256xbf16, #tpu.memory_space<vmem>>, vector<2x64x256xbf16>
    %c0_19 = arith.constant 0 : index
    %c0_20 = arith.constant 0 : index
    %c0_21 = arith.constant 0 : index
    %7 = vector.load %arg7[%c0_19, %c0_20, %c0_21] : memref<2x256x64xbf16, #tpu.memory_space<vmem>>, vector<2x256x64xbf16>
    %c0_22 = arith.constant 0 : index
    %c0_23 = arith.constant 0 : index
    %c0_24 = arith.constant 0 : index
    %8 = vector.load %arg8[%c0_22, %c0_23, %c0_24] : memref<2x2x256xf32, #tpu.memory_space<vmem>>, vector<2x2x256xf32>
    %9 = tpu.iota {dimensions = array<i32: 1>} : vector<1x8x8xi32>
    %10 = tpu.iota {dimensions = array<i32: 2>} : vector<1x8x8xi32>
    %11 = arith.cmpi sge, %9, %10 : vector<1x8x8xi32>
    %12 = vector.shape_cast %1 : vector<2x8x64xf32> to vector<16x64xf32>
    %13 = arith.truncf %12 : vector<16x64xf32> to vector<16x64xbf16>
    %cst = arith.constant dense<0.000000e+00> : vector<16x256xf32>
    %14 = tpu.matmul %13, %5, %cst {dimension_numbers = #tpu.dot_dimension_numbers<[1], [0], [0], [1], [0, 0, 1, 1], [], []>} : vector<16x64xbf16>, vector<64x256xbf16>, vector<16x256xf32> -> vector<16x256xf32>
    %15 = vector.extract_strided_slice %2 {offsets = [0, 0, 0], sizes = [1, 8, 64], strides = [1, 1, 1]} : vector<2x8x64xf32> to vector<1x8x64xf32>
    %16 = vector.shape_cast %15 : vector<1x8x64xf32> to vector<8x64xf32>
    %17 = vector.extract_strided_slice %16 {offsets = [0, 0], sizes = [1, 64], strides = [1, 1]} : vector<8x64xf32> to vector<1x64xf32>
    %18 = vector.extract_strided_slice %16 {offsets = [1, 0], sizes = [1, 64], strides = [1, 1]} : vector<8x64xf32> to vector<1x64xf32>
    %cst_25 = arith.constant dense<0.000000e+00> : vector<2x8xf32>
    %19 = vector.multi_reduction <add>, %0, %cst_25 [2] : vector<2x8x64xf32> to vector<2x8xf32>
    %20 = vector.shape_cast %19 : vector<2x8xf32> to vector<2x8x1xf32>
    %cst_26 = arith.constant 6.400000e+01 : f32
    %21 = vector.broadcast %cst_26 : f32 to vector<2x8x1xf32>
    %22 = arith.divf %20, %21 : vector<2x8x1xf32>
    %23 = vector.broadcast %22 : vector<2x8x1xf32> to vector<2x8x64xf32>
    %24 = arith.subf %0, %23 : vector<2x8x64xf32>
    %25 = arith.mulf %24, %24 : vector<2x8x64xf32>
    %cst_27 = arith.constant dense<0.000000e+00> : vector<2x8xf32>
    %26 = vector.multi_reduction <add>, %25, %cst_27 [2] : vector<2x8x64xf32> to vector<2x8xf32>
    %27 = vector.shape_cast %26 : vector<2x8xf32> to vector<2x8x1xf32>
    %cst_28 = arith.constant 6.400000e+01 : f32
    %28 = vector.broadcast %cst_28 : f32 to vector<2x8x1xf32>
    %29 = arith.divf %27, %28 : vector<2x8x1xf32>
    %30 = vector.broadcast %22 : vector<2x8x1xf32> to vector<2x8x64xf32>
    %31 = arith.subf %0, %30 : vector<2x8x64xf32>
    %cst_29 = arith.constant 9.99999974E-6 : f32
    %32 = vector.broadcast %cst_29 : f32 to vector<2x8x1xf32>
    %33 = arith.addf %29, %32 : vector<2x8x1xf32>
    %34 = math.rsqrt %33 : vector<2x8x1xf32>
    %35 = vector.broadcast %34 : vector<2x8x1xf32> to vector<2x8x64xf32>
    %36 = arith.mulf %31, %35 : vector<2x8x64xf32>
    %37 = vector.shape_cast %17 : vector<1x64xf32> to vector<1x1x64xf32>
    %38 = vector.broadcast %37 : vector<1x1x64xf32> to vector<2x8x64xf32>
    %39 = arith.mulf %36, %38 : vector<2x8x64xf32>
    %40 = vector.shape_cast %18 : vector<1x64xf32> to vector<1x1x64xf32>
    %41 = vector.broadcast %40 : vector<1x1x64xf32> to vector<2x8x64xf32>
    %42 = arith.addf %39, %41 : vector<2x8x64xf32>
    %43 = vector.shape_cast %42 : vector<2x8x64xf32> to vector<16x64xf32>
    %44 = arith.truncf %43 : vector<16x64xf32> to vector<16x64xbf16>
    %45 = vector.extract_strided_slice %3 {offsets = [0, 0, 0], sizes = [1, 64, 192], strides = [1, 1, 1]} : vector<2x64x192xbf16> to vector<1x64x192xbf16>
    %46 = vector.shape_cast %45 : vector<1x64x192xbf16> to vector<64x192xbf16>
    %cst_30 = arith.constant dense<0.000000e+00> : vector<16x192xf32>
    %47 = tpu.matmul %44, %46, %cst_30 {dimension_numbers = #tpu.dot_dimension_numbers<[1], [0], [0], [1], [0, 0, 1, 1], [], []>} : vector<16x64xbf16>, vector<64x192xbf16>, vector<16x192xf32> -> vector<16x192xf32>
    %48 = vector.extract_strided_slice %47 {offsets = [0, 0], sizes = [16, 64], strides = [1, 1]} : vector<16x192xf32> to vector<16x64xf32>
    %49 = vector.shape_cast %48 : vector<16x64xf32> to vector<2x8x64xf32>
    %50 = vector.extract_strided_slice %47 {offsets = [0, 64], sizes = [16, 64], strides = [1, 1]} : vector<16x192xf32> to vector<16x64xf32>
    %51 = vector.shape_cast %50 : vector<16x64xf32> to vector<2x8x64xf32>
    %52 = vector.extract_strided_slice %47 {offsets = [0, 128], sizes = [16, 64], strides = [1, 1]} : vector<16x192xf32> to vector<16x64xf32>
    %53 = vector.shape_cast %52 : vector<16x64xf32> to vector<2x8x64xf32>
    %54 = arith.truncf %49 : vector<2x8x64xf32> to vector<2x8x64xbf16>
    %55 = arith.truncf %51 : vector<2x8x64xf32> to vector<2x8x64xbf16>
    %56 = arith.truncf %53 : vector<2x8x64xf32> to vector<2x8x64xbf16>
    %57 = vector.extract_strided_slice %54 {offsets = [0, 0, 0], sizes = [2, 8, 16], strides = [1, 1, 1]} : vector<2x8x64xbf16> to vector<2x8x16xbf16>
    %58 = vector.extract_strided_slice %54 {offsets = [0, 0, 16], sizes = [2, 8, 16], strides = [1, 1, 1]} : vector<2x8x64xbf16> to vector<2x8x16xbf16>
    %59 = vector.extract_strided_slice %54 {offsets = [0, 0, 32], sizes = [2, 8, 16], strides = [1, 1, 1]} : vector<2x8x64xbf16> to vector<2x8x16xbf16>
    %60 = vector.extract_strided_slice %54 {offsets = [0, 0, 48], sizes = [2, 8, 16], strides = [1, 1, 1]} : vector<2x8x64xbf16> to vector<2x8x16xbf16>
    %61 = tpu.concatenate %57, %58, %59, %60 in 0 : vector<2x8x16xbf16>, vector<2x8x16xbf16>, vector<2x8x16xbf16>, vector<2x8x16xbf16> -> vector<8x8x16xbf16>
    %62 = vector.extract_strided_slice %55 {offsets = [0, 0, 0], sizes = [2, 8, 16], strides = [1, 1, 1]} : vector<2x8x64xbf16> to vector<2x8x16xbf16>
    %63 = vector.extract_strided_slice %55 {offsets = [0, 0, 16], sizes = [2, 8, 16], strides = [1, 1, 1]} : vector<2x8x64xbf16> to vector<2x8x16xbf16>
    %64 = vector.extract_strided_slice %55 {offsets = [0, 0, 32], sizes = [2, 8, 16], strides = [1, 1, 1]} : vector<2x8x64xbf16> to vector<2x8x16xbf16>
    %65 = vector.extract_strided_slice %55 {offsets = [0, 0, 48], sizes = [2, 8, 16], strides = [1, 1, 1]} : vector<2x8x64xbf16> to vector<2x8x16xbf16>
    %66 = tpu.concatenate %62, %63, %64, %65 in 0 : vector<2x8x16xbf16>, vector<2x8x16xbf16>, vector<2x8x16xbf16>, vector<2x8x16xbf16> -> vector<8x8x16xbf16>
    %67 = vector.extract_strided_slice %56 {offsets = [0, 0, 0], sizes = [2, 8, 16], strides = [1, 1, 1]} : vector<2x8x64xbf16> to vector<2x8x16xbf16>
    %68 = vector.extract_strided_slice %56 {offsets = [0, 0, 16], sizes = [2, 8, 16], strides = [1, 1, 1]} : vector<2x8x64xbf16> to vector<2x8x16xbf16>
    %69 = vector.extract_strided_slice %56 {offsets = [0, 0, 32], sizes = [2, 8, 16], strides = [1, 1, 1]} : vector<2x8x64xbf16> to vector<2x8x16xbf16>
    %70 = vector.extract_strided_slice %56 {offsets = [0, 0, 48], sizes = [2, 8, 16], strides = [1, 1, 1]} : vector<2x8x64xbf16> to vector<2x8x16xbf16>
    %71 = tpu.concatenate %67, %68, %69, %70 in 0 : vector<2x8x16xbf16>, vector<2x8x16xbf16>, vector<2x8x16xbf16>, vector<2x8x16xbf16> -> vector<8x8x16xbf16>
    "tpu.trace_start"() <{level = 10 : i32, message = "zqd,zkd->zqk"}> : () -> ()
    %cst_31 = arith.constant dense<0.000000e+00> : vector<8x8x8xf32>
    %72 = tpu.matmul %61, %66, %cst_31 {dimension_numbers = #tpu.dot_dimension_numbers<[2], [2], [1], [1], [0, 0, 0, 1, 1, 1], [0], [0]>} : vector<8x8x16xbf16>, vector<8x8x16xbf16>, vector<8x8x8xf32> -> vector<8x8x8xf32>
    %cst_32 = arith.constant -1.000000e+30 : f32
    "tpu.trace_stop"() : () -> ()
    %73 = vector.shape_cast %11 : vector<1x8x8xi1> to vector<1x8x8xi1>
    %74 = vector.broadcast %73 : vector<1x8x8xi1> to vector<8x8x8xi1>
    %75 = vector.broadcast %cst_32 : f32 to vector<8x8x8xf32>
    %76 = arith.select %74, %72, %75 : vector<8x8x8xi1>, vector<8x8x8xf32>
    %cst_33 = arith.constant dense<0xFF800000> : vector<8x8xf32>
    %77 = vector.multi_reduction <maximumf>, %76, %cst_33 [2] : vector<8x8x8xf32> to vector<8x8xf32>
    %78 = vector.shape_cast %77 : vector<8x8xf32> to vector<8x8x1xf32>
    %79 = vector.broadcast %78 : vector<8x8x1xf32> to vector<8x8x8xf32>
    %80 = arith.subf %76, %79 : vector<8x8x8xf32>
    %81 = math.exp %80 : vector<8x8x8xf32>
    %cst_34 = arith.constant dense<0.000000e+00> : vector<8x8xf32>
    %82 = vector.multi_reduction <add>, %81, %cst_34 [2] : vector<8x8x8xf32> to vector<8x8xf32>
    %83 = vector.shape_cast %82 : vector<8x8xf32> to vector<8x8x1xf32>
    %84 = vector.broadcast %83 : vector<8x8x1xf32> to vector<8x8x8xf32>
    %85 = arith.divf %81, %84 : vector<8x8x8xf32>
    %86 = arith.truncf %85 : vector<8x8x8xf32> to vector<8x8x8xbf16>
    "tpu.trace_start"() <{level = 10 : i32, message = "zqk,zkd->zqd"}> : () -> ()
    %cst_35 = arith.constant dense<0.000000e+00> : vector<8x8x16xf32>
    %87 = tpu.matmul %86, %71, %cst_35 {dimension_numbers = #tpu.dot_dimension_numbers<[2], [1], [1], [2], [0, 0, 0, 1, 1, 2], [0], [0]>} : vector<8x8x8xbf16>, vector<8x8x16xbf16>, vector<8x8x16xf32> -> vector<8x8x16xf32>
    "tpu.trace_stop"() : () -> ()
    %88 = vector.extract_strided_slice %87 {offsets = [0, 0, 0], sizes = [2, 8, 16], strides = [1, 1, 1]} : vector<8x8x16xf32> to vector<2x8x16xf32>
    %89 = vector.extract_strided_slice %87 {offsets = [2, 0, 0], sizes = [2, 8, 16], strides = [1, 1, 1]} : vector<8x8x16xf32> to vector<2x8x16xf32>
    %90 = vector.extract_strided_slice %87 {offsets = [4, 0, 0], sizes = [2, 8, 16], strides = [1, 1, 1]} : vector<8x8x16xf32> to vector<2x8x16xf32>
    %91 = vector.extract_strided_slice %87 {offsets = [6, 0, 0], sizes = [2, 8, 16], strides = [1, 1, 1]} : vector<8x8x16xf32> to vector<2x8x16xf32>
    %92 = tpu.concatenate %88, %89, %90, %91 in 2 : vector<2x8x16xf32>, vector<2x8x16xf32>, vector<2x8x16xf32>, vector<2x8x16xf32> -> vector<2x8x64xf32>
    %93 = arith.addf %42, %92 : vector<2x8x64xf32>
    %94 = vector.extract_strided_slice %16 {offsets = [2, 0], sizes = [1, 64], strides = [1, 1]} : vector<8x64xf32> to vector<1x64xf32>
    %95 = vector.extract_strided_slice %16 {offsets = [3, 0], sizes = [1, 64], strides = [1, 1]} : vector<8x64xf32> to vector<1x64xf32>
    %cst_36 = arith.constant dense<0.000000e+00> : vector<2x8xf32>
    %96 = vector.multi_reduction <add>, %93, %cst_36 [2] : vector<2x8x64xf32> to vector<2x8xf32>
    %97 = vector.shape_cast %96 : vector<2x8xf32> to vector<2x8x1xf32>
    %cst_37 = arith.constant 6.400000e+01 : f32
    %98 = vector.broadcast %cst_37 : f32 to vector<2x8x1xf32>
    %99 = arith.divf %97, %98 : vector<2x8x1xf32>
    %100 = vector.broadcast %99 : vector<2x8x1xf32> to vector<2x8x64xf32>
    %101 = arith.subf %93, %100 : vector<2x8x64xf32>
    %102 = arith.mulf %101, %101 : vector<2x8x64xf32>
    %cst_38 = arith.constant dense<0.000000e+00> : vector<2x8xf32>
    %103 = vector.multi_reduction <add>, %102, %cst_38 [2] : vector<2x8x64xf32> to vector<2x8xf32>
    %104 = vector.shape_cast %103 : vector<2x8xf32> to vector<2x8x1xf32>
    %cst_39 = arith.constant 6.400000e+01 : f32
    %105 = vector.broadcast %cst_39 : f32 to vector<2x8x1xf32>
    %106 = arith.divf %104, %105 : vector<2x8x1xf32>
    %107 = vector.broadcast %99 : vector<2x8x1xf32> to vector<2x8x64xf32>
    %108 = arith.subf %93, %107 : vector<2x8x64xf32>
    %cst_40 = arith.constant 9.99999974E-6 : f32
    %109 = vector.broadcast %cst_40 : f32 to vector<2x8x1xf32>
    %110 = arith.addf %106, %109 : vector<2x8x1xf32>
    %111 = math.rsqrt %110 : vector<2x8x1xf32>
    %112 = vector.broadcast %111 : vector<2x8x1xf32> to vector<2x8x64xf32>
    %113 = arith.mulf %108, %112 : vector<2x8x64xf32>
    %114 = vector.shape_cast %94 : vector<1x64xf32> to vector<1x1x64xf32>
    %115 = vector.broadcast %114 : vector<1x1x64xf32> to vector<2x8x64xf32>
    %116 = arith.mulf %113, %115 : vector<2x8x64xf32>
    %117 = vector.shape_cast %95 : vector<1x64xf32> to vector<1x1x64xf32>
    %118 = vector.broadcast %117 : vector<1x1x64xf32> to vector<2x8x64xf32>
    %119 = arith.addf %116, %118 : vector<2x8x64xf32>
    %120 = vector.shape_cast %119 : vector<2x8x64xf32> to vector<16x64xf32>
    %121 = arith.truncf %120 : vector<16x64xf32> to vector<16x64xbf16>
    %122 = vector.extract_strided_slice %4 {offsets = [0, 0, 0], sizes = [1, 64, 64], strides = [1, 1, 1]} : vector<2x64x64xbf16> to vector<1x64x64xbf16>
    %123 = vector.shape_cast %122 : vector<1x64x64xbf16> to vector<64x64xbf16>
    %cst_41 = arith.constant dense<0.000000e+00> : vector<16x64xf32>
    %124 = tpu.matmul %121, %123, %cst_41 {dimension_numbers = #tpu.dot_dimension_numbers<[1], [0], [0], [1], [0, 0, 1, 1], [], []>} : vector<16x64xbf16>, vector<64x64xbf16>, vector<16x64xf32> -> vector<16x64xf32>
    %125 = vector.shape_cast %124 : vector<16x64xf32> to vector<2x8x64xf32>
    %126 = vector.extract_strided_slice %14 {offsets = [0, 0], sizes = [16, 64], strides = [1, 1]} : vector<16x256xf32> to vector<16x64xf32>
    %127 = vector.shape_cast %126 : vector<16x64xf32> to vector<2x8x64xf32>
    %128 = vector.extract_strided_slice %14 {offsets = [0, 64], sizes = [16, 64], strides = [1, 1]} : vector<16x256xf32> to vector<16x64xf32>
    %129 = vector.shape_cast %128 : vector<16x64xf32> to vector<2x8x64xf32>
    %130 = arith.truncf %125 : vector<2x8x64xf32> to vector<2x8x64xbf16>
    %131 = arith.truncf %127 : vector<2x8x64xf32> to vector<2x8x64xbf16>
    %132 = arith.truncf %129 : vector<2x8x64xf32> to vector<2x8x64xbf16>
    %133 = vector.extract_strided_slice %130 {offsets = [0, 0, 0], sizes = [2, 8, 16], strides = [1, 1, 1]} : vector<2x8x64xbf16> to vector<2x8x16xbf16>
    %134 = vector.extract_strided_slice %130 {offsets = [0, 0, 16], sizes = [2, 8, 16], strides = [1, 1, 1]} : vector<2x8x64xbf16> to vector<2x8x16xbf16>
    %135 = vector.extract_strided_slice %130 {offsets = [0, 0, 32], sizes = [2, 8, 16], strides = [1, 1, 1]} : vector<2x8x64xbf16> to vector<2x8x16xbf16>
    %136 = vector.extract_strided_slice %130 {offsets = [0, 0, 48], sizes = [2, 8, 16], strides = [1, 1, 1]} : vector<2x8x64xbf16> to vector<2x8x16xbf16>
    %137 = tpu.concatenate %133, %134, %135, %136 in 0 : vector<2x8x16xbf16>, vector<2x8x16xbf16>, vector<2x8x16xbf16>, vector<2x8x16xbf16> -> vector<8x8x16xbf16>
    %138 = vector.extract_strided_slice %131 {offsets = [0, 0, 0], sizes = [2, 8, 16], strides = [1, 1, 1]} : vector<2x8x64xbf16> to vector<2x8x16xbf16>
    %139 = vector.extract_strided_slice %131 {offsets = [0, 0, 16], sizes = [2, 8, 16], strides = [1, 1, 1]} : vector<2x8x64xbf16> to vector<2x8x16xbf16>
    %140 = vector.extract_strided_slice %131 {offsets = [0, 0, 32], sizes = [2, 8, 16], strides = [1, 1, 1]} : vector<2x8x64xbf16> to vector<2x8x16xbf16>
    %141 = vector.extract_strided_slice %131 {offsets = [0, 0, 48], sizes = [2, 8, 16], strides = [1, 1, 1]} : vector<2x8x64xbf16> to vector<2x8x16xbf16>
    %142 = tpu.concatenate %138, %139, %140, %141 in 0 : vector<2x8x16xbf16>, vector<2x8x16xbf16>, vector<2x8x16xbf16>, vector<2x8x16xbf16> -> vector<8x8x16xbf16>
    %143 = vector.extract_strided_slice %132 {offsets = [0, 0, 0], sizes = [2, 8, 16], strides = [1, 1, 1]} : vector<2x8x64xbf16> to vector<2x8x16xbf16>
    %144 = vector.extract_strided_slice %132 {offsets = [0, 0, 16], sizes = [2, 8, 16], strides = [1, 1, 1]} : vector<2x8x64xbf16> to vector<2x8x16xbf16>
    %145 = vector.extract_strided_slice %132 {offsets = [0, 0, 32], sizes = [2, 8, 16], strides = [1, 1, 1]} : vector<2x8x64xbf16> to vector<2x8x16xbf16>
    %146 = vector.extract_strided_slice %132 {offsets = [0, 0, 48], sizes = [2, 8, 16], strides = [1, 1, 1]} : vector<2x8x64xbf16> to vector<2x8x16xbf16>
    %147 = tpu.concatenate %143, %144, %145, %146 in 0 : vector<2x8x16xbf16>, vector<2x8x16xbf16>, vector<2x8x16xbf16>, vector<2x8x16xbf16> -> vector<8x8x16xbf16>
    "tpu.trace_start"() <{level = 10 : i32, message = "zqd,zkd->zqk"}> : () -> ()
    %cst_42 = arith.constant dense<0.000000e+00> : vector<8x8x8xf32>
    %148 = tpu.matmul %137, %142, %cst_42 {dimension_numbers = #tpu.dot_dimension_numbers<[2], [2], [1], [1], [0, 0, 0, 1, 1, 1], [0], [0]>} : vector<8x8x16xbf16>, vector<8x8x16xbf16>, vector<8x8x8xf32> -> vector<8x8x8xf32>
    "tpu.trace_stop"() : () -> ()
    %cst_43 = arith.constant dense<0xFF800000> : vector<8x8xf32>
    %149 = vector.multi_reduction <maximumf>, %148, %cst_43 [2] : vector<8x8x8xf32> to vector<8x8xf32>
    %150 = vector.shape_cast %149 : vector<8x8xf32> to vector<8x8x1xf32>
    %151 = vector.broadcast %150 : vector<8x8x1xf32> to vector<8x8x8xf32>
    %152 = arith.subf %148, %151 : vector<8x8x8xf32>
    %153 = math.exp %152 : vector<8x8x8xf32>
    %cst_44 = arith.constant dense<0.000000e+00> : vector<8x8xf32>
    %154 = vector.multi_reduction <add>, %153, %cst_44 [2] : vector<8x8x8xf32> to vector<8x8xf32>
    %155 = vector.shape_cast %154 : vector<8x8xf32> to vector<8x8x1xf32>
    %156 = vector.broadcast %155 : vector<8x8x1xf32> to vector<8x8x8xf32>
    %157 = arith.divf %153, %156 : vector<8x8x8xf32>
    %158 = arith.truncf %157 : vector<8x8x8xf32> to vector<8x8x8xbf16>
    "tpu.trace_start"() <{level = 10 : i32, message = "zqk,zkd->zqd"}> : () -> ()
    %cst_45 = arith.constant dense<0.000000e+00> : vector<8x8x16xf32>
    %159 = tpu.matmul %158, %147, %cst_45 {dimension_numbers = #tpu.dot_dimension_numbers<[2], [1], [1], [2], [0, 0, 0, 1, 1, 2], [0], [0]>} : vector<8x8x8xbf16>, vector<8x8x16xbf16>, vector<8x8x16xf32> -> vector<8x8x16xf32>
    "tpu.trace_stop"() : () -> ()
    %160 = vector.extract_strided_slice %159 {offsets = [0, 0, 0], sizes = [2, 8, 16], strides = [1, 1, 1]} : vector<8x8x16xf32> to vector<2x8x16xf32>
    %161 = vector.extract_strided_slice %159 {offsets = [2, 0, 0], sizes = [2, 8, 16], strides = [1, 1, 1]} : vector<8x8x16xf32> to vector<2x8x16xf32>
    %162 = vector.extract_strided_slice %159 {offsets = [4, 0, 0], sizes = [2, 8, 16], strides = [1, 1, 1]} : vector<8x8x16xf32> to vector<2x8x16xf32>
    %163 = vector.extract_strided_slice %159 {offsets = [6, 0, 0], sizes = [2, 8, 16], strides = [1, 1, 1]} : vector<8x8x16xf32> to vector<2x8x16xf32>
    %164 = tpu.concatenate %160, %161, %162, %163 in 2 : vector<2x8x16xf32>, vector<2x8x16xf32>, vector<2x8x16xf32>, vector<2x8x16xf32> -> vector<2x8x64xf32>
    %165 = arith.addf %119, %164 : vector<2x8x64xf32>
    %166 = vector.extract_strided_slice %16 {offsets = [4, 0], sizes = [1, 64], strides = [1, 1]} : vector<8x64xf32> to vector<1x64xf32>
    %167 = vector.extract_strided_slice %16 {offsets = [5, 0], sizes = [1, 64], strides = [1, 1]} : vector<8x64xf32> to vector<1x64xf32>
    %cst_46 = arith.constant dense<0.000000e+00> : vector<2x8xf32>
    %168 = vector.multi_reduction <add>, %165, %cst_46 [2] : vector<2x8x64xf32> to vector<2x8xf32>
    %169 = vector.shape_cast %168 : vector<2x8xf32> to vector<2x8x1xf32>
    %cst_47 = arith.constant 6.400000e+01 : f32
    %170 = vector.broadcast %cst_47 : f32 to vector<2x8x1xf32>
    %171 = arith.divf %169, %170 : vector<2x8x1xf32>
    %172 = vector.broadcast %171 : vector<2x8x1xf32> to vector<2x8x64xf32>
    %173 = arith.subf %165, %172 : vector<2x8x64xf32>
    %174 = arith.mulf %173, %173 : vector<2x8x64xf32>
    %cst_48 = arith.constant dense<0.000000e+00> : vector<2x8xf32>
    %175 = vector.multi_reduction <add>, %174, %cst_48 [2] : vector<2x8x64xf32> to vector<2x8xf32>
    %176 = vector.shape_cast %175 : vector<2x8xf32> to vector<2x8x1xf32>
    %cst_49 = arith.constant 6.400000e+01 : f32
    %177 = vector.broadcast %cst_49 : f32 to vector<2x8x1xf32>
    %178 = arith.divf %176, %177 : vector<2x8x1xf32>
    %179 = vector.broadcast %171 : vector<2x8x1xf32> to vector<2x8x64xf32>
    %180 = arith.subf %165, %179 : vector<2x8x64xf32>
    %cst_50 = arith.constant 9.99999974E-6 : f32
    %181 = vector.broadcast %cst_50 : f32 to vector<2x8x1xf32>
    %182 = arith.addf %178, %181 : vector<2x8x1xf32>
    %183 = math.rsqrt %182 : vector<2x8x1xf32>
    %184 = vector.broadcast %183 : vector<2x8x1xf32> to vector<2x8x64xf32>
    %185 = arith.mulf %180, %184 : vector<2x8x64xf32>
    %186 = vector.shape_cast %166 : vector<1x64xf32> to vector<1x1x64xf32>
    %187 = vector.broadcast %186 : vector<1x1x64xf32> to vector<2x8x64xf32>
    %188 = arith.mulf %185, %187 : vector<2x8x64xf32>
    %189 = vector.shape_cast %167 : vector<1x64xf32> to vector<1x1x64xf32>
    %190 = vector.broadcast %189 : vector<1x1x64xf32> to vector<2x8x64xf32>
    %191 = arith.addf %188, %190 : vector<2x8x64xf32>
    %192 = vector.shape_cast %191 : vector<2x8x64xf32> to vector<16x64xf32>
    %193 = arith.truncf %192 : vector<16x64xf32> to vector<16x64xbf16>
    %194 = vector.extract_strided_slice %6 {offsets = [0, 0, 0], sizes = [1, 64, 256], strides = [1, 1, 1]} : vector<2x64x256xbf16> to vector<1x64x256xbf16>
    %195 = vector.shape_cast %194 : vector<1x64x256xbf16> to vector<64x256xbf16>
    %cst_51 = arith.constant dense<0.000000e+00> : vector<16x256xf32>
    %196 = tpu.matmul %193, %195, %cst_51 {dimension_numbers = #tpu.dot_dimension_numbers<[1], [0], [0], [1], [0, 0, 1, 1], [], []>} : vector<16x64xbf16>, vector<64x256xbf16>, vector<16x256xf32> -> vector<16x256xf32>
    %197 = vector.extract_strided_slice %8 {offsets = [0, 0, 0], sizes = [1, 1, 256], strides = [1, 1, 1]} : vector<2x2x256xf32> to vector<1x1x256xf32>
    %198 = vector.shape_cast %197 : vector<1x1x256xf32> to vector<1x256xf32>
    %199 = vector.broadcast %198 : vector<1x256xf32> to vector<16x256xf32>
    %200 = arith.addf %196, %199 : vector<16x256xf32>
    %cst_52 = arith.constant 0.000000e+00 : f32
    %201 = vector.broadcast %cst_52 : f32 to vector<16x256xf32>
    %202 = arith.maximumf %200, %201 : vector<16x256xf32>
    %203 = arith.truncf %202 : vector<16x256xf32> to vector<16x256xbf16>
    %204 = vector.extract_strided_slice %7 {offsets = [0, 0, 0], sizes = [1, 256, 64], strides = [1, 1, 1]} : vector<2x256x64xbf16> to vector<1x256x64xbf16>
    %205 = vector.shape_cast %204 : vector<1x256x64xbf16> to vector<256x64xbf16>
    %cst_53 = arith.constant dense<0.000000e+00> : vector<16x64xf32>
    %206 = tpu.matmul %203, %205, %cst_53 {dimension_numbers = #tpu.dot_dimension_numbers<[1], [0], [0], [1], [0, 0, 1, 1], [], []>} : vector<16x256xbf16>, vector<256x64xbf16>, vector<16x64xf32> -> vector<16x64xf32>
    %207 = vector.extract_strided_slice %8 {offsets = [0, 1, 0], sizes = [1, 1, 64], strides = [1, 1, 1]} : vector<2x2x256xf32> to vector<1x1x64xf32>
    %208 = vector.shape_cast %207 : vector<1x1x64xf32> to vector<1x64xf32>
    %209 = vector.broadcast %208 : vector<1x64xf32> to vector<16x64xf32>
    %210 = arith.addf %206, %209 : vector<16x64xf32>
    %211 = vector.shape_cast %210 : vector<16x64xf32> to vector<2x8x64xf32>
    %212 = arith.addf %191, %211 : vector<2x8x64xf32>
    %213 = vector.extract_strided_slice %2 {offsets = [1, 0, 0], sizes = [1, 8, 64], strides = [1, 1, 1]} : vector<2x8x64xf32> to vector<1x8x64xf32>
    %214 = vector.shape_cast %213 : vector<1x8x64xf32> to vector<8x64xf32>
    %215 = vector.extract_strided_slice %214 {offsets = [0, 0], sizes = [1, 64], strides = [1, 1]} : vector<8x64xf32> to vector<1x64xf32>
    %216 = vector.extract_strided_slice %214 {offsets = [1, 0], sizes = [1, 64], strides = [1, 1]} : vector<8x64xf32> to vector<1x64xf32>
    %cst_54 = arith.constant dense<0.000000e+00> : vector<2x8xf32>
    %217 = vector.multi_reduction <add>, %212, %cst_54 [2] : vector<2x8x64xf32> to vector<2x8xf32>
    %218 = vector.shape_cast %217 : vector<2x8xf32> to vector<2x8x1xf32>
    %cst_55 = arith.constant 6.400000e+01 : f32
    %219 = vector.broadcast %cst_55 : f32 to vector<2x8x1xf32>
    %220 = arith.divf %218, %219 : vector<2x8x1xf32>
    %221 = vector.broadcast %220 : vector<2x8x1xf32> to vector<2x8x64xf32>
    %222 = arith.subf %212, %221 : vector<2x8x64xf32>
    %223 = arith.mulf %222, %222 : vector<2x8x64xf32>
    %cst_56 = arith.constant dense<0.000000e+00> : vector<2x8xf32>
    %224 = vector.multi_reduction <add>, %223, %cst_56 [2] : vector<2x8x64xf32> to vector<2x8xf32>
    %225 = vector.shape_cast %224 : vector<2x8xf32> to vector<2x8x1xf32>
    %cst_57 = arith.constant 6.400000e+01 : f32
    %226 = vector.broadcast %cst_57 : f32 to vector<2x8x1xf32>
    %227 = arith.divf %225, %226 : vector<2x8x1xf32>
    %228 = vector.broadcast %220 : vector<2x8x1xf32> to vector<2x8x64xf32>
    %229 = arith.subf %212, %228 : vector<2x8x64xf32>
    %cst_58 = arith.constant 9.99999974E-6 : f32
    %230 = vector.broadcast %cst_58 : f32 to vector<2x8x1xf32>
    %231 = arith.addf %227, %230 : vector<2x8x1xf32>
    %232 = math.rsqrt %231 : vector<2x8x1xf32>
    %233 = vector.broadcast %232 : vector<2x8x1xf32> to vector<2x8x64xf32>
    %234 = arith.mulf %229, %233 : vector<2x8x64xf32>
    %235 = vector.shape_cast %215 : vector<1x64xf32> to vector<1x1x64xf32>
    %236 = vector.broadcast %235 : vector<1x1x64xf32> to vector<2x8x64xf32>
    %237 = arith.mulf %234, %236 : vector<2x8x64xf32>
    %238 = vector.shape_cast %216 : vector<1x64xf32> to vector<1x1x64xf32>
    %239 = vector.broadcast %238 : vector<1x1x64xf32> to vector<2x8x64xf32>
    %240 = arith.addf %237, %239 : vector<2x8x64xf32>
    %241 = vector.shape_cast %240 : vector<2x8x64xf32> to vector<16x64xf32>
    %242 = arith.truncf %241 : vector<16x64xf32> to vector<16x64xbf16>
    %243 = vector.extract_strided_slice %3 {offsets = [1, 0, 0], sizes = [1, 64, 192], strides = [1, 1, 1]} : vector<2x64x192xbf16> to vector<1x64x192xbf16>
    %244 = vector.shape_cast %243 : vector<1x64x192xbf16> to vector<64x192xbf16>
    %cst_59 = arith.constant dense<0.000000e+00> : vector<16x192xf32>
    %245 = tpu.matmul %242, %244, %cst_59 {dimension_numbers = #tpu.dot_dimension_numbers<[1], [0], [0], [1], [0, 0, 1, 1], [], []>} : vector<16x64xbf16>, vector<64x192xbf16>, vector<16x192xf32> -> vector<16x192xf32>
    %246 = vector.extract_strided_slice %245 {offsets = [0, 0], sizes = [16, 64], strides = [1, 1]} : vector<16x192xf32> to vector<16x64xf32>
    %247 = vector.shape_cast %246 : vector<16x64xf32> to vector<2x8x64xf32>
    %248 = vector.extract_strided_slice %245 {offsets = [0, 64], sizes = [16, 64], strides = [1, 1]} : vector<16x192xf32> to vector<16x64xf32>
    %249 = vector.shape_cast %248 : vector<16x64xf32> to vector<2x8x64xf32>
    %250 = vector.extract_strided_slice %245 {offsets = [0, 128], sizes = [16, 64], strides = [1, 1]} : vector<16x192xf32> to vector<16x64xf32>
    %251 = vector.shape_cast %250 : vector<16x64xf32> to vector<2x8x64xf32>
    %252 = arith.truncf %247 : vector<2x8x64xf32> to vector<2x8x64xbf16>
    %253 = arith.truncf %249 : vector<2x8x64xf32> to vector<2x8x64xbf16>
    %254 = arith.truncf %251 : vector<2x8x64xf32> to vector<2x8x64xbf16>
    %255 = vector.extract_strided_slice %252 {offsets = [0, 0, 0], sizes = [2, 8, 16], strides = [1, 1, 1]} : vector<2x8x64xbf16> to vector<2x8x16xbf16>
    %256 = vector.extract_strided_slice %252 {offsets = [0, 0, 16], sizes = [2, 8, 16], strides = [1, 1, 1]} : vector<2x8x64xbf16> to vector<2x8x16xbf16>
    %257 = vector.extract_strided_slice %252 {offsets = [0, 0, 32], sizes = [2, 8, 16], strides = [1, 1, 1]} : vector<2x8x64xbf16> to vector<2x8x16xbf16>
    %258 = vector.extract_strided_slice %252 {offsets = [0, 0, 48], sizes = [2, 8, 16], strides = [1, 1, 1]} : vector<2x8x64xbf16> to vector<2x8x16xbf16>
    %259 = tpu.concatenate %255, %256, %257, %258 in 0 : vector<2x8x16xbf16>, vector<2x8x16xbf16>, vector<2x8x16xbf16>, vector<2x8x16xbf16> -> vector<8x8x16xbf16>
    %260 = vector.extract_strided_slice %253 {offsets = [0, 0, 0], sizes = [2, 8, 16], strides = [1, 1, 1]} : vector<2x8x64xbf16> to vector<2x8x16xbf16>
    %261 = vector.extract_strided_slice %253 {offsets = [0, 0, 16], sizes = [2, 8, 16], strides = [1, 1, 1]} : vector<2x8x64xbf16> to vector<2x8x16xbf16>
    %262 = vector.extract_strided_slice %253 {offsets = [0, 0, 32], sizes = [2, 8, 16], strides = [1, 1, 1]} : vector<2x8x64xbf16> to vector<2x8x16xbf16>
    %263 = vector.extract_strided_slice %253 {offsets = [0, 0, 48], sizes = [2, 8, 16], strides = [1, 1, 1]} : vector<2x8x64xbf16> to vector<2x8x16xbf16>
    %264 = tpu.concatenate %260, %261, %262, %263 in 0 : vector<2x8x16xbf16>, vector<2x8x16xbf16>, vector<2x8x16xbf16>, vector<2x8x16xbf16> -> vector<8x8x16xbf16>
    %265 = vector.extract_strided_slice %254 {offsets = [0, 0, 0], sizes = [2, 8, 16], strides = [1, 1, 1]} : vector<2x8x64xbf16> to vector<2x8x16xbf16>
    %266 = vector.extract_strided_slice %254 {offsets = [0, 0, 16], sizes = [2, 8, 16], strides = [1, 1, 1]} : vector<2x8x64xbf16> to vector<2x8x16xbf16>
    %267 = vector.extract_strided_slice %254 {offsets = [0, 0, 32], sizes = [2, 8, 16], strides = [1, 1, 1]} : vector<2x8x64xbf16> to vector<2x8x16xbf16>
    %268 = vector.extract_strided_slice %254 {offsets = [0, 0, 48], sizes = [2, 8, 16], strides = [1, 1, 1]} : vector<2x8x64xbf16> to vector<2x8x16xbf16>
    %269 = tpu.concatenate %265, %266, %267, %268 in 0 : vector<2x8x16xbf16>, vector<2x8x16xbf16>, vector<2x8x16xbf16>, vector<2x8x16xbf16> -> vector<8x8x16xbf16>
    "tpu.trace_start"() <{level = 10 : i32, message = "zqd,zkd->zqk"}> : () -> ()
    %cst_60 = arith.constant dense<0.000000e+00> : vector<8x8x8xf32>
    %270 = tpu.matmul %259, %264, %cst_60 {dimension_numbers = #tpu.dot_dimension_numbers<[2], [2], [1], [1], [0, 0, 0, 1, 1, 1], [0], [0]>} : vector<8x8x16xbf16>, vector<8x8x16xbf16>, vector<8x8x8xf32> -> vector<8x8x8xf32>
    %cst_61 = arith.constant -1.000000e+30 : f32
    "tpu.trace_stop"() : () -> ()
    %271 = vector.shape_cast %11 : vector<1x8x8xi1> to vector<1x8x8xi1>
    %272 = vector.broadcast %271 : vector<1x8x8xi1> to vector<8x8x8xi1>
    %273 = vector.broadcast %cst_61 : f32 to vector<8x8x8xf32>
    %274 = arith.select %272, %270, %273 : vector<8x8x8xi1>, vector<8x8x8xf32>
    %cst_62 = arith.constant dense<0xFF800000> : vector<8x8xf32>
    %275 = vector.multi_reduction <maximumf>, %274, %cst_62 [2] : vector<8x8x8xf32> to vector<8x8xf32>
    %276 = vector.shape_cast %275 : vector<8x8xf32> to vector<8x8x1xf32>
    %277 = vector.broadcast %276 : vector<8x8x1xf32> to vector<8x8x8xf32>
    %278 = arith.subf %274, %277 : vector<8x8x8xf32>
    %279 = math.exp %278 : vector<8x8x8xf32>
    %cst_63 = arith.constant dense<0.000000e+00> : vector<8x8xf32>
    %280 = vector.multi_reduction <add>, %279, %cst_63 [2] : vector<8x8x8xf32> to vector<8x8xf32>
    %281 = vector.shape_cast %280 : vector<8x8xf32> to vector<8x8x1xf32>
    %282 = vector.broadcast %281 : vector<8x8x1xf32> to vector<8x8x8xf32>
    %283 = arith.divf %279, %282 : vector<8x8x8xf32>
    %284 = arith.truncf %283 : vector<8x8x8xf32> to vector<8x8x8xbf16>
    "tpu.trace_start"() <{level = 10 : i32, message = "zqk,zkd->zqd"}> : () -> ()
    %cst_64 = arith.constant dense<0.000000e+00> : vector<8x8x16xf32>
    %285 = tpu.matmul %284, %269, %cst_64 {dimension_numbers = #tpu.dot_dimension_numbers<[2], [1], [1], [2], [0, 0, 0, 1, 1, 2], [0], [0]>} : vector<8x8x8xbf16>, vector<8x8x16xbf16>, vector<8x8x16xf32> -> vector<8x8x16xf32>
    "tpu.trace_stop"() : () -> ()
    %286 = vector.extract_strided_slice %285 {offsets = [0, 0, 0], sizes = [2, 8, 16], strides = [1, 1, 1]} : vector<8x8x16xf32> to vector<2x8x16xf32>
    %287 = vector.extract_strided_slice %285 {offsets = [2, 0, 0], sizes = [2, 8, 16], strides = [1, 1, 1]} : vector<8x8x16xf32> to vector<2x8x16xf32>
    %288 = vector.extract_strided_slice %285 {offsets = [4, 0, 0], sizes = [2, 8, 16], strides = [1, 1, 1]} : vector<8x8x16xf32> to vector<2x8x16xf32>
    %289 = vector.extract_strided_slice %285 {offsets = [6, 0, 0], sizes = [2, 8, 16], strides = [1, 1, 1]} : vector<8x8x16xf32> to vector<2x8x16xf32>
    %290 = tpu.concatenate %286, %287, %288, %289 in 2 : vector<2x8x16xf32>, vector<2x8x16xf32>, vector<2x8x16xf32>, vector<2x8x16xf32> -> vector<2x8x64xf32>
    %291 = arith.addf %240, %290 : vector<2x8x64xf32>
    %292 = vector.extract_strided_slice %214 {offsets = [2, 0], sizes = [1, 64], strides = [1, 1]} : vector<8x64xf32> to vector<1x64xf32>
    %293 = vector.extract_strided_slice %214 {offsets = [3, 0], sizes = [1, 64], strides = [1, 1]} : vector<8x64xf32> to vector<1x64xf32>
    %cst_65 = arith.constant dense<0.000000e+00> : vector<2x8xf32>
    %294 = vector.multi_reduction <add>, %291, %cst_65 [2] : vector<2x8x64xf32> to vector<2x8xf32>
    %295 = vector.shape_cast %294 : vector<2x8xf32> to vector<2x8x1xf32>
    %cst_66 = arith.constant 6.400000e+01 : f32
    %296 = vector.broadcast %cst_66 : f32 to vector<2x8x1xf32>
    %297 = arith.divf %295, %296 : vector<2x8x1xf32>
    %298 = vector.broadcast %297 : vector<2x8x1xf32> to vector<2x8x64xf32>
    %299 = arith.subf %291, %298 : vector<2x8x64xf32>
    %300 = arith.mulf %299, %299 : vector<2x8x64xf32>
    %cst_67 = arith.constant dense<0.000000e+00> : vector<2x8xf32>
    %301 = vector.multi_reduction <add>, %300, %cst_67 [2] : vector<2x8x64xf32> to vector<2x8xf32>
    %302 = vector.shape_cast %301 : vector<2x8xf32> to vector<2x8x1xf32>
    %cst_68 = arith.constant 6.400000e+01 : f32
    %303 = vector.broadcast %cst_68 : f32 to vector<2x8x1xf32>
    %304 = arith.divf %302, %303 : vector<2x8x1xf32>
    %305 = vector.broadcast %297 : vector<2x8x1xf32> to vector<2x8x64xf32>
    %306 = arith.subf %291, %305 : vector<2x8x64xf32>
    %cst_69 = arith.constant 9.99999974E-6 : f32
    %307 = vector.broadcast %cst_69 : f32 to vector<2x8x1xf32>
    %308 = arith.addf %304, %307 : vector<2x8x1xf32>
    %309 = math.rsqrt %308 : vector<2x8x1xf32>
    %310 = vector.broadcast %309 : vector<2x8x1xf32> to vector<2x8x64xf32>
    %311 = arith.mulf %306, %310 : vector<2x8x64xf32>
    %312 = vector.shape_cast %292 : vector<1x64xf32> to vector<1x1x64xf32>
    %313 = vector.broadcast %312 : vector<1x1x64xf32> to vector<2x8x64xf32>
    %314 = arith.mulf %311, %313 : vector<2x8x64xf32>
    %315 = vector.shape_cast %293 : vector<1x64xf32> to vector<1x1x64xf32>
    %316 = vector.broadcast %315 : vector<1x1x64xf32> to vector<2x8x64xf32>
    %317 = arith.addf %314, %316 : vector<2x8x64xf32>
    %318 = vector.shape_cast %317 : vector<2x8x64xf32> to vector<16x64xf32>
    %319 = arith.truncf %318 : vector<16x64xf32> to vector<16x64xbf16>
    %320 = vector.extract_strided_slice %4 {offsets = [1, 0, 0], sizes = [1, 64, 64], strides = [1, 1, 1]} : vector<2x64x64xbf16> to vector<1x64x64xbf16>
    %321 = vector.shape_cast %320 : vector<1x64x64xbf16> to vector<64x64xbf16>
    %cst_70 = arith.constant dense<0.000000e+00> : vector<16x64xf32>
    %322 = tpu.matmul %319, %321, %cst_70 {dimension_numbers = #tpu.dot_dimension_numbers<[1], [0], [0], [1], [0, 0, 1, 1], [], []>} : vector<16x64xbf16>, vector<64x64xbf16>, vector<16x64xf32> -> vector<16x64xf32>
    %323 = vector.shape_cast %322 : vector<16x64xf32> to vector<2x8x64xf32>
    %324 = vector.extract_strided_slice %14 {offsets = [0, 128], sizes = [16, 64], strides = [1, 1]} : vector<16x256xf32> to vector<16x64xf32>
    %325 = vector.shape_cast %324 : vector<16x64xf32> to vector<2x8x64xf32>
    %326 = vector.extract_strided_slice %14 {offsets = [0, 192], sizes = [16, 64], strides = [1, 1]} : vector<16x256xf32> to vector<16x64xf32>
    %327 = vector.shape_cast %326 : vector<16x64xf32> to vector<2x8x64xf32>
    %328 = arith.truncf %323 : vector<2x8x64xf32> to vector<2x8x64xbf16>
    %329 = arith.truncf %325 : vector<2x8x64xf32> to vector<2x8x64xbf16>
    %330 = arith.truncf %327 : vector<2x8x64xf32> to vector<2x8x64xbf16>
    %331 = vector.extract_strided_slice %328 {offsets = [0, 0, 0], sizes = [2, 8, 16], strides = [1, 1, 1]} : vector<2x8x64xbf16> to vector<2x8x16xbf16>
    %332 = vector.extract_strided_slice %328 {offsets = [0, 0, 16], sizes = [2, 8, 16], strides = [1, 1, 1]} : vector<2x8x64xbf16> to vector<2x8x16xbf16>
    %333 = vector.extract_strided_slice %328 {offsets = [0, 0, 32], sizes = [2, 8, 16], strides = [1, 1, 1]} : vector<2x8x64xbf16> to vector<2x8x16xbf16>
    %334 = vector.extract_strided_slice %328 {offsets = [0, 0, 48], sizes = [2, 8, 16], strides = [1, 1, 1]} : vector<2x8x64xbf16> to vector<2x8x16xbf16>
    %335 = tpu.concatenate %331, %332, %333, %334 in 0 : vector<2x8x16xbf16>, vector<2x8x16xbf16>, vector<2x8x16xbf16>, vector<2x8x16xbf16> -> vector<8x8x16xbf16>
    %336 = vector.extract_strided_slice %329 {offsets = [0, 0, 0], sizes = [2, 8, 16], strides = [1, 1, 1]} : vector<2x8x64xbf16> to vector<2x8x16xbf16>
    %337 = vector.extract_strided_slice %329 {offsets = [0, 0, 16], sizes = [2, 8, 16], strides = [1, 1, 1]} : vector<2x8x64xbf16> to vector<2x8x16xbf16>
    %338 = vector.extract_strided_slice %329 {offsets = [0, 0, 32], sizes = [2, 8, 16], strides = [1, 1, 1]} : vector<2x8x64xbf16> to vector<2x8x16xbf16>
    %339 = vector.extract_strided_slice %329 {offsets = [0, 0, 48], sizes = [2, 8, 16], strides = [1, 1, 1]} : vector<2x8x64xbf16> to vector<2x8x16xbf16>
    %340 = tpu.concatenate %336, %337, %338, %339 in 0 : vector<2x8x16xbf16>, vector<2x8x16xbf16>, vector<2x8x16xbf16>, vector<2x8x16xbf16> -> vector<8x8x16xbf16>
    %341 = vector.extract_strided_slice %330 {offsets = [0, 0, 0], sizes = [2, 8, 16], strides = [1, 1, 1]} : vector<2x8x64xbf16> to vector<2x8x16xbf16>
    %342 = vector.extract_strided_slice %330 {offsets = [0, 0, 16], sizes = [2, 8, 16], strides = [1, 1, 1]} : vector<2x8x64xbf16> to vector<2x8x16xbf16>
    %343 = vector.extract_strided_slice %330 {offsets = [0, 0, 32], sizes = [2, 8, 16], strides = [1, 1, 1]} : vector<2x8x64xbf16> to vector<2x8x16xbf16>
    %344 = vector.extract_strided_slice %330 {offsets = [0, 0, 48], sizes = [2, 8, 16], strides = [1, 1, 1]} : vector<2x8x64xbf16> to vector<2x8x16xbf16>
    %345 = tpu.concatenate %341, %342, %343, %344 in 0 : vector<2x8x16xbf16>, vector<2x8x16xbf16>, vector<2x8x16xbf16>, vector<2x8x16xbf16> -> vector<8x8x16xbf16>
    "tpu.trace_start"() <{level = 10 : i32, message = "zqd,zkd->zqk"}> : () -> ()
    %cst_71 = arith.constant dense<0.000000e+00> : vector<8x8x8xf32>
    %346 = tpu.matmul %335, %340, %cst_71 {dimension_numbers = #tpu.dot_dimension_numbers<[2], [2], [1], [1], [0, 0, 0, 1, 1, 1], [0], [0]>} : vector<8x8x16xbf16>, vector<8x8x16xbf16>, vector<8x8x8xf32> -> vector<8x8x8xf32>
    "tpu.trace_stop"() : () -> ()
    %cst_72 = arith.constant dense<0xFF800000> : vector<8x8xf32>
    %347 = vector.multi_reduction <maximumf>, %346, %cst_72 [2] : vector<8x8x8xf32> to vector<8x8xf32>
    %348 = vector.shape_cast %347 : vector<8x8xf32> to vector<8x8x1xf32>
    %349 = vector.broadcast %348 : vector<8x8x1xf32> to vector<8x8x8xf32>
    %350 = arith.subf %346, %349 : vector<8x8x8xf32>
    %351 = math.exp %350 : vector<8x8x8xf32>
    %cst_73 = arith.constant dense<0.000000e+00> : vector<8x8xf32>
    %352 = vector.multi_reduction <add>, %351, %cst_73 [2] : vector<8x8x8xf32> to vector<8x8xf32>
    %353 = vector.shape_cast %352 : vector<8x8xf32> to vector<8x8x1xf32>
    %354 = vector.broadcast %353 : vector<8x8x1xf32> to vector<8x8x8xf32>
    %355 = arith.divf %351, %354 : vector<8x8x8xf32>
    %356 = arith.truncf %355 : vector<8x8x8xf32> to vector<8x8x8xbf16>
    "tpu.trace_start"() <{level = 10 : i32, message = "zqk,zkd->zqd"}> : () -> ()
    %cst_74 = arith.constant dense<0.000000e+00> : vector<8x8x16xf32>
    %357 = tpu.matmul %356, %345, %cst_74 {dimension_numbers = #tpu.dot_dimension_numbers<[2], [1], [1], [2], [0, 0, 0, 1, 1, 2], [0], [0]>} : vector<8x8x8xbf16>, vector<8x8x16xbf16>, vector<8x8x16xf32> -> vector<8x8x16xf32>
    "tpu.trace_stop"() : () -> ()
    %358 = vector.extract_strided_slice %357 {offsets = [0, 0, 0], sizes = [2, 8, 16], strides = [1, 1, 1]} : vector<8x8x16xf32> to vector<2x8x16xf32>
    %359 = vector.extract_strided_slice %357 {offsets = [2, 0, 0], sizes = [2, 8, 16], strides = [1, 1, 1]} : vector<8x8x16xf32> to vector<2x8x16xf32>
    %360 = vector.extract_strided_slice %357 {offsets = [4, 0, 0], sizes = [2, 8, 16], strides = [1, 1, 1]} : vector<8x8x16xf32> to vector<2x8x16xf32>
    %361 = vector.extract_strided_slice %357 {offsets = [6, 0, 0], sizes = [2, 8, 16], strides = [1, 1, 1]} : vector<8x8x16xf32> to vector<2x8x16xf32>
    %362 = tpu.concatenate %358, %359, %360, %361 in 2 : vector<2x8x16xf32>, vector<2x8x16xf32>, vector<2x8x16xf32>, vector<2x8x16xf32> -> vector<2x8x64xf32>
    %363 = arith.addf %317, %362 : vector<2x8x64xf32>
    %364 = vector.extract_strided_slice %214 {offsets = [4, 0], sizes = [1, 64], strides = [1, 1]} : vector<8x64xf32> to vector<1x64xf32>
    %365 = vector.extract_strided_slice %214 {offsets = [5, 0], sizes = [1, 64], strides = [1, 1]} : vector<8x64xf32> to vector<1x64xf32>
    %cst_75 = arith.constant dense<0.000000e+00> : vector<2x8xf32>
    %366 = vector.multi_reduction <add>, %363, %cst_75 [2] : vector<2x8x64xf32> to vector<2x8xf32>
    %367 = vector.shape_cast %366 : vector<2x8xf32> to vector<2x8x1xf32>
    %cst_76 = arith.constant 6.400000e+01 : f32
    %368 = vector.broadcast %cst_76 : f32 to vector<2x8x1xf32>
    %369 = arith.divf %367, %368 : vector<2x8x1xf32>
    %370 = vector.broadcast %369 : vector<2x8x1xf32> to vector<2x8x64xf32>
    %371 = arith.subf %363, %370 : vector<2x8x64xf32>
    %372 = arith.mulf %371, %371 : vector<2x8x64xf32>
    %cst_77 = arith.constant dense<0.000000e+00> : vector<2x8xf32>
    %373 = vector.multi_reduction <add>, %372, %cst_77 [2] : vector<2x8x64xf32> to vector<2x8xf32>
    %374 = vector.shape_cast %373 : vector<2x8xf32> to vector<2x8x1xf32>
    %cst_78 = arith.constant 6.400000e+01 : f32
    %375 = vector.broadcast %cst_78 : f32 to vector<2x8x1xf32>
    %376 = arith.divf %374, %375 : vector<2x8x1xf32>
    %377 = vector.broadcast %369 : vector<2x8x1xf32> to vector<2x8x64xf32>
    %378 = arith.subf %363, %377 : vector<2x8x64xf32>
    %cst_79 = arith.constant 9.99999974E-6 : f32
    %379 = vector.broadcast %cst_79 : f32 to vector<2x8x1xf32>
    %380 = arith.addf %376, %379 : vector<2x8x1xf32>
    %381 = math.rsqrt %380 : vector<2x8x1xf32>
    %382 = vector.broadcast %381 : vector<2x8x1xf32> to vector<2x8x64xf32>
    %383 = arith.mulf %378, %382 : vector<2x8x64xf32>
    %384 = vector.shape_cast %364 : vector<1x64xf32> to vector<1x1x64xf32>
    %385 = vector.broadcast %384 : vector<1x1x64xf32> to vector<2x8x64xf32>
    %386 = arith.mulf %383, %385 : vector<2x8x64xf32>
    %387 = vector.shape_cast %365 : vector<1x64xf32> to vector<1x1x64xf32>
    %388 = vector.broadcast %387 : vector<1x1x64xf32> to vector<2x8x64xf32>
    %389 = arith.addf %386, %388 : vector<2x8x64xf32>
    %390 = vector.shape_cast %389 : vector<2x8x64xf32> to vector<16x64xf32>
    %391 = arith.truncf %390 : vector<16x64xf32> to vector<16x64xbf16>
    %392 = vector.extract_strided_slice %6 {offsets = [1, 0, 0], sizes = [1, 64, 256], strides = [1, 1, 1]} : vector<2x64x256xbf16> to vector<1x64x256xbf16>
    %393 = vector.shape_cast %392 : vector<1x64x256xbf16> to vector<64x256xbf16>
    %cst_80 = arith.constant dense<0.000000e+00> : vector<16x256xf32>
    %394 = tpu.matmul %391, %393, %cst_80 {dimension_numbers = #tpu.dot_dimension_numbers<[1], [0], [0], [1], [0, 0, 1, 1], [], []>} : vector<16x64xbf16>, vector<64x256xbf16>, vector<16x256xf32> -> vector<16x256xf32>
    %395 = vector.extract_strided_slice %8 {offsets = [1, 0, 0], sizes = [1, 1, 256], strides = [1, 1, 1]} : vector<2x2x256xf32> to vector<1x1x256xf32>
    %396 = vector.shape_cast %395 : vector<1x1x256xf32> to vector<1x256xf32>
    %397 = vector.broadcast %396 : vector<1x256xf32> to vector<16x256xf32>
    %398 = arith.addf %394, %397 : vector<16x256xf32>
    %cst_81 = arith.constant 0.000000e+00 : f32
    %399 = vector.broadcast %cst_81 : f32 to vector<16x256xf32>
    %400 = arith.maximumf %398, %399 : vector<16x256xf32>
    %401 = arith.truncf %400 : vector<16x256xf32> to vector<16x256xbf16>
    %402 = vector.extract_strided_slice %7 {offsets = [1, 0, 0], sizes = [1, 256, 64], strides = [1, 1, 1]} : vector<2x256x64xbf16> to vector<1x256x64xbf16>
    %403 = vector.shape_cast %402 : vector<1x256x64xbf16> to vector<256x64xbf16>
    %cst_82 = arith.constant dense<0.000000e+00> : vector<16x64xf32>
    %404 = tpu.matmul %401, %403, %cst_82 {dimension_numbers = #tpu.dot_dimension_numbers<[1], [0], [0], [1], [0, 0, 1, 1], [], []>} : vector<16x256xbf16>, vector<256x64xbf16>, vector<16x64xf32> -> vector<16x64xf32>
    %405 = vector.extract_strided_slice %8 {offsets = [1, 1, 0], sizes = [1, 1, 64], strides = [1, 1, 1]} : vector<2x2x256xf32> to vector<1x1x64xf32>
    %406 = vector.shape_cast %405 : vector<1x1x64xf32> to vector<1x64xf32>
    %407 = vector.broadcast %406 : vector<1x64xf32> to vector<16x64xf32>
    %408 = arith.addf %404, %407 : vector<16x64xf32>
    %409 = vector.shape_cast %408 : vector<16x64xf32> to vector<2x8x64xf32>
    %410 = arith.addf %389, %409 : vector<2x8x64xf32>
    %c0_83 = arith.constant 0 : index
    %c0_84 = arith.constant 0 : index
    %c0_85 = arith.constant 0 : index
    %411 = vector.load %arg9[%c0_83, %c0_84, %c0_85] : memref<2x8x64xf32, #tpu.memory_space<vmem>>, vector<2x8x64xf32>
    tpu.vector_store %arg9[%c0_83, %c0_84, %c0_85], %410 {strides = array<i32>} : memref<2x8x64xf32, #tpu.memory_space<vmem>>, vector<2x8x64xf32>,
    return
  }
}

</mosaic_0001>

<bundles_post_ra>
// kernel: tpu_custom_call.1
= control target key start
LH: loop header
LB: loop body
LE: loop exit
PB: predicated region body
PF: predicated region fallthrough
CT: control target
= control target key end

     0   :  { %14 = vsyncpa [#allocation3], 0  ;;  %s7430_s0 = inlined_call_operand.hbm [shape: f32[2,8,64], index: 0, kind: input, shape index: {}]   ;;  %s7431_s1 = inlined_call_operand.hbm [shape: f32[2,8,64], index: 1, kind: input, shape index: {}]   ;;  %s7432_s2 = inlined_call_operand.hbm [shape: f32[2,8,64], index: 2, kind: input, shape index: {}]   ;;  %s7433_s3 = inlined_call_operand.vmem [shape: bf16[2,64,192], index: 3, kind: input, shape index: {}]   ;;  %s7434_s4 = inlined_call_operand.vmem [shape: bf16[2,64,64], index: 4, kind: input, shape index: {}]   ;;  %s7435_s5 = inlined_call_operand.vmem [shape: bf16[64,256], index: 5, kind: input, shape index: {}]   ;;  %s7436_s6 = inlined_call_operand.vmem [shape: bf16[2,64,256], index: 6, kind: input, shape index: {}]   ;;  %s7437_s7 = inlined_call_operand.vmem [shape: bf16[2,256,64], index: 7, kind: input, shape index: {}]   ;;  %s7438_s8 = inlined_call_operand.vmem [shape: f32[2,2,256], index: 8, kind: input, shape index: {}]   ;;  %s7439_s9 = inlined_call_operand.hbm [shape: f32[2,8,64], index: 9, kind: output, shape index: {}]  }
   0x1   :  { %15 = vsyncpa [#allocation6], 0 }
   0x2   :  { %16 = vsyncpa [#allocation4], 0  ;;  %s6135_s30 = smov [#allocation5]   ;;  %s6136_s11 = smov [#allocation2]  }
   0x3   :  { %s34_s10 = sshll.u32 %s6135_s30, 4  ;;  %s22_s12 = sshll.u32 %s6136_s11, 4  ;;  %s35_s10 = int_to_ptr.vmem [resolvable:$true] %s34_s10  ;;  %s23_s12 = int_to_ptr.vmem [resolvable:$true] %s22_s12 }
   0x4   :  { %s6057_s13 = scalar_lea.vmem %s35_s10, 256  ;;  %p6062_p1 = scmp.lt.s32.totalorder %s35_s10, %s35_s10 }
   0x5   :  { %p6058_p0 = scmp.ne.s32.totalorder %s35_s10, %s6057_s13  ;;  %p6063_p2 = scmp.lt.s32.totalorder %s6057_s13, %s6057_s13 }
   0x7   :  { %p6064_p3 = por %p6063_p2, %p6062_p1 }
   0x9   :  { %p6065_p4 = pnand %p6064_p3, %p6058_p0 }
   0xb   :  { %6068 = shalt.err (!%p6065_p4)
}
   0xc   :  { %s6137_s14 = smov 128   ;;  %s6138_s15 = smov 8  }
   0xd   :  { %40 = dma.hbm_to_vmem [thread:$0]  %s7431_s1, 256, %s35_s10, [#allocation6], %s6137_s14, %s6137_s14, %s6138_s15  }
   0xe   :  { %s6077_s18 = scalar_lea.vmem %s23_s12, 256  ;;  %p6082_p6 = scmp.lt.s32.totalorder %s23_s12, %s23_s12 }
   0xf   :  { %p6078_p5 = scmp.ne.s32.totalorder %s23_s12, %s6077_s18  ;;  %p6083_p7 = scmp.lt.s32.totalorder %s6077_s18, %s6077_s18 }
  0x11   :  { %p6084_p8 = por %p6083_p7, %p6082_p6 }
  0x13   :  { %p6085_p9 = pnand %p6084_p8, %p6078_p5 }
  0x15   :  { %6088 = shalt.err (!%p6085_p9)
}
  0x16   :  { %28 = dma.hbm_to_vmem [thread:$0]  %s7430_s0, 256, %s23_s12, [#allocation3], %s6137_s14, %s6137_s14, %s6138_s15  }
  0x17   :  { %s6139_s21 = smov [#allocation7]  }
  0x18   :  { %s46_s22 = sshll.u32 %s6139_s21, 4  ;;  %s47_s22 = int_to_ptr.vmem [resolvable:$true] %s46_s22 }
  0x19   :  { %s6097_s23 = scalar_lea.vmem %s47_s22, 256  ;;  %p6102_p11 = scmp.lt.s32.totalorder %s47_s22, %s47_s22 }
  0x1a   :  { %p6098_p10 = scmp.ne.s32.totalorder %s47_s22, %s6097_s23  ;;  %p6103_p12 = scmp.lt.s32.totalorder %s6097_s23, %s6097_s23 }
  0x1c   :  { %p6104_p13 = por %p6103_p12, %p6102_p11 }
  0x1e   :  { %p6105_p0 = pnand %p6104_p13, %p6098_p10 }
  0x20   :  { %6108 = shalt.err (!%p6105_p0)
}
  0x21   :  { %52 = dma.hbm_to_vmem [thread:$0]  %s7432_s2, 256, %s47_s22, [#allocation6], %s6137_s14, %s6137_s14, %s6138_s15  }
  0x22   :  { %6129 = dma.done.wait [#allocation3], 256  }
  0x23   :  { %6130 = vsyncadd [#allocation3], 4294967040 }
  0x24   :  { %6131 = dma.done.wait [#allocation6], 512  }
  0x25   :  { %6132 = vsyncadd [#allocation6], 4294966784  ;;  %vm249_vm0 = vcmask 523264   ;;  %v75_v0 = vld [vmem:[#allocation2] sm:$0xff]  ;;  %v76_v1 = vld [vmem:[#allocation2 + $0x8] sm:$0xff]  ;;  %v6140_v18 = vmov 0   ;;  %v203_v29 = vlaneseq }
  0x26   :  { %v296_v2 = vsel %vm249_vm0, %v75_v0, 0.0  ;;  %v299_v3 = vsel %vm249_vm0, %v76_v1, 0.0  ;;  %v5795_v14 = vld [vmem:[%s7433_s3 + $0x34] ss:$8 sps:$4 sm:$0xff]   ;;  %v5797_v15 = vld [vmem:[%s7433_s3 + $0x30] ss:$8 sps:$4 sm:$0xff]   ;;  %411 = vmatprep.mubr.bf16.mxu1 %v6140_v18  ;;  %285 = vmatprep.mubr.bf16.mxu0 %v6140_v18 }
  0x27   :  { %297 = vadd.xlane.f32.xlu0 %v296_v2  ;;  %v5798_v16 = vld [vmem:[%s7433_s3 + $0x24] ss:$8 sps:$4 sm:$0xff]   ;;  %387 = vmatprep.subr.bf16.mxu1 %v5795_v14  ;;  %v5800_v17 = vld [vmem:[%s7433_s3 + $0x20] ss:$8 sps:$4 sm:$0xff]   ;;  %v5801_v19 = vld [vmem:[%s7433_s3 + $0x14] ss:$8 sps:$4 sm:$0xff]  }
  0x28   :  { %388 = vmatpush1.bf16.msra.mxu1 %v5797_v15  ;;  %v5803_v20 = vld [vmem:[%s7433_s3 + $0x10] ss:$8 sps:$4 sm:$0xff]   ;;  %v5804_v21 = vld [vmem:[%s7433_s3 + $0x4] ss:$8 sps:$4 sm:$0xff]   ;;  %v5806_v22 = vld [vmem:[%s7433_s3] ss:$8 sps:$4 sm:$0xff]  }
  0x29   :  { %389 = vmatprep.subr.bf16.mxu1 %v5798_v16  ;;  %v6250_v30 = vshrl.u32 %v203_v29, 7  ;;  %v6255_v32 = vld [vmem:[#allocation7] sm:$0xff]  ;;  %v5807_v45 = vld [vmem:[%s7435_s5 + $0x34] ss:$8 sps:$4 sm:$0xff]   ;;  %v5809_v46 = vld [vmem:[%s7435_s5 + $0x30] ss:$8 sps:$4 sm:$0xff]  }
  0x2a   :  { %v5810_v47 = vld [vmem:[%s7435_s5 + $0x24] ss:$8 sps:$4 sm:$0xff]   ;;  %261 = vmatprep.subr.bf16.mxu0 %v5807_v45  ;;  %v5812_v48 = vld [vmem:[%s7435_s5 + $0x20] ss:$8 sps:$4 sm:$0xff]   ;;  %v5813_v49 = vld [vmem:[%s7435_s5 + $0x14] ss:$8 sps:$4 sm:$0xff]  }
  0x2b   :  { %300 = vadd.xlane.f32.xlu0 %v299_v3  ;;  %v6253_v31 = vsub.s32 0, %v6250_v30  ;;  %v6260_v36 = vsub.s32 1, %v6250_v30  ;;  %262 = vmatpush1.bf16.msra.mxu0 %v5809_v46  ;;  %v5815_v50 = vld [vmem:[%s7435_s5 + $0x10] ss:$8 sps:$4 sm:$0xff]   ;;  %v5816_v51 = vld [vmem:[%s7435_s5 + $0x4] ss:$8 sps:$4 sm:$0xff]  }
  0x2c   :  { %390 = vmatpush1.bf16.msra.mxu1 %v5800_v17  ;;  %263 = vmatprep.subr.bf16.mxu0 %v5810_v47  ;;  %v5818_v52 = vld [vmem:[%s7435_s5] ss:$8 sps:$4 sm:$0xff]   ;;  %v77_v53 = vld [vmem:[#allocation5] sm:$0xff]  ;;  %v78_v54 = vld [vmem:[#allocation5 + $0x8] sm:$0xff]  ;;  %v6141_v56 = vmov 0.0   ;;  %s6142_s12 = smov 112  }
  0x2d   :  { %391 = vmatprep.subr.bf16.mxu1 %v5801_v19  ;;  %v326_v35 = vrot.slane %v6255_v32, %v6253_v31  ;;  %v332_v40 = vrot.slane %v6255_v32, %v6260_v36  ;;  %v208_v55 = vpack.c.bf16 %v78_v54, %v77_v53  ;;  %vm6143_vm1 = vmmov 0   ;;  %s6144_s5 = smov 80   ;;  %s6145_s13 = smov 64  }
  0x2e   :  { %s6146_s16 = smov 96   ;;  %vm456_vm2 = vcmask 130048   ;;  %vm949_vm3 = vcmask 1043456   ;;  %vm849_vm5 = vcmask 64512   ;;  %s6147_s17 = smov 16   ;;  %vm1341_vm6 = vcmask 261120  }
  0x2f   :  { %264 = vmatpush1.bf16.msra.mxu0 %v5812_v48  ;;  %s6148_s18 = smov 32   ;;  %s6149_s19 = smov 48   ;;  %vm1344_vm7 = vcmask 392192  }
  0x30   :  { %392 = vmatpush1.bf16.msra.mxu1 %v5803_v20  ;;  %265 = vmatprep.subr.bf16.mxu0 %v5813_v49 }
  0x31   :  { %393 = vmatprep.subr.bf16.mxu1 %v5804_v21 }
  0x33   :  { %266 = vmatpush1.bf16.msra.mxu0 %v5815_v50 }
  0x34   :  { %394 = vmatpush1.bf16.msra.mxu1 %v5806_v22  ;;  %267 = vmatprep.subr.bf16.mxu0 %v5816_v51 }
  0x35   :  { %5389 = vmatprep.subr.bf16.mxu1 %v6141_v56 }
  0x37   :  { %268 = vmatpush1.bf16.msra.mxu0 %v5818_v52 }
  0x38   :  { %5371 = vmatprep.subr.bf16.mxu0 %v6141_v56 }
  0x3a   :  { %5046 = vmatmul.mubr.msk.bf16.vlgmr.msra.gmra.mxu0 %vm249_vm0, %v208_v55 }
  0x3b   :  { %5373 = vmatprep.mubr.msk.bf16.mxu0 %vm6143_vm1, %v6141_v56 }
  0xb0   :  { %v298_v4 = vpop.xlane.xlu0 %297 }
  0xb1   :  { %v303_v5 = vmul.f32 0.015625, %v298_v4 }
  0xb3   :  { %v305_v6 = vsub.f32 %v75_v0, %v303_v5 }
  0xb4   :  { %v301_v7 = vpop.xlane.xlu0 %300 }
  0xb5   :  { %v304_v8 = vmul.f32 0.015625, %v301_v7  ;;  %v307_v9 = vmul.f32 %v305_v6, %v305_v6 }
  0xb7   :  { %v306_v10 = vsub.f32 %v76_v1, %v304_v8  ;;  %v309_v11 = vsel %vm249_vm0, %v307_v9, 0.0 }
  0xb8   :  { %310 = vadd.xlane.f32.xlu1 %v309_v11 }
  0xb9   :  { %v308_v12 = vmul.f32 %v306_v10, %v306_v10 }
  0xbb   :  { %v312_v13 = vsel %vm249_vm0, %v308_v12, 0.0 }
  0xbc   :  { %313 = vadd.xlane.f32.xlu1 %v312_v13 }
 0x141   :  { %v311_v23 = vpop.xlane.xlu1 %310 }
 0x142   :  { %v315_v24 = vmul.f32 0.015625, %v311_v23 }
 0x144   :  { %v317_v25 = vadd.f32 1e-05, %v315_v24 }
 0x145   :  { %v314_v26 = vpop.xlane.xlu1 %313 }
 0x146   :  { %5895 = vrsqrt.f32 %v317_v25  ;;  %v316_v27 = vmul.f32 0.015625, %v314_v26  ;;  %v6370_v26 = vpop.f32.mrf.mxu0 }
 0x148   :  { %v318_v28 = vadd.f32 1e-05, %v316_v27  ;;  %v6372_v27 = vpop.f32.mrf.mxu0 }
 0x14a   :  { %5897 = vrsqrt.f32 %v318_v28  ;;  %v6374_v28 = vpop.f32.mrf.mxu0 }
 0x153   :  { %v5896_v33 = vpop.eup %5895 }
 0x154   :  { %v321_v34 = vmul.f32 %v5896_v33, %v305_v6  ;;  %v206_v33 = vand.u32 127, %v203_v29 }
 0x156   :  { %v327_v39 = vmul.f32 %v326_v35, %v321_v34  ;;  %v6377_v34 = vpop.f32.mrf.mxu0  ;;  %vm6380_vm4 = vcmp.ge.s32.totalorder %v6250_v30, %v206_v33 }
 0x157   :  { %v5898_v37 = vpop.eup %5897 }
 0x158   :  { %v322_v38 = vmul.f32 %v5898_v37, %v306_v10  ;;  %v6264_v42 = vadd.f32 %v332_v40, %v327_v39 }
 0x15a   :  { %v328_v41 = vmul.f32 %v326_v35, %v322_v38 }
 0x15c   :  { %v6266_v43 = vadd.f32 %v332_v40, %v328_v41 }
 0x15e   :  { %v335_v44 = vpack.c.bf16 %v6266_v43, %v6264_v42 }
 0x160   :  { %5055 = vmatmul.mubr.msk.bf16.vlgmr.msra.gmra.mxu1 %vm249_vm0, %v335_v44 }
 0x161   :  { %5391 = vmatprep.mubr.msk.bf16.mxu1 %vm6143_vm1, %v6141_v56 }
 0x220   :  { %v413_v57 = vpop.f32.mrf.mxu1 }
 0x221   :  { %v422_v58 = vpack.c.bf16 %v413_v57, %v413_v57 }
 0x222   :  { %v6298_v59 = vpop.f32.mrf.mxu1 }
 0x223   :  { %428 = vrot.lane.b32.xlu0 %v422_v58, %s6142_s12  ;;  %v6349_v20 = vpack.c.bf16 %v6298_v59, %v6298_v59 }
 0x224   :  { %v417_v60 = vpop.f32.mrf.mxu1 }
 0x225   :  { %v423_v61 = vpack.c.bf16 %v417_v60, %v417_v60  ;;  %v951_v24 = vsel %vm949_vm3, %v6349_v20, 0 }
 0x226   :  { %v419_v22 = vpop.f32.mrf.mxu1 }
 0x227   :  { %436 = vrot.lane.b32.xlu0 %v422_v58, %s6144_s5  ;;  %430 = vrot.lane.b32.xlu1 %v423_v61, %s6142_s12  ;;  %v6356_v23 = vpack.c.bf16 %v419_v22, %v419_v22 }
 0x229   :  { %v997_v25 = vsel %vm949_vm3, %v6356_v23, 0 }
 0x22b   :  { %454 = vrot.lane.b32.xlu0 %v422_v58, %s6145_s13  ;;  %432 = vrot.lane.b32.xlu1 %v422_v58, %s6146_s16 }
 0x22f   :  { %434 = vrot.lane.b32.xlu1 %v423_v61, %s6146_s16 }
 0x233   :  { %438 = vrot.lane.b32.xlu1 %v423_v61, %s6144_s5 }
 0x237   :  { %503 = vrot.lane.b32.xlu1 %v423_v61, %s6145_s13 }
 0x295   :  { %v429_v62 = vpop.permute.xlu0 %428 }
 0x296   :  { %551 = vrot.lane.b32.xlu0 %v429_v62, %s6145_s13 }
 0x299   :  { %v437_v63 = vpop.permute.xlu0 %436  ;;  %v431_v0 = vpop.permute.xlu1 %430 }
 0x29a   :  { %599 = vrot.lane.b32.xlu1 %v431_v0, %s6145_s13 }
 0x29d   :  { %v455_v1 = vpop.permute.xlu0 %454  ;;  %v433_v2 = vpop.permute.xlu1 %432 }
 0x29e   :  { %v461_v3 = vsel %vm456_vm2, %v455_v1, 0  ;;  %647 = vrot.lane.b32.xlu0 %v433_v2, %s6145_s13 }
 0x29f   :  { %5372 = vmatpush3.bf16.xpose.msra.mxu0 %v461_v3 }
 0x2a0   :  { %5377 = vmatprep.subr.bf16.mxu0 %v6141_v56 }
 0x2a1   :  { %v435_v4 = vpop.permute.xlu1 %434 }
 0x2a2   :  { %743 = vrot.lane.b32.xlu0 %v437_v63, %s6145_s13  ;;  %695 = vrot.lane.b32.xlu1 %v435_v4, %s6145_s13 }
 0x2a5   :  { %v439_v5 = vpop.permute.xlu1 %438 }
 0x2a6   :  { %5374 = vmatmul.mubr.msk.bf16.vlgmr.msra.gmra.mxu0 %vm456_vm2, %v422_v58  ;;  %791 = vrot.lane.b32.xlu1 %v439_v5, %s6145_s13 }
 0x2a7   :  { %5379 = vmatprep.mubr.msk.bf16.mxu0 %vm6143_vm1, %v6141_v56 }
 0x2a9   :  { %v504_v6 = vpop.permute.xlu1 %503 }
 0x2aa   :  { %v509_v7 = vsel %vm456_vm2, %v504_v6, 0 }
 0x2ab   :  { %5378 = vmatpush3.bf16.xpose.msra.mxu0 %v509_v7 }
 0x2ac   :  { %5383 = vmatprep.subr.bf16.mxu0 %v6141_v56 }
 0x2b2   :  { %5380 = vmatmul.mubr.msk.bf16.vlgmr.msra.gmra.mxu0 %vm456_vm2, %v423_v61 }
 0x2b3   :  { %5385 = vmatprep.mubr.msk.bf16.mxu0 %vm6143_vm1, %v6141_v56 }
 0x308   :  { %v552_v8 = vpop.permute.xlu0 %551 }
 0x309   :  { %v557_v9 = vsel %vm456_vm2, %v552_v8, 0 }
 0x30a   :  { %5384 = vmatpush3.bf16.xpose.msra.mxu0 %v557_v9 }
 0x30b   :  { %5395 = vmatprep.subr.bf16.mxu0 %v6141_v56 }
 0x30c   :  { %v600_v10 = vpop.permute.xlu1 %599 }
 0x30d   :  { %v605_v11 = vsel %vm456_vm2, %v600_v10, 0 }
 0x30e   :  { %5390 = vmatpush3.bf16.xpose.msra.mxu1 %v605_v11 }
 0x30f   :  { %5401 = vmatprep.subr.bf16.mxu1 %v6141_v56 }
 0x310   :  { %v648_v12 = vpop.permute.xlu0 %647 }
 0x311   :  { %v653_v13 = vsel %vm456_vm2, %v648_v12, 0  ;;  %5386 = vmatmul.mubr.msk.bf16.vlgmr.msra.gmra.mxu0 %vm456_vm2, %v429_v62 }
 0x312   :  { %5396 = vmatpush3.bf16.xpose.msra.mxu0 %v653_v13  ;;  %5397 = vmatprep.mubr.msk.bf16.mxu0 %vm6143_vm1, %v6141_v56 }
 0x313   :  { %5407 = vmatprep.subr.bf16.mxu0 %v6141_v56 }
 0x314   :  { %v696_v14 = vpop.permute.xlu1 %695  ;;  %v744_v16 = vpop.permute.xlu0 %743 }
 0x315   :  { %v701_v15 = vsel %vm456_vm2, %v696_v14, 0  ;;  %5392 = vmatmul.mubr.msk.bf16.vlgmr.msra.gmra.mxu1 %vm456_vm2, %v431_v0  ;;  %v749_v17 = vsel %vm456_vm2, %v744_v16, 0 }
 0x316   :  { %5402 = vmatpush3.bf16.xpose.msra.mxu1 %v701_v15  ;;  %5403 = vmatprep.mubr.msk.bf16.mxu1 %vm6143_vm1, %v6141_v56 }
 0x317   :  { %5413 = vmatprep.subr.bf16.mxu1 %v6141_v56 }
 0x318   :  { %v792_v19 = vpop.permute.xlu1 %791 }
 0x319   :  { %5398 = vmatmul.mubr.msk.bf16.vlgmr.msra.gmra.mxu0 %vm456_vm2, %v433_v2  ;;  %v797_v21 = vsel %vm456_vm2, %v792_v19, 0 }
 0x31a   :  { %5408 = vmatpush3.bf16.xpose.msra.mxu0 %v749_v17  ;;  %5409 = vmatprep.mubr.msk.bf16.mxu0 %vm6143_vm1, %v6141_v56 }
 0x31b   :  { %5419 = vmatprep.subr.bf16.mxu0 %v6141_v56 }
 0x31d   :  { %5404 = vmatmul.mubr.msk.bf16.vlgmr.msra.gmra.mxu1 %vm456_vm2, %v435_v4 }
 0x31e   :  { %5414 = vmatpush3.bf16.xpose.msra.mxu1 %v797_v21  ;;  %5415 = vmatprep.mubr.msk.bf16.mxu1 %vm6143_vm1, %v6141_v56 }
 0x31f   :  { %5425 = vmatprep.subr.bf16.mxu1 %v6141_v56 }
 0x321   :  { %5410 = vmatmul.mubr.msk.bf16.vlgmr.msra.gmra.mxu0 %vm456_vm2, %v437_v63 }
 0x322   :  { %5420 = vmatpush3.bf16.msra.mxu0 %v951_v24  ;;  %5421 = vmatprep.mubr.msk.bf16.mxu0 %vm6143_vm1, %v6141_v56 }
 0x323   :  { %5431 = vmatprep.subr.bf16.mxu0 %v6141_v56 }
 0x325   :  { %5416 = vmatmul.mubr.msk.bf16.vlgmr.msra.gmra.mxu1 %vm456_vm2, %v439_v5 }
 0x326   :  { %5426 = vmatpush3.bf16.msra.mxu1 %v997_v25  ;;  %5427 = vmatprep.mubr.msk.bf16.mxu1 %vm6143_vm1, %v6141_v56 }
 0x327   :  { %5437 = vmatprep.subr.bf16.mxu1 %v6141_v56 }
 0x366   :  { %v497_v37 = vpop.f32.mrf.mxu0 }
 0x367   :  { %v841_v38 = vsel %vm6380_vm4, %v497_v37, -1e+30 }
 0x368   :  { %v5375_v39 = vpop.f32.mrf.mxu0  ;;  %v850_v40 = vsel %vm849_vm5, %v841_v38, -inf }
 0x369   :  { %851 = vmax.xlane.f32.xlu0 %v850_v40 }
 0x36a   :  { %v500_v41 = vpop.f32.mrf.mxu0 }
 0x36c   :  { %v5376_v44 = vpop.f32.mrf.mxu0 }
 0x372   :  { %v545_v45 = vpop.f32.mrf.mxu0 }
 0x373   :  { %v842_v29 = vsel %vm6380_vm4, %v545_v45, -1e+30 }
 0x374   :  { %v5381_v46 = vpop.f32.mrf.mxu0  ;;  %v853_v47 = vsel %vm849_vm5, %v842_v29, -inf }
 0x375   :  { %854 = vmax.xlane.f32.xlu1 %v853_v47 }
 0x376   :  { %v548_v48 = vpop.f32.mrf.mxu0 }
 0x378   :  { %v5382_v49 = vpop.f32.mrf.mxu0 }
 0x3d1   :  { %v593_v50 = vpop.f32.mrf.mxu0 }
 0x3d2   :  { %v843_v51 = vsel %vm6380_vm4, %v593_v50, -1e+30 }
 0x3d3   :  { %v5387_v52 = vpop.f32.mrf.mxu0  ;;  %v856_v53 = vsel %vm849_vm5, %v843_v51, -inf }
 0x3d4   :  { %857 = vmax.xlane.f32.xlu0 %v856_v53 }
 0x3d5   :  { %v596_v54 = vpop.f32.mrf.mxu0  ;;  %v641_v55 = vpop.f32.mrf.mxu1 }
 0x3d6   :  { %v844_v57 = vsel %vm6380_vm4, %v641_v55, -1e+30 }
 0x3d7   :  { %v5388_v58 = vpop.f32.mrf.mxu0  ;;  %v5393_v59 = vpop.f32.mrf.mxu1  ;;  %v859_v60 = vsel %vm849_vm5, %v844_v57, -inf }
 0x3d8   :  { %860 = vmax.xlane.f32.xlu0 %v859_v60 }
 0x3d9   :  { %v644_v61 = vpop.f32.mrf.mxu1  ;;  %v689_v62 = vpop.f32.mrf.mxu0 }
 0x3da   :  { %v6398_v63 = vsel %vm6380_vm4, %v689_v62, -1e+30 }
 0x3db   :  { %v5394_v0 = vpop.f32.mrf.mxu1  ;;  %v5399_v1 = vpop.f32.mrf.mxu0  ;;  %v862_v2 = vsel %vm849_vm5, %v6398_v63, -inf }
 0x3dc   :  { %863 = vmax.xlane.f32.xlu0 %v862_v2 }
 0x3dd   :  { %v692_v3 = vpop.f32.mrf.mxu0  ;;  %v737_v4 = vpop.f32.mrf.mxu1 }
 0x3de   :  { %v846_v5 = vsel %vm6380_vm4, %v737_v4, -1e+30 }
 0x3df   :  { %v5400_v6 = vpop.f32.mrf.mxu0  ;;  %v5405_v7 = vpop.f32.mrf.mxu1  ;;  %v865_v8 = vsel %vm849_vm5, %v846_v5, -inf }
 0x3e0   :  { %866 = vmax.xlane.f32.xlu1 %v865_v8 }
 0x3e1   :  { %v740_v9 = vpop.f32.mrf.mxu1  ;;  %v785_v10 = vpop.f32.mrf.mxu0 }
 0x3e2   :  { %v6407_v11 = vsel %vm6380_vm4, %v785_v10, -1e+30 }
 0x3e3   :  { %v5406_v12 = vpop.f32.mrf.mxu1  ;;  %v5411_v13 = vpop.f32.mrf.mxu0  ;;  %v868_v14 = vsel %vm849_vm5, %v6407_v11, -inf }
 0x3e4   :  { %869 = vmax.xlane.f32.xlu0 %v868_v14 }
 0x3e5   :  { %v788_v15 = vpop.f32.mrf.mxu0  ;;  %v833_v16 = vpop.f32.mrf.mxu1 }
 0x3e6   :  { %v848_v17 = vsel %vm6380_vm4, %v833_v16, -1e+30 }
 0x3e7   :  { %v5412_v19 = vpop.f32.mrf.mxu0  ;;  %v5417_v21 = vpop.f32.mrf.mxu1  ;;  %v871_v22 = vsel %vm849_vm5, %v848_v17, -inf }
 0x3e8   :  { %872 = vmax.xlane.f32.xlu1 %v871_v22 }
 0x3e9   :  { %v836_v24 = vpop.f32.mrf.mxu1 }
 0x3eb   :  { %v5418_v25 = vpop.f32.mrf.mxu1 }
 0x3f2   :  { %v852_v33 = vpop.xlane.xlu0 %851 }
 0x3f3   :  { %v874_v37 = vsub.f32 %v841_v38, %v852_v33 }
 0x3f5   :  { %v882_v39 = vmul.f32 1.442695, %v874_v37 }
 0x3f7   :  { %5899 = vpow2.f32 %v882_v39 }
 0x3fe   :  { %v855_v40 = vpop.xlane.xlu1 %854 }
 0x3ff   :  { %v875_v41 = vsub.f32 %v842_v29, %v855_v40 }
 0x401   :  { %v884_v44 = vmul.f32 1.442695, %v875_v41 }
 0x403   :  { %5901 = vpow2.f32 %v884_v44 }
 0x404   :  { %v5900_v45 = vpop.eup %5899 }
 0x405   :  { %v898_v46 = vsel %vm849_vm5, %v5900_v45, 0.0 }
 0x406   :  { %899 = vadd.xlane.f32.xlu0 %v898_v46 }
 0x410   :  { %v5902_v47 = vpop.eup %5901 }
 0x411   :  { %v901_v48 = vsel %vm849_vm5, %v5902_v47, 0.0 }
 0x412   :  { %902 = vadd.xlane.f32.xlu1 %v901_v48 }
 0x423   :  { %444 = vrot.lane.b32.xlu1 %v6356_v23, %s6142_s12 }
 0x427   :  { %446 = vrot.lane.b32.xlu1 %v6349_v20, %s6146_s16 }
 0x42b   :  { %448 = vrot.lane.b32.xlu1 %v6356_v23, %s6146_s16 }
 0x45d   :  { %v858_v38 = vpop.xlane.xlu0 %857 }
 0x45e   :  { %v876_v29 = vsub.f32 %v843_v51, %v858_v38 }
 0x460   :  { %v886_v49 = vmul.f32 1.442695, %v876_v29 }
 0x461   :  { %v861_v50 = vpop.xlane.xlu0 %860 }
 0x462   :  { %5903 = vpow2.f32 %v886_v49  ;;  %v877_v52 = vsub.f32 %v844_v57, %v861_v50 }
 0x464   :  { %v888_v53 = vmul.f32 1.442695, %v877_v52 }
 0x466   :  { %5905 = vpow2.f32 %v888_v53 }
 0x469   :  { %v867_v54 = vpop.xlane.xlu1 %866 }
 0x46a   :  { %v879_v55 = vsub.f32 %v846_v5, %v867_v54  ;;  %v864_v5 = vpop.xlane.xlu0 %863 }
 0x46b   :  { %v878_v7 = vsub.f32 %v6398_v63, %v864_v5 }
 0x46c   :  { %v892_v58 = vmul.f32 1.442695, %v879_v55 }
 0x46d   :  { %v890_v9 = vmul.f32 1.442695, %v878_v7 }
 0x46e   :  { %5907 = vpow2.f32 %v892_v58  ;;  %v870_v6 = vpop.xlane.xlu0 %869 }
 0x46f   :  { %v6422_v59 = vpop.eup %5903  ;;  %v880_v10 = vsub.f32 %v6407_v11, %v870_v6 }
 0x470   :  { %v904_v60 = vsel %vm849_vm5, %v6422_v59, 0.0 }
 0x471   :  { %905 = vadd.xlane.f32.xlu0 %v904_v60  ;;  %v873_v61 = vpop.xlane.xlu1 %872  ;;  %v894_v12 = vmul.f32 1.442695, %v880_v10 }
 0x472   :  { %v881_v62 = vsub.f32 %v848_v17, %v873_v61  ;;  %v6484_v61 = vpack.c.bf16 %v6370_v26, %v6370_v26 }
 0x473   :  { %v6426_v0 = vpop.eup %5905 }
 0x474   :  { %v896_v51 = vmul.f32 1.442695, %v881_v62  ;;  %v907_v57 = vsel %vm849_vm5, %v6426_v0, 0.0 }
 0x475   :  { %908 = vadd.xlane.f32.xlu1 %v907_v57 }
 0x476   :  { %5909 = vpow2.f32 %v896_v51  ;;  %v1492_v51 = vsel %vm456_vm2, %v6484_v61, 0 }
 0x47b   :  { %v6430_v1 = vpop.eup %5907 }
 0x47c   :  { %v913_v2 = vsel %vm849_vm5, %v6430_v1, 0.0 }
 0x47d   :  { %914 = vadd.xlane.f32.xlu1 %v913_v2 }
 0x483   :  { %v6434_v3 = vpop.eup %5909 }
 0x484   :  { %v919_v4 = vsel %vm849_vm5, %v6434_v3, 0.0 }
 0x485   :  { %920 = vadd.xlane.f32.xlu1 %v919_v4 }
 0x487   :  { %442 = vrot.lane.b32.xlu0 %v6349_v20, %s6142_s12 }
 0x48f   :  { %v900_v8 = vpop.xlane.xlu0 %899 }
 0x490   :  { %5911 = vrcp.f32 %v900_v8 }
 0x491   :  { %5913 = vpow2.f32 %v890_v9 }
 0x492   :  { %5915 = vpow2.f32 %v894_v12 }
 0x496   :  { %452 = vrot.lane.b32.xlu1 %v6356_v23, %s6144_s5 }
 0x49b   :  { %v903_v13 = vpop.xlane.xlu1 %902 }
 0x49c   :  { %5917 = vrcp.f32 %v903_v13 }
 0x49d   :  { %v5912_v14 = vpop.eup %5911 }
 0x49e   :  { %v923_v15 = vmul.f32 %v5912_v14, %v5900_v45  ;;  %v6444_v17 = vpop.eup %5913 }
 0x49f   :  { %v910_v63 = vsel %vm849_vm5, %v6444_v17, 0.0  ;;  %v6451_v11 = vpop.eup %5915  ;;  %v445_v22 = vpop.permute.xlu1 %444 }
 0x4a0   :  { %v938_v16 = vpack.c.bf16 %v923_v15, %v923_v15  ;;  %v916_v19 = vsel %vm849_vm5, %v6451_v11, 0.0  ;;  %v1089_v25 = vsel %vm949_vm3, %v445_v22, 0 }
 0x4a2   :  { %5422 = vmatmul.mubr.msk.bf16.vlgmr.msra.gmra.mxu0 %vm849_vm5, %v938_v16 }
 0x4a3   :  { %5433 = vmatprep.mubr.msk.bf16.mxu0 %vm6143_vm1, %v6141_v56  ;;  %v447_v33 = vpop.permute.xlu1 %446 }
 0x4a6   :  { %911 = vadd.xlane.f32.xlu0 %v910_v63 }
 0x4a7   :  { %v449_v37 = vpop.permute.xlu1 %448 }
 0x4a8   :  { %v1181_v52 = vsel %vm949_vm3, %v449_v37, 0 }
 0x4a9   :  { %v5918_v23 = vpop.eup %5917 }
 0x4aa   :  { %917 = vadd.xlane.f32.xlu0 %v916_v19  ;;  %v925_v21 = vmul.f32 %v5918_v23, %v5902_v47 }
 0x4ac   :  { %v939_v24 = vpack.c.bf16 %v925_v21, %v925_v21 }
 0x4ae   :  { %5428 = vmatmul.mubr.msk.bf16.vlgmr.msra.gmra.mxu1 %vm849_vm5, %v939_v24 }
 0x4af   :  { %5438 = vmatpush3.bf16.msra.mxu1 %v1089_v25  ;;  %5439 = vmatprep.mubr.msk.bf16.mxu1 %vm6143_vm1, %v6141_v56 }
 0x4b0   :  { %5449 = vmatprep.subr.bf16.mxu1 %v6141_v56 }
 0x4c0   :  { %450 = vrot.lane.b32.xlu0 %v6349_v20, %s6144_s5  ;;  %v1135_v20 = vsel %vm949_vm3, %v447_v33, 0 }
 0x4fa   :  { %v906_v39 = vpop.xlane.xlu0 %905 }
 0x4fb   :  { %5919 = vrcp.f32 %v906_v39 }
 0x4fe   :  { %v443_v40 = vpop.permute.xlu0 %442  ;;  %v909_v41 = vpop.xlane.xlu1 %908 }
 0x4ff   :  { %v1043_v44 = vsel %vm949_vm3, %v443_v40, 0  ;;  %5921 = vrcp.f32 %v909_v41 }
 0x500   :  { %5432 = vmatpush3.bf16.msra.mxu0 %v1043_v44 }
 0x501   :  { %5443 = vmatprep.subr.bf16.mxu0 %v6141_v56 }
 0x506   :  { %v915_v45 = vpop.xlane.xlu1 %914 }
 0x507   :  { %5923 = vrcp.f32 %v915_v45 }
 0x508   :  { %v5920_v46 = vpop.eup %5919 }
 0x509   :  { %v927_v47 = vmul.f32 %v5920_v46, %v6422_v59 }
 0x50b   :  { %v940_v48 = vpack.c.bf16 %v927_v47, %v927_v47 }
 0x50c   :  { %v5922_v38 = vpop.eup %5921 }
 0x50d   :  { %5434 = vmatmul.mubr.msk.bf16.vlgmr.msra.gmra.mxu0 %vm849_vm5, %v940_v48  ;;  %v929_v29 = vmul.f32 %v5922_v38, %v6426_v0 }
 0x50e   :  { %5444 = vmatpush3.bf16.msra.mxu0 %v1135_v20  ;;  %v921_v49 = vpop.xlane.xlu1 %920  ;;  %5445 = vmatprep.mubr.msk.bf16.mxu0 %vm6143_vm1, %v6141_v56 }
 0x50f   :  { %5925 = vrcp.f32 %v921_v49  ;;  %v941_v50 = vpack.c.bf16 %v929_v29, %v929_v29  ;;  %5455 = vmatprep.subr.bf16.mxu0 %v6141_v56 }
 0x511   :  { %5440 = vmatmul.mubr.msk.bf16.vlgmr.msra.gmra.mxu1 %vm849_vm5, %v941_v50 }
 0x512   :  { %5450 = vmatpush3.bf16.msra.mxu1 %v1181_v52  ;;  %5451 = vmatprep.mubr.msk.bf16.mxu1 %vm6143_vm1, %v6141_v56  ;;  %v453_v55 = vpop.permute.xlu1 %452 }
 0x513   :  { %5461 = vmatprep.subr.bf16.mxu1 %v6141_v56  ;;  %v1273_v59 = vsel %vm949_vm3, %v453_v55, 0 }
 0x514   :  { %v5924_v53 = vpop.eup %5923 }
 0x515   :  { %v933_v54 = vmul.f32 %v5924_v53, %v6430_v1 }
 0x517   :  { %v943_v58 = vpack.c.bf16 %v933_v54, %v933_v54 }
 0x519   :  { %5452 = vmatmul.mubr.msk.bf16.vlgmr.msra.gmra.mxu1 %vm849_vm5, %v943_v58 }
 0x51a   :  { %5462 = vmatpush3.bf16.msra.mxu1 %v1273_v59  ;;  %5463 = vmatprep.mubr.msk.bf16.mxu1 %vm6143_vm1, %v6141_v56 }
 0x51b   :  { %5479 = vmatprep.subr.bf16.mxu1 %v6141_v56 }
 0x51c   :  { %v5926_v60 = vpop.eup %5925 }
 0x51d   :  { %v937_v62 = vmul.f32 %v5926_v60, %v6434_v3 }
 0x51f   :  { %v945_v0 = vpack.c.bf16 %v937_v62, %v937_v62 }
 0x521   :  { %5464 = vmatmul.mubr.msk.bf16.vlgmr.msra.gmra.mxu1 %vm849_vm5, %v945_v0 }
 0x522   :  { %5480 = vmatpush3.bf16.xpose.msra.mxu1 %v1492_v51  ;;  %5481 = vmatprep.mubr.msk.bf16.mxu1 %vm6143_vm1, %v6141_v56  ;;  %v6516_v51 = vpack.c.bf16 %v6374_v28, %v6374_v28 }
 0x523   :  { %5485 = vmatprep.subr.bf16.mxu1 %v6141_v56 }
 0x52f   :  { %v912_v57 = vpop.xlane.xlu0 %911 }
 0x530   :  { %5927 = vrcp.f32 %v912_v57 }
 0x533   :  { %v918_v1 = vpop.xlane.xlu0 %917 }
 0x534   :  { %5929 = vrcp.f32 %v918_v1 }
 0x537   :  { %v451_v3 = vpop.permute.xlu0 %450 }
 0x538   :  { %v1227_v6 = vsel %vm949_vm3, %v451_v3, 0 }
 0x53d   :  { %v5928_v26 = vpop.eup %5927 }
 0x53e   :  { %v931_v2 = vmul.f32 %v5928_v26, %v6444_v17 }
 0x540   :  { %v942_v4 = vpack.c.bf16 %v931_v2, %v931_v2 }
 0x541   :  { %v5930_v5 = vpop.eup %5929 }
 0x542   :  { %5446 = vmatmul.mubr.msk.bf16.vlgmr.msra.gmra.mxu0 %vm849_vm5, %v942_v4  ;;  %v935_v7 = vmul.f32 %v5930_v5, %v6451_v11 }
 0x543   :  { %5456 = vmatpush3.bf16.msra.mxu0 %v1227_v6  ;;  %5457 = vmatprep.mubr.msk.bf16.mxu0 %vm6143_vm1, %v6141_v56 }
 0x544   :  { %5467 = vmatprep.subr.bf16.mxu0 %v6141_v56  ;;  %v944_v8 = vpack.c.bf16 %v935_v7, %v935_v7 }
 0x54a   :  { %5458 = vmatmul.mubr.msk.bf16.vlgmr.msra.gmra.mxu0 %vm849_vm5, %v944_v8 }
 0x54b   :  { %5475 = vmatprep.mubr.msk.bf16.mxu0 %vm6143_vm1, %v6141_v56 }
 0x562   :  { %v987_v9 = vpop.f32.mrf.mxu0 }
 0x564   :  { %v5423_v10 = vpop.f32.mrf.mxu0 }
 0x566   :  { %v990_v12 = vpop.f32.mrf.mxu0 }
 0x568   :  { %v5424_v13 = vpop.f32.mrf.mxu0 }
 0x56e   :  { %v1033_v14 = vpop.f32.mrf.mxu1 }
 0x570   :  { %v5429_v15 = vpop.f32.mrf.mxu1 }
 0x572   :  { %v1036_v16 = vpop.f32.mrf.mxu1 }
 0x573   :  { %v5820_v16 = vld [vmem:[%s7434_s4 + $0x10] sm:$0xff]  }
 0x574   :  { %v5430_v17 = vpop.f32.mrf.mxu1 }
 0x575   :  { %v5821_v17 = vld [vmem:[%s7434_s4 + $0x8] sm:$0xff]  }
 0x5cd   :  { %v1079_v63 = vpop.f32.mrf.mxu0 }
 0x5ce   :  { %1317 = vrot.lane.b32.xlu0 %v1079_v63, %s6147_s17  ;;  %v5822_v63 = vld [vmem:[%s7434_s4] sm:$0xff]  }
 0x5cf   :  { %v5435_v11 = vpop.f32.mrf.mxu0 }
 0x5d1   :  { %v1082_v23 = vpop.f32.mrf.mxu0  ;;  %v1125_v19 = vpop.f32.mrf.mxu1 }
 0x5d2   :  { %1319 = vrot.lane.b32.xlu1 %v1125_v19, %s6147_s17 }
 0x5d3   :  { %v5436_v21 = vpop.f32.mrf.mxu0  ;;  %v5441_v22 = vpop.f32.mrf.mxu1 }
 0x5d5   :  { %v1128_v24 = vpop.f32.mrf.mxu1 }
 0x5d7   :  { %v5442_v25 = vpop.f32.mrf.mxu1 }
 0x5d8   :  { %v6550_v25 = vsub.s32 2, %v6250_v30 }
 0x5d9   :  { %v1217_v33 = vpop.f32.mrf.mxu1 }
 0x5da   :  { %1327 = vrot.lane.b32.xlu1 %v1217_v33, %s6148_s18 }
 0x5db   :  { %v5453_v37 = vpop.f32.mrf.mxu1 }
 0x5dd   :  { %v1220_v39 = vpop.f32.mrf.mxu1 }
 0x5de   :  { %v1378_v39 = vrot.slane %v6255_v32, %v6550_v25 }
 0x5df   :  { %v5454_v40 = vpop.f32.mrf.mxu1 }
 0x5e0   :  { %v1383_v40 = vsub.s32 3, %v6250_v30 }
 0x5e1   :  { %v1309_v41 = vpop.f32.mrf.mxu1 }
 0x5e2   :  { %1335 = vrot.lane.b32.xlu1 %v1309_v41, %s6149_s19 }
 0x5e3   :  { %v5465_v44 = vpop.f32.mrf.mxu1 }
 0x5e5   :  { %v1312_v45 = vpop.f32.mrf.mxu1 }
 0x5e7   :  { %v5466_v46 = vpop.f32.mrf.mxu1 }
 0x5e8   :  { %v1384_v46 = vrot.slane %v6255_v32, %v1383_v40 }
 0x602   :  { %v1171_v47 = vpop.f32.mrf.mxu0 }
 0x603   :  { %1325 = vrot.lane.b32.xlu0 %v1171_v47, %s6148_s18 }
 0x604   :  { %v5447_v48 = vpop.f32.mrf.mxu0 }
 0x606   :  { %v1174_v38 = vpop.f32.mrf.mxu0 }
 0x608   :  { %v5448_v20 = vpop.f32.mrf.mxu0 }
 0x60a   :  { %v1263_v29 = vpop.f32.mrf.mxu0 }
 0x60b   :  { %1333 = vrot.lane.b32.xlu0 %v1263_v29, %s6149_s19 }
 0x60c   :  { %v5459_v49 = vpop.f32.mrf.mxu0 }
 0x60e   :  { %v1266_v50 = vpop.f32.mrf.mxu0 }
 0x610   :  { %v5460_v52 = vpop.f32.mrf.mxu0 }
 0x640   :  { %v1318_v57 = vpop.permute.xlu0 %1317 }
 0x641   :  { %v1339_v26 = vsel %vm456_vm2, %v987_v9, %v1318_v57 }
 0x644   :  { %v1320_v53 = vpop.permute.xlu1 %1319 }
 0x645   :  { %v1340_v55 = vsel %vm456_vm2, %v1033_v14, %v1320_v53  ;;  %v1538_v53 = vsel %vm456_vm2, %v6516_v51, 0 }
 0x64c   :  { %v1328_v54 = vpop.permute.xlu1 %1327 }
 0x64d   :  { %v1343_v58 = vsel %vm1341_vm6, %v1340_v55, %v1328_v54 }
 0x654   :  { %v1336_v59 = vpop.permute.xlu1 %1335 }
 0x655   :  { %v1346_v60 = vsel %vm1344_vm7, %v1343_v58, %v1336_v59 }
 0x656   :  { %v1348_v62 = vadd.f32 %v1346_v60, %v6266_v43 }
 0x658   :  { %v1352_v0 = vsel %vm249_vm0, %v1348_v62, 0.0 }
 0x659   :  { %1353 = vadd.xlane.f32.xlu1 %v1352_v0 }
 0x66a   :  { %1478 = vrot.lane.b32.xlu1 %v6516_v51, %s6142_s12 }
 0x66e   :  { %1482 = vrot.lane.b32.xlu1 %v6516_v51, %s6146_s16 }
 0x675   :  { %v1326_v1 = vpop.permute.xlu0 %1325 }
 0x676   :  { %v1342_v2 = vsel %vm1341_vm6, %v1339_v26, %v1326_v1 }
 0x67d   :  { %v1334_v43 = vpop.permute.xlu0 %1333 }
 0x67e   :  { %v1345_v3 = vsel %vm1344_vm7, %v1342_v2, %v1334_v43 }
 0x67f   :  { %v1347_v4 = vadd.f32 %v1345_v3, %v6264_v42  ;;  %v5819_v42 = vld [vmem:[%s7434_s4 + $0x18] sm:$0xff]  }
 0x680   :  { %5468 = vmatpush3.bf16.msra.mxu0 %v5819_v42 }
 0x681   :  { %v1349_v28 = vsel %vm249_vm0, %v1347_v4, 0.0  ;;  %5469 = vmatprep.subr.bf16.mxu0 %v6141_v56 }
 0x682   :  { %1350 = vadd.xlane.f32.xlu0 %v1349_v28 }
 0x684   :  { %5470 = vmatpush3.bf16.msra.mxu0 %v5820_v16 }
 0x685   :  { %5471 = vmatprep.subr.bf16.mxu0 %v6141_v56 }
 0x688   :  { %5472 = vmatpush3.bf16.msra.mxu0 %v5821_v17 }
 0x689   :  { %5473 = vmatprep.subr.bf16.mxu0 %v6141_v56 }
 0x68c   :  { %5474 = vmatpush3.bf16.msra.mxu0 %v5822_v63 }
 0x68d   :  { %5491 = vmatprep.subr.bf16.mxu0 %v6141_v56 }
 0x6e2   :  { %v1354_v5 = vpop.xlane.xlu1 %1353 }
 0x6e3   :  { %v1356_v6 = vmul.f32 0.015625, %v1354_v5 }
 0x6e5   :  { %v1358_v10 = vsub.f32 %v1348_v62, %v1356_v6 }
 0x6e6   :  { %v6583_v59 = vpop.permute.xlu1 %1478 }
 0x6e7   :  { %v1360_v9 = vmul.f32 %v1358_v10, %v1358_v10  ;;  %v1630_v60 = vsel %vm456_vm2, %v6583_v59, 0 }
 0x6e9   :  { %v1364_v15 = vsel %vm249_vm0, %v1360_v9, 0.0 }
 0x6ea   :  { %v6596_v62 = vpop.permute.xlu1 %1482 }
 0x6eb   :  { %v1722_v43 = vsel %vm456_vm2, %v6596_v62, 0 }
 0x70b   :  { %v1351_v7 = vpop.xlane.xlu0 %1350 }
 0x70c   :  { %v1355_v8 = vmul.f32 0.015625, %v1351_v7 }
 0x70e   :  { %v1357_v12 = vsub.f32 %v1347_v4, %v1355_v8 }
 0x710   :  { %v1359_v13 = vmul.f32 %v1357_v12, %v1357_v12 }
 0x712   :  { %v1361_v14 = vsel %vm249_vm0, %v1359_v13, 0.0 }
 0x713   :  { %1362 = vadd.xlane.f32.xlu0 %v1361_v14 }
 0x717   :  { %1365 = vadd.xlane.f32.xlu0 %v1364_v15 }
 0x72d   :  { %1476 = vrot.lane.b32.xlu0 %v6484_v61, %s6142_s12 }
 0x731   :  { %1480 = vrot.lane.b32.xlu0 %v6484_v61, %s6146_s16 }
 0x79c   :  { %v1363_v11 = vpop.xlane.xlu0 %1362 }
 0x79d   :  { %v1367_v23 = vmul.f32 0.015625, %v1363_v11 }
 0x79f   :  { %v1369_v19 = vadd.f32 1e-05, %v1367_v23 }
 0x7a0   :  { %v1366_v21 = vpop.xlane.xlu0 %1365 }
 0x7a1   :  { %5931 = vrsqrt.f32 %v1369_v19  ;;  %v1368_v22 = vmul.f32 0.015625, %v1366_v21 }
 0x7a3   :  { %v1370_v24 = vadd.f32 1e-05, %v1368_v22 }
 0x7a4   :  { %v6562_v20 = vpop.permute.xlu0 %1476 }
 0x7a5   :  { %5933 = vrsqrt.f32 %v1370_v24  ;;  %v1584_v49 = vsel %vm456_vm2, %v6562_v20, 0 }
 0x7a8   :  { %v6598_v0 = vpop.permute.xlu0 %1480 }
 0x7a9   :  { %v1676_v26 = vsel %vm456_vm2, %v6598_v0, 0 }
 0x7ae   :  { %v5932_v33 = vpop.eup %5931 }
 0x7af   :  { %v1373_v37 = vmul.f32 %v5932_v33, %v1357_v12 }
 0x7b1   :  { %v1379_v45 = vmul.f32 %v1378_v39, %v1373_v37 }
 0x7b2   :  { %v5934_v41 = vpop.eup %5933 }
 0x7b3   :  { %v1374_v44 = vmul.f32 %v5934_v41, %v1358_v10  ;;  %v6558_v48 = vadd.f32 %v1384_v46, %v1379_v45 }
 0x7b5   :  { %v1380_v47 = vmul.f32 %v1378_v39, %v1374_v44 }
 0x7b7   :  { %v6560_v38 = vadd.f32 %v1384_v46, %v1380_v47 }
 0x7b9   :  { %v1387_v29 = vpack.c.bf16 %v6560_v38, %v6558_v48 }
 0x7bb   :  { %5476 = vmatmul.mubr.msk.bf16.vlgmr.msra.gmra.mxu0 %vm249_vm0, %v1387_v29 }
 0x7bc   :  { %5492 = vmatpush3.bf16.xpose.msra.mxu0 %v1584_v49  ;;  %5493 = vmatprep.mubr.msk.bf16.mxu0 %vm6143_vm1, %v6141_v56 }
 0x7bd   :  { %5503 = vmatprep.subr.bf16.mxu0 %v6141_v56 }
 0x87b   :  { %v1449_v32 = vpop.f32.mrf.mxu0 }
 0x87c   :  { %v1456_v50 = vpack.c.bf16 %v1449_v32, %v1449_v32 }
 0x87d   :  { %v5477_v52 = vpop.f32.mrf.mxu0 }
 0x87e   :  { %1466 = vrot.lane.b32.xlu0 %v1456_v50, %s6146_s16  ;;  %1462 = vrot.lane.b32.xlu1 %v1456_v50, %s6142_s12 }
 0x87f   :  { %5482 = vmatmul.mubr.msk.bf16.vlgmr.msra.gmra.mxu1 %vm456_vm2, %v1456_v50  ;;  %v1452_v54 = vpop.f32.mrf.mxu0 }
 0x880   :  { %5486 = vmatpush3.bf16.xpose.msra.mxu1 %v1538_v53  ;;  %v1457_v55 = vpack.c.bf16 %v1452_v54, %v1452_v54  ;;  %5487 = vmatprep.mubr.msk.bf16.mxu1 %vm6143_vm1, %v6141_v56 }
 0x881   :  { %v5478_v58 = vpop.f32.mrf.mxu0  ;;  %5497 = vmatprep.subr.bf16.mxu1 %v6141_v56 }
 0x882   :  { %1484 = vrot.lane.b32.xlu0 %v6484_v61, %s6144_s5  ;;  %1464 = vrot.lane.b32.xlu1 %v1457_v55, %s6142_s12 }
 0x886   :  { %1470 = vrot.lane.b32.xlu0 %v1456_v50, %s6144_s5  ;;  %1468 = vrot.lane.b32.xlu1 %v1457_v55, %s6146_s16 }
 0x887   :  { %5488 = vmatmul.mubr.msk.bf16.vlgmr.msra.gmra.mxu1 %vm456_vm2, %v1457_v55 }
 0x888   :  { %5498 = vmatpush3.bf16.xpose.msra.mxu1 %v1630_v60  ;;  %5499 = vmatprep.mubr.msk.bf16.mxu1 %vm6143_vm1, %v6141_v56 }
 0x889   :  { %5509 = vmatprep.subr.bf16.mxu1 %v6141_v56 }
 0x88a   :  { %1486 = vrot.lane.b32.xlu1 %v6516_v51, %s6144_s5 }
 0x88e   :  { %1472 = vrot.lane.b32.xlu1 %v1457_v55, %s6144_s5 }
 0x8f0   :  { %v1467_v57 = vpop.permute.xlu0 %1466  ;;  %v1463_v1 = vpop.permute.xlu1 %1462 }
 0x8f1   :  { %5494 = vmatmul.mubr.msk.bf16.vlgmr.msra.gmra.mxu0 %vm456_vm2, %v1463_v1 }
 0x8f2   :  { %5504 = vmatpush3.bf16.xpose.msra.mxu0 %v1676_v26  ;;  %5505 = vmatprep.mubr.msk.bf16.mxu0 %vm6143_vm1, %v6141_v56 }
 0x8f3   :  { %5515 = vmatprep.subr.bf16.mxu0 %v6141_v56 }
 0x8f4   :  { %v1465_v2 = vpop.permute.xlu1 %1464  ;;  %v6609_v3 = vpop.permute.xlu0 %1484 }
 0x8f5   :  { %5500 = vmatmul.mubr.msk.bf16.vlgmr.msra.gmra.mxu1 %vm456_vm2, %v1465_v2  ;;  %v1768_v28 = vsel %vm456_vm2, %v6609_v3, 0 }
 0x8f6   :  { %5510 = vmatpush3.bf16.xpose.msra.mxu1 %v1722_v43  ;;  %5511 = vmatprep.mubr.msk.bf16.mxu1 %vm6143_vm1, %v6141_v56 }
 0x8f7   :  { %5521 = vmatprep.subr.bf16.mxu1 %v6141_v56 }
 0x8f8   :  { %v1469_v4 = vpop.permute.xlu1 %1468  ;;  %v1471_v7 = vpop.permute.xlu0 %1470 }
 0x8f9   :  { %5506 = vmatmul.mubr.msk.bf16.vlgmr.msra.gmra.mxu0 %vm456_vm2, %v1467_v57 }
 0x8fa   :  { %5516 = vmatpush3.bf16.xpose.msra.mxu0 %v1768_v28  ;;  %5517 = vmatprep.mubr.msk.bf16.mxu0 %vm6143_vm1, %v6141_v56 }
 0x8fb   :  { %5527 = vmatprep.subr.bf16.mxu0 %v6141_v56 }
 0x8fc   :  { %v6620_v5 = vpop.permute.xlu1 %1486 }
 0x8fd   :  { %5512 = vmatmul.mubr.msk.bf16.vlgmr.msra.gmra.mxu1 %vm456_vm2, %v1469_v4  ;;  %v1814_v6 = vsel %vm456_vm2, %v6620_v5, 0 }
 0x8fe   :  { %5522 = vmatpush3.bf16.xpose.msra.mxu1 %v1814_v6  ;;  %5523 = vmatprep.mubr.msk.bf16.mxu1 %vm6143_vm1, %v6141_v56 }
 0x8ff   :  { %5533 = vmatprep.subr.bf16.mxu1 %v6141_v56 }
 0x900   :  { %v1473_v8 = vpop.permute.xlu1 %1472 }
 0x901   :  { %5518 = vmatmul.mubr.msk.bf16.vlgmr.msra.gmra.mxu0 %vm456_vm2, %v1471_v7 }
 0x902   :  { %5529 = vmatprep.mubr.msk.bf16.mxu0 %vm6143_vm1, %v6141_v56 }
 0x905   :  { %5524 = vmatmul.mubr.msk.bf16.vlgmr.msra.gmra.mxu1 %vm456_vm2, %v1473_v8 }
 0x906   :  { %5535 = vmatprep.mubr.msk.bf16.mxu1 %vm6143_vm1, %v6141_v56 }
 0x93f   :  { %v1528_v10 = vpop.f32.mrf.mxu1 }
 0x940   :  { %v1856_v12 = vsel %vm849_vm5, %v1528_v10, -inf }
 0x941   :  { %1857 = vmax.xlane.f32.xlu0 %v1856_v12  ;;  %v5483_v13 = vpop.f32.mrf.mxu1 }
 0x943   :  { %v1531_v14 = vpop.f32.mrf.mxu1 }
 0x945   :  { %v5484_v9 = vpop.f32.mrf.mxu1 }
 0x947   :  { %v1574_v15 = vpop.f32.mrf.mxu1 }
 0x948   :  { %v1859_v42 = vsel %vm849_vm5, %v1574_v15, -inf }
 0x949   :  { %1860 = vmax.xlane.f32.xlu1 %v1859_v42  ;;  %v5489_v16 = vpop.f32.mrf.mxu1 }
 0x94b   :  { %v1577_v17 = vpop.f32.mrf.mxu1 }
 0x94d   :  { %v5490_v63 = vpop.f32.mrf.mxu1 }
 0x9b1   :  { %v1620_v11 = vpop.f32.mrf.mxu0 }
 0x9b2   :  { %v1862_v23 = vsel %vm849_vm5, %v1620_v11, -inf }
 0x9b3   :  { %v5495_v19 = vpop.f32.mrf.mxu0  ;;  %1863 = vmax.xlane.f32.xlu0 %v1862_v23 }
 0x9b5   :  { %v1623_v21 = vpop.f32.mrf.mxu0  ;;  %v1666_v22 = vpop.f32.mrf.mxu1 }
 0x9b6   :  { %v1865_v24 = vsel %vm849_vm5, %v1666_v22, -inf }
 0x9b7   :  { %v5496_v33 = vpop.f32.mrf.mxu0  ;;  %1866 = vmax.xlane.f32.xlu0 %v1865_v24  ;;  %v5501_v37 = vpop.f32.mrf.mxu1 }
 0x9b9   :  { %v1669_v39 = vpop.f32.mrf.mxu1  ;;  %v6638_v41 = vpop.f32.mrf.mxu0 }
 0x9ba   :  { %v1868_v44 = vsel %vm849_vm5, %v6638_v41, -inf }
 0x9bb   :  { %v5507_v45 = vpop.f32.mrf.mxu0  ;;  %1869 = vmax.xlane.f32.xlu0 %v1868_v44  ;;  %v5502_v46 = vpop.f32.mrf.mxu1 }
 0x9bd   :  { %v1715_v47 = vpop.f32.mrf.mxu0  ;;  %v1758_v29 = vpop.f32.mrf.mxu1 }
 0x9be   :  { %v1871_v49 = vsel %vm849_vm5, %v1758_v29, -inf }
 0x9bf   :  { %v5508_v32 = vpop.f32.mrf.mxu0  ;;  %1872 = vmax.xlane.f32.xlu1 %v1871_v49  ;;  %v5513_v50 = vpop.f32.mrf.mxu1 }
 0x9c1   :  { %v1761_v52 = vpop.f32.mrf.mxu1  ;;  %v6643_v53 = vpop.f32.mrf.mxu0 }
 0x9c2   :  { %v1874_v54 = vsel %vm849_vm5, %v6643_v53, -inf }
 0x9c3   :  { %v5519_v55 = vpop.f32.mrf.mxu0  ;;  %1875 = vmax.xlane.f32.xlu0 %v1874_v54  ;;  %v5514_v58 = vpop.f32.mrf.mxu1 }
 0x9c5   :  { %v1807_v60 = vpop.f32.mrf.mxu0  ;;  %v6647_v57 = vpop.f32.mrf.mxu1 }
 0x9c6   :  { %v1877_v12 = vsel %vm849_vm5, %v6647_v57, -inf }
 0x9c7   :  { %v5520_v1 = vpop.f32.mrf.mxu0  ;;  %v5525_v26 = vpop.f32.mrf.mxu1 }
 0x9c9   :  { %v1853_v2 = vpop.f32.mrf.mxu1 }
 0x9ca   :  { %v1858_v4 = vpop.xlane.xlu0 %1857 }
 0x9cb   :  { %v5526_v43 = vpop.f32.mrf.mxu1  ;;  %v1880_v28 = vsub.f32 %v1528_v10, %v1858_v4 }
 0x9cd   :  { %v1888_v6 = vmul.f32 1.442695, %v1880_v28 }
 0x9cf   :  { %5935 = vpow2.f32 %v1888_v6 }
 0x9d0   :  { %2000 = vrot.lane.b32.xlu1 %v6516_v51, %s6145_s13 }
 0x9d2   :  { %v1861_v51 = vpop.xlane.xlu1 %1860 }
 0x9d4   :  { %2048 = vrot.lane.b32.xlu1 %v6562_v20, %s6145_s13  ;;  %v1881_v20 = vsub.f32 %v1574_v15, %v1861_v51 }
 0x9d9   :  { %1952 = vrot.lane.b32.xlu0 %v6484_v61, %s6145_s13  ;;  %v1890_v61 = vmul.f32 1.442695, %v1881_v20 }
 0x9db   :  { %5937 = vpow2.f32 %v1890_v61 }
 0x9dc   :  { %v6655_v7 = vpop.eup %5935 }
 0x9dd   :  { %v1904_v8 = vsel %vm849_vm5, %v6655_v7, 0.0 }
 0x9e8   :  { %v6663_v10 = vpop.eup %5937 }
 0x9e9   :  { %v1907_v13 = vsel %vm849_vm5, %v6663_v10, 0.0 }
 0x9f8   :  { %1905 = vadd.xlane.f32.xlu0 %v1904_v8  ;;  %1878 = vmax.xlane.f32.xlu1 %v1877_v12 }
 0xa09   :  { %2096 = vrot.lane.b32.xlu1 %v6583_v59, %s6145_s13 }
 0xa2d   :  { %1908 = vadd.xlane.f32.xlu1 %v1907_v13 }
 0xa3c   :  { %v1864_v14 = vpop.xlane.xlu0 %1863 }
 0xa3d   :  { %v1882_v9 = vsub.f32 %v1620_v11, %v1864_v14 }
 0xa3e   :  { %2192 = vrot.lane.b32.xlu1 %v6596_v62, %s6145_s13 }
 0xa3f   :  { %v1892_v42 = vmul.f32 1.442695, %v1882_v9 }
 0xa40   :  { %v1867_v16 = vpop.xlane.xlu0 %1866 }
 0xa41   :  { %5939 = vpow2.f32 %v1892_v42  ;;  %v1883_v63 = vsub.f32 %v1666_v22, %v1867_v16 }
 0xa43   :  { %v1894_v19 = vmul.f32 1.442695, %v1883_v63 }
 0xa44   :  { %v1870_v17 = vpop.xlane.xlu0 %1869 }
 0xa45   :  { %5941 = vpow2.f32 %v1894_v19  ;;  %v1884_v47 = vsub.f32 %v6638_v41, %v1870_v17 }
 0xa48   :  { %v1873_v59 = vpop.xlane.xlu1 %1872 }
 0xa49   :  { %v1885_v21 = vsub.f32 %v1758_v29, %v1873_v59  ;;  %v1896_v29 = vmul.f32 1.442695, %v1884_v47 }
 0xa4b   :  { %v1898_v37 = vmul.f32 1.442695, %v1885_v21 }
 0xa4c   :  { %v1876_v15 = vpop.xlane.xlu0 %1875  ;;  %v2001_v23 = vpop.permute.xlu1 %2000 }
 0xa4d   :  { %v2006_v24 = vsel %vm949_vm3, %v2001_v23, 0  ;;  %5943 = vpow2.f32 %v1898_v37  ;;  %v1886_v49 = vsub.f32 %v6643_v53, %v1876_v15 }
 0xa4e   :  { %v6670_v33 = vpop.eup %5939  ;;  %5534 = vmatpush3.bf16.msra.mxu1 %v2006_v24  ;;  %5945 = vpow2.f32 %v1896_v29 }
 0xa4f   :  { %v1910_v11 = vsel %vm849_vm5, %v6670_v33, 0.0  ;;  %5545 = vmatprep.subr.bf16.mxu1 %v6141_v56  ;;  %v1900_v32 = vmul.f32 1.442695, %v1886_v49 }
 0xa50   :  { %1911 = vadd.xlane.f32.xlu0 %v1910_v11  ;;  %v1953_v62 = vpop.permute.xlu0 %1952  ;;  %v2049_v50 = vpop.permute.xlu1 %2048 }
 0xa51   :  { %v1958_v22 = vsel %vm949_vm3, %v1953_v62, 0  ;;  %5947 = vpow2.f32 %v1900_v32 }
 0xa52   :  { %5528 = vmatpush3.bf16.msra.mxu0 %v1958_v22  ;;  %v6677_v39 = vpop.eup %5941 }
 0xa53   :  { %5539 = vmatprep.subr.bf16.mxu0 %v6141_v56  ;;  %v1913_v44 = vsel %vm849_vm5, %v6677_v39, 0.0 }
 0xa5a   :  { %v6681_v45 = vpop.eup %5943 }
 0xa5b   :  { %v1919_v46 = vsel %vm849_vm5, %v6681_v45, 0.0  ;;  %v6689_v52 = vpop.eup %5945 }
 0xa5e   :  { %v6694_v1 = vpop.eup %5947 }
 0xa5f   :  { %v1922_v41 = vsel %vm849_vm5, %v6694_v1, 0.0 }
 0xa62   :  { %1914 = vadd.xlane.f32.xlu1 %v1913_v44 }
 0xa66   :  { %2144 = vrot.lane.b32.xlu0 %v6598_v0, %s6145_s13  ;;  %1920 = vadd.xlane.f32.xlu1 %v1919_v46  ;;  %v1916_v0 = vsel %vm849_vm5, %v6689_v52, 0.0 }
 0xa81   :  { %v1906_v54 = vpop.xlane.xlu0 %1905  ;;  %v1879_v55 = vpop.xlane.xlu1 %1878 }
 0xa82   :  { %5949 = vrcp.f32 %v1906_v54  ;;  %v1887_v58 = vsub.f32 %v6647_v57, %v1879_v55  ;;  %v2054_v57 = vsel %vm949_vm3, %v2049_v50, 0 }
 0xa84   :  { %v1902_v60 = vmul.f32 1.442695, %v1887_v58 }
 0xa85   :  { %1917 = vadd.xlane.f32.xlu0 %v1916_v0  ;;  %v2097_v28 = vpop.permute.xlu1 %2096 }
 0xa86   :  { %5951 = vpow2.f32 %v1902_v60  ;;  %v2102_v51 = vsel %vm949_vm3, %v2097_v28, 0 }
 0xa89   :  { %1923 = vadd.xlane.f32.xlu0 %v1922_v41 }
 0xa8f   :  { %v5950_v53 = vpop.eup %5949 }
 0xa90   :  { %v1929_v26 = vmul.f32 %v5950_v53, %v6655_v7 }
 0xa92   :  { %v1944_v2 = vpack.c.bf16 %v1929_v26, %v1929_v26 }
 0xa93   :  { %v6699_v43 = vpop.eup %5951 }
 0xa94   :  { %5530 = vmatmul.mubr.msk.bf16.vlgmr.msra.gmra.mxu0 %vm849_vm5, %v1944_v2  ;;  %v1925_v4 = vsel %vm849_vm5, %v6699_v43, 0.0 }
 0xa95   :  { %5540 = vmatpush3.bf16.msra.mxu0 %v2054_v57  ;;  %1926 = vadd.xlane.f32.xlu1 %v1925_v4 }
 0xa96   :  { %5541 = vmatprep.mubr.msk.bf16.mxu0 %vm6143_vm1, %v6141_v56  ;;  %5551 = vmatprep.subr.bf16.mxu0 %v6141_v56 }
 0xa9f   :  { %2240 = vrot.lane.b32.xlu0 %v6609_v3, %s6145_s13 }
 0xaa6   :  { %2288 = vrot.lane.b32.xlu1 %v6620_v5, %s6145_s13 }
 0xab6   :  { %v1909_v6 = vpop.xlane.xlu1 %1908 }
 0xab7   :  { %5953 = vrcp.f32 %v1909_v6 }
 0xaba   :  { %v2193_v20 = vpop.permute.xlu1 %2192 }
 0xabb   :  { %v2198_v15 = vsel %vm949_vm3, %v2193_v20, 0 }
 0xac4   :  { %v5954_v7 = vpop.eup %5953 }
 0xac5   :  { %v1931_v8 = vmul.f32 %v5954_v7, %v6663_v10 }
 0xac7   :  { %v1945_v12 = vpack.c.bf16 %v1931_v8, %v1931_v8 }
 0xac9   :  { %5536 = vmatmul.mubr.msk.bf16.vlgmr.msra.gmra.mxu1 %vm849_vm5, %v1945_v12 }
 0xaca   :  { %5546 = vmatpush3.bf16.msra.mxu1 %v2102_v51  ;;  %5547 = vmatprep.mubr.msk.bf16.mxu1 %vm6143_vm1, %v6141_v56 }
 0xacb   :  { %5557 = vmatprep.subr.bf16.mxu1 %v6141_v56 }
 0xad9   :  { %v1912_v3 = vpop.xlane.xlu0 %1911 }
 0xada   :  { %5955 = vrcp.f32 %v1912_v3 }
 0xadd   :  { %v2145_v13 = vpop.permute.xlu0 %2144 }
 0xade   :  { %v2150_v9 = vsel %vm949_vm3, %v2145_v13, 0 }
 0xae7   :  { %v5956_v5 = vpop.eup %5955 }
 0xae8   :  { %v1933_v61 = vmul.f32 %v5956_v5, %v6670_v33 }
 0xaea   :  { %v1946_v14 = vpack.c.bf16 %v1933_v61, %v1933_v61 }
 0xaeb   :  { %v1915_v10 = vpop.xlane.xlu1 %1914 }
 0xaec   :  { %5957 = vrcp.f32 %v1915_v10  ;;  %5542 = vmatmul.mubr.msk.bf16.vlgmr.msra.gmra.mxu0 %vm849_vm5, %v1946_v14 }
 0xaed   :  { %5552 = vmatpush3.bf16.msra.mxu0 %v2150_v9  ;;  %5553 = vmatprep.mubr.msk.bf16.mxu0 %vm6143_vm1, %v6141_v56 }
 0xaee   :  { %5563 = vmatprep.subr.bf16.mxu0 %v6141_v56 }
 0xaef   :  { %v1921_v42 = vpop.xlane.xlu1 %1920 }
 0xaf0   :  { %5959 = vrcp.f32 %v1921_v42 }
 0xaf9   :  { %v5958_v16 = vpop.eup %5957 }
 0xafa   :  { %v1935_v17 = vmul.f32 %v5958_v16, %v6677_v39 }
 0xafc   :  { %v1947_v59 = vpack.c.bf16 %v1935_v17, %v1935_v17 }
 0xafd   :  { %v5960_v63 = vpop.eup %5959 }
 0xafe   :  { %5548 = vmatmul.mubr.msk.bf16.vlgmr.msra.gmra.mxu1 %vm849_vm5, %v1947_v59  ;;  %v1939_v23 = vmul.f32 %v5960_v63, %v6681_v45 }
 0xaff   :  { %5558 = vmatpush3.bf16.msra.mxu1 %v2198_v15  ;;  %5559 = vmatprep.mubr.msk.bf16.mxu1 %vm6143_vm1, %v6141_v56 }
 0xb00   :  { %5569 = vmatprep.subr.bf16.mxu1 %v6141_v56  ;;  %v1949_v19 = vpack.c.bf16 %v1939_v23, %v1939_v23 }
 0xb06   :  { %5560 = vmatmul.mubr.msk.bf16.vlgmr.msra.gmra.mxu1 %vm849_vm5, %v1949_v19 }
 0xb07   :  { %5571 = vmatprep.mubr.msk.bf16.mxu1 %vm6143_vm1, %v6141_v56 }
 0xb0e   :  { %v1918_v21 = vpop.xlane.xlu0 %1917 }
 0xb0f   :  { %5961 = vrcp.f32 %v1918_v21 }
 0xb12   :  { %v1924_v24 = vpop.xlane.xlu0 %1923 }
 0xb13   :  { %5963 = vrcp.f32 %v1924_v24 }
 0xb16   :  { %v2241_v62 = vpop.permute.xlu0 %2240 }
 0xb17   :  { %v2246_v44 = vsel %vm949_vm3, %v2241_v62, 0 }
 0xb1c   :  { %v5962_v33 = vpop.eup %5961 }
 0xb1d   :  { %v1937_v11 = vmul.f32 %v5962_v33, %v6689_v52 }
 0xb1e   :  { %v1927_v37 = vpop.xlane.xlu1 %1926 }
 0xb1f   :  { %5965 = vrcp.f32 %v1927_v37  ;;  %v1948_v22 = vpack.c.bf16 %v1937_v11, %v1937_v11 }
 0xb20   :  { %v5964_v39 = vpop.eup %5963 }
 0xb21   :  { %5554 = vmatmul.mubr.msk.bf16.vlgmr.msra.gmra.mxu0 %vm849_vm5, %v1948_v22  ;;  %v1941_v47 = vmul.f32 %v5964_v39, %v6694_v1 }
 0xb22   :  { %5564 = vmatpush3.bf16.msra.mxu0 %v2246_v44  ;;  %v2289_v45 = vpop.permute.xlu1 %2288  ;;  %5565 = vmatprep.mubr.msk.bf16.mxu0 %vm6143_vm1, %v6141_v56 }
 0xb23   :  { %v2294_v46 = vsel %vm949_vm3, %v2289_v45, 0  ;;  %v1950_v29 = vpack.c.bf16 %v1941_v47, %v1941_v47 }
 0xb24   :  { %5570 = vmatpush3.bf16.msra.mxu1 %v2294_v46 }
 0xb29   :  { %5566 = vmatmul.mubr.msk.bf16.vlgmr.msra.gmra.mxu0 %vm849_vm5, %v1950_v29 }
 0xb2a   :  { %2501 = vmatprep.mubr.bf16.mxu0 %v6140_v18 }
 0xb2c   :  { %v5966_v49 = vpop.eup %5965 }
 0xb2d   :  { %v1943_v32 = vmul.f32 %v5966_v49, %v6699_v43 }
 0xb2f   :  { %v1951_v50 = vpack.c.bf16 %v1943_v32, %v1943_v32 }
 0xb31   :  { %5572 = vmatmul.mubr.msk.bf16.vlgmr.msra.gmra.mxu1 %vm849_vm5, %v1951_v50 }
 0xb54   :  { %v1994_v52 = vpop.f32.mrf.mxu0 }
 0xb56   :  { %v5531_v54 = vpop.f32.mrf.mxu0 }
 0xb58   :  { %v1997_v55 = vpop.f32.mrf.mxu0 }
 0xb5a   :  { %v5532_v58 = vpop.f32.mrf.mxu0 }
 0xb89   :  { %v2042_v60 = vpop.f32.mrf.mxu1 }
 0xb8b   :  { %v5537_v0 = vpop.f32.mrf.mxu1 }
 0xb8c   :  { %v5823_v0 = vld [vmem:[%s7436_s6 + $0x30] ss:$8 sps:$4 sm:$0xff]  }
 0xb8d   :  { %v2045_v41 = vpop.f32.mrf.mxu1 }
 0xb8e   :  { %v5828_v41 = vld [vmem:[%s7436_s6 + $0x24] ss:$8 sps:$4 sm:$0xff]  }
 0xb8f   :  { %v5538_v1 = vpop.f32.mrf.mxu1 }
 0xb90   :  { %v5826_v1 = vld [vmem:[%s7436_s6 + $0x20] ss:$8 sps:$4 sm:$0xff]  }
 0xbac   :  { %v2090_v53 = vpop.f32.mrf.mxu0 }
 0xbad   :  { %2338 = vrot.lane.b32.xlu0 %v2090_v53, %s6147_s17  ;;  %v5829_v53 = vld [vmem:[%s7436_s6 + $0x10] ss:$8 sps:$4 sm:$0xff]  }
 0xbae   :  { %v5543_v26 = vpop.f32.mrf.mxu0 }
 0xbaf   :  { %v5831_v26 = vld [vmem:[%s7436_s6 + $0x14] ss:$8 sps:$4 sm:$0xff]  }
 0xbb0   :  { %v2093_v2 = vpop.f32.mrf.mxu0 }
 0xbb1   :  { %v5834_v2 = vld [vmem:[%s7436_s6 + $0x4] ss:$8 sps:$4 sm:$0xff]  }
 0xbb2   :  { %v5544_v57 = vpop.f32.mrf.mxu0 }
 0xbb3   :  { %v5832_v57 = vld [vmem:[%s7436_s6] ss:$8 sps:$4 sm:$0xff]  }
 0xbbe   :  { %v2138_v4 = vpop.f32.mrf.mxu1 }
 0xbbf   :  { %2340 = vrot.lane.b32.xlu1 %v2138_v4, %s6147_s17  ;;  %v5835_v4 = vld [vmem:[%s7437_s7 + $0x78] sm:$0xff]  }
 0xbc0   :  { %v5549_v43 = vpop.f32.mrf.mxu1  ;;  %5258 = vmatprep.subr.bf16.mxu1 %v5835_v4 }
 0xbc1   :  { %v5836_v43 = vld [vmem:[%s7437_s7 + $0x38] sm:$0xff]  }
 0xbc2   :  { %v2141_v28 = vpop.f32.mrf.mxu1  ;;  %5259 = vmatpush3.bf16.msra.mxu1 %v5836_v43 }
 0xbc3   :  { %v5837_v28 = vld [vmem:[%s7437_s7 + $0x70] sm:$0xff]  }
 0xbc4   :  { %v5550_v6 = vpop.f32.mrf.mxu1  ;;  %5260 = vmatprep.subr.bf16.mxu1 %v5837_v28 }
 0xbc5   :  { %v5838_v6 = vld [vmem:[%s7437_s7 + $0x30] sm:$0xff]  }
 0xbc6   :  { %v2234_v7 = vpop.f32.mrf.mxu1  ;;  %5261 = vmatpush3.bf16.msra.mxu1 %v5838_v6 }
 0xbc7   :  { %2348 = vrot.lane.b32.xlu1 %v2234_v7, %s6148_s18  ;;  %v5839_v7 = vld [vmem:[%s7437_s7 + $0x68] sm:$0xff]  }
 0xbc8   :  { %v5561_v8 = vpop.f32.mrf.mxu1  ;;  %5262 = vmatprep.subr.bf16.mxu1 %v5839_v7 }
 0xbc9   :  { %v5840_v8 = vld [vmem:[%s7437_s7 + $0x28] sm:$0xff]  }
 0xbca   :  { %v2237_v12 = vpop.f32.mrf.mxu1  ;;  %5263 = vmatpush3.bf16.msra.mxu1 %v5840_v8 }
 0xbcb   :  { %v5841_v12 = vld [vmem:[%s7437_s7 + $0x60] sm:$0xff]  }
 0xbcc   :  { %v5562_v51 = vpop.f32.mrf.mxu1  ;;  %5264 = vmatprep.subr.bf16.mxu1 %v5841_v12 }
 0xbcd   :  { %v5842_v51 = vld [vmem:[%s7437_s7 + $0x20] sm:$0xff]  }
 0xbce   :  { %5265 = vmatpush3.bf16.msra.mxu1 %v5842_v51 }
 0xbe1   :  { %v2186_v3 = vpop.f32.mrf.mxu0 }
 0xbe2   :  { %2346 = vrot.lane.b32.xlu0 %v2186_v3, %s6148_s18  ;;  %v5843_v3 = vld [vmem:[%s7437_s7 + $0x58] sm:$0xff]  }
 0xbe3   :  { %v5555_v5 = vpop.f32.mrf.mxu0  ;;  %5266 = vmatprep.subr.bf16.mxu1 %v5843_v3 }
 0xbe4   :  { %v5844_v5 = vld [vmem:[%s7437_s7 + $0x18] sm:$0xff]  }
 0xbe5   :  { %v2189_v20 = vpop.f32.mrf.mxu0  ;;  %5267 = vmatpush3.bf16.msra.mxu1 %v5844_v5 }
 0xbe7   :  { %v5556_v61 = vpop.f32.mrf.mxu0 }
 0xbe9   :  { %v2282_v13 = vpop.f32.mrf.mxu0 }
 0xbea   :  { %2354 = vrot.lane.b32.xlu0 %v2282_v13, %s6149_s19 }
 0xbeb   :  { %v5567_v14 = vpop.f32.mrf.mxu0 }
 0xbed   :  { %v2285_v10 = vpop.f32.mrf.mxu0 }
 0xbef   :  { %v5568_v9 = vpop.f32.mrf.mxu0 }
 0xbf1   :  { %v2330_v42 = vpop.f32.mrf.mxu1 }
 0xbf2   :  { %2356 = vrot.lane.b32.xlu1 %v2330_v42, %s6149_s19  ;;  %v2396_v42 = vsub.s32 4, %v6250_v30 }
 0xbf3   :  { %v5573_v16 = vpop.f32.mrf.mxu1 }
 0xbf5   :  { %v2333_v17 = vpop.f32.mrf.mxu1 }
 0xbf7   :  { %v5574_v59 = vpop.f32.mrf.mxu1 }
 0xbf8   :  { %v6047_v59 = vld [vmem:[#allocation7] sm:$0xff] }
 0xc1f   :  { %v2339_v63 = vpop.permute.xlu0 %2338 }
 0xc20   :  { %v2360_v23 = vsel %vm456_vm2, %v1994_v52, %v2339_v63  ;;  %v2397_v63 = vrot.slane %v6047_v59, %v2396_v42 }
 0xc31   :  { %v2341_v19 = vpop.permute.xlu1 %2340 }
 0xc32   :  { %v2361_v22 = vsel %vm456_vm2, %v2042_v60, %v2341_v19 }
 0xc39   :  { %v2349_v62 = vpop.permute.xlu1 %2348 }
 0xc3a   :  { %v2363_v39 = vsel %vm1341_vm6, %v2361_v22, %v2349_v62  ;;  %v5845_v22 = vld [vmem:[%s7437_s7 + $0x50] sm:$0xff]  }
 0xc3b   :  { %5268 = vmatprep.subr.bf16.mxu1 %v5845_v22  ;;  %v5857_v22 = vld [vmem:[%s7433_s3 + $0x50] ss:$8 sps:$4 sm:$0xff]  }
 0xc54   :  { %v2347_v15 = vpop.permute.xlu0 %2346 }
 0xc55   :  { %v2362_v21 = vsel %vm1341_vm6, %v2360_v23, %v2347_v15  ;;  %v2402_v15 = vsub.s32 5, %v6250_v30  ;;  %v5891_v30 = vld [vmem:[%s7437_s7 + $0xc8] sm:$0xff]  }
 0xc5c   :  { %v2355_v24 = vpop.permute.xlu0 %2354 }
 0xc5d   :  { %v2364_v33 = vsel %vm1344_vm7, %v2362_v21, %v2355_v24  ;;  %v2403_v24 = vrot.slane %v6047_v59, %v2402_v15 }
 0xc5e   :  { %v2366_v11 = vadd.f32 %v2364_v33, %v6558_v48 }
 0xc60   :  { %v2368_v37 = vsel %vm249_vm0, %v2366_v11, 0.0 }
 0xc61   :  { %2369 = vadd.xlane.f32.xlu0 %v2368_v37 }
 0xc64   :  { %v2357_v44 = vpop.permute.xlu1 %2356 }
 0xc65   :  { %v2365_v45 = vsel %vm1344_vm7, %v2363_v39, %v2357_v44  ;;  %v5846_v39 = vld [vmem:[%s7437_s7 + $0x10] sm:$0xff]   ;;  %v5847_v44 = vld [vmem:[%s7437_s7 + $0x48] sm:$0xff]  }
 0xc66   :  { %v2367_v46 = vadd.f32 %v2365_v45, %v6560_v38  ;;  %v5825_v38 = vld [vmem:[%s7436_s6 + $0x34] ss:$8 sps:$4 sm:$0xff]   ;;  %5269 = vmatpush3.bf16.msra.mxu1 %v5846_v39  ;;  %v5848_v45 = vld [vmem:[%s7437_s7 + $0x8] sm:$0xff]  }
 0xc67   :  { %2477 = vmatprep.subr.bf16.mxu0 %v5825_v38  ;;  %5270 = vmatprep.subr.bf16.mxu1 %v5847_v44  ;;  %v5859_v39 = vld [vmem:[%s7433_s3 + $0x54] ss:$8 sps:$4 sm:$0xff]   ;;  %v5862_v44 = vld [vmem:[%s7433_s3 + $0x44] ss:$8 sps:$4 sm:$0xff]  }
 0xc68   :  { %v2371_v47 = vsel %vm249_vm0, %v2367_v46, 0.0  ;;  %2478 = vmatpush1.bf16.msra.mxu0 %v5823_v0 }
 0xc69   :  { %2372 = vadd.xlane.f32.xlu1 %v2371_v47  ;;  %2479 = vmatprep.subr.bf16.mxu0 %v5828_v41  ;;  %v5850_v47 = vld [vmem:[%s7437_s7] sm:$0xff]  }
 0xc6a   :  { %5271 = vmatpush3.bf16.msra.mxu1 %v5848_v45  ;;  %v5860_v45 = vld [vmem:[%s7433_s3 + $0x40] ss:$8 sps:$4 sm:$0xff]  }
 0xc6c   :  { %2480 = vmatpush1.bf16.msra.mxu0 %v5826_v1 }
 0xc6d   :  { %2481 = vmatprep.subr.bf16.mxu0 %v5831_v26 }
 0xc70   :  { %2482 = vmatpush1.bf16.msra.mxu0 %v5829_v53 }
 0xc71   :  { %2483 = vmatprep.subr.bf16.mxu0 %v5834_v2 }
 0xc74   :  { %2484 = vmatpush1.bf16.msra.mxu0 %v5832_v57 }
 0xcea   :  { %v2370_v29 = vpop.xlane.xlu0 %2369 }
 0xceb   :  { %v2374_v49 = vmul.f32 0.015625, %v2370_v29  ;;  %v201_v29 = vld [vmem:[%s7438_s8] sm:$0xf] }
 0xcec   :  { %v2521_v28 = vrot.slane %v201_v29, %v6260_v36 }
 0xced   :  { %v2376_v32 = vsub.f32 %v2366_v11, %v2374_v49  ;;  %v2415_v49 = vrot.slane %v201_v29, %v6550_v25 }
 0xcef   :  { %v2378_v48 = vmul.f32 %v2376_v32, %v2376_v32 }
 0xcf1   :  { %v2380_v50 = vsel %vm249_vm0, %v2378_v48, 0.0 }
 0xcf2   :  { %2381 = vadd.xlane.f32.xlu0 %v2380_v50  ;;  %v2373_v52 = vpop.xlane.xlu1 %2372  ;;  %v2425_v50 = vrot.slane %v2415_v49, %v6253_v31 }
 0xcf3   :  { %v2375_v54 = vmul.f32 0.015625, %v2373_v52 }
 0xcf5   :  { %v2377_v55 = vsub.f32 %v2367_v46, %v2375_v54  ;;  %v5849_v46 = vld [vmem:[%s7437_s7 + $0x40] sm:$0xff]  }
 0xcf6   :  { %5272 = vmatprep.subr.bf16.mxu1 %v5849_v46 }
 0xcf7   :  { %v2379_v58 = vmul.f32 %v2377_v55, %v2377_v55  ;;  %5273 = vmatpush3.bf16.msra.mxu1 %v5850_v47 }
 0xcf8   :  { %5581 = vmatprep.subr.bf16.mxu1 %v6141_v56 }
 0xcf9   :  { %v2383_v60 = vsel %vm249_vm0, %v2379_v58, 0.0 }
 0xcfa   :  { %2384 = vadd.xlane.f32.xlu0 %v2383_v60 }
 0xd7b   :  { %v2382_v20 = vpop.xlane.xlu0 %2381 }
 0xd7c   :  { %v2386_v61 = vmul.f32 0.015625, %v2382_v20 }
 0xd7e   :  { %v2388_v13 = vadd.f32 1e-05, %v2386_v61 }
 0xd80   :  { %5967 = vrsqrt.f32 %v2388_v13 }
 0xd83   :  { %v2385_v14 = vpop.xlane.xlu0 %2384 }
 0xd84   :  { %v2387_v10 = vmul.f32 0.015625, %v2385_v14 }
 0xd86   :  { %v2389_v9 = vadd.f32 1e-05, %v2387_v10 }
 0xd88   :  { %5969 = vrsqrt.f32 %v2389_v9 }
 0xd8d   :  { %v5968_v16 = vpop.eup %5967 }
 0xd8e   :  { %v2392_v17 = vmul.f32 %v5968_v16, %v2376_v32  ;;  %v2411_v32 = vrot.slane %v201_v29, %v6253_v31 }
 0xd90   :  { %v2398_v21 = vmul.f32 %v2397_v63, %v2392_v17  ;;  %v2421_v52 = vrot.slane %v2411_v32, %v6253_v31 }
 0xd92   :  { %v2404_v11 = vadd.f32 %v2403_v24, %v2398_v21 }
 0xd95   :  { %v5970_v23 = vpop.eup %5969 }
 0xd96   :  { %v2393_v19 = vmul.f32 %v5970_v23, %v2377_v55 }
 0xd98   :  { %v2399_v33 = vmul.f32 %v2397_v63, %v2393_v19 }
 0xd9a   :  { %v2405_v62 = vadd.f32 %v2403_v24, %v2399_v33  ;;  %v5853_v33 = vld [vmem:[%s7433_s3 + $0x74] ss:$8 sps:$4 sm:$0xff]  }
 0xd9b   :  { %2751 = vmatprep.subr.bf16.mxu0 %v5853_v33 }
 0xd9c   :  { %v2406_v37 = vpack.c.bf16 %v2405_v62, %v2404_v11 }
 0xd9e   :  { %5101 = vmatmul.mubr.msk.bf16.vlgmr.msra.gmra.mxu0 %vm249_vm0, %v2406_v37  ;;  %v5854_v37 = vld [vmem:[%s7433_s3 + $0x60] ss:$8 sps:$4 sm:$0xff]  }
 0xd9f   :  { %2775 = vmatprep.mubr.bf16.mxu0 %v6140_v18 }
 0xe5e   :  { %v2503_v48 = vpop.f32.mrf.mxu0 }
 0xe5f   :  { %v2504_v38 = vadd.f32 %v2503_v48, %v2421_v52 }
 0xe60   :  { %v2505_v54 = vpop.f32.mrf.mxu0 }
 0xe61   :  { %v2506_v58 = vadd.f32 %v2505_v54, %v2425_v50  ;;  %v2512_v2 = vmax.f32 %v2504_v38, 0.0 }
 0xe62   :  { %v2507_v55 = vpop.f32.mrf.mxu0 }
 0xe63   :  { %v2508_v60 = vadd.f32 %v2507_v55, %v2421_v52  ;;  %v2513_v53 = vmax.f32 %v2506_v58, 0.0 }
 0xe64   :  { %v2509_v0 = vpop.f32.mrf.mxu0 }
 0xe65   :  { %v2510_v41 = vadd.f32 %v2509_v0, %v2425_v50  ;;  %v2514_v1 = vmax.f32 %v2508_v60, 0.0  ;;  %v6883_v50 = vld [vmem:[#allocation7 + $0x8] sm:$0xff] }
 0xe66   :  { %v2690_v55 = vrot.slane %v6883_v50, %v6253_v31  ;;  %v2696_v0 = vrot.slane %v6883_v50, %v6260_v36 }
 0xe67   :  { %v2515_v26 = vmax.f32 %v2510_v41, 0.0  ;;  %v2516_v4 = vpack.c.bf16 %v2514_v1, %v2512_v2 }
 0xe69   :  { %v2517_v57 = vpack.c.bf16 %v2515_v26, %v2513_v53 }
 0xe6b   :  { %2650 = vmatprep.mubr.bf16.mxu1 %v2517_v57 }
 0xe6c   :  { %2651 = vmatmul.mubr.bf16.vlgmr.msra.gmra.mxu1 %v2516_v4 }
 0xe6d   :  { %5583 = vmatprep.mubr.msk.bf16.mxu1 %vm6143_vm1, %v6141_v56 }
 0xf2c   :  { %v5274_v43 = vpop.f32.mrf.mxu1 }
 0xf2e   :  { %v5275_v6 = vpop.f32.mrf.mxu1 }
 0xf2f   :  { %v5276_v7 = vadd.f32 %v5275_v6, %v5274_v43 }
 0xf30   :  { %v5277_v8 = vpop.f32.mrf.mxu1 }
 0xf31   :  { %v2653_v12 = vadd.f32 %v5276_v7, %v2521_v28 }
 0xf32   :  { %v5278_v51 = vpop.f32.mrf.mxu1 }
 0xf33   :  { %v5279_v3 = vadd.f32 %v5278_v51, %v5277_v8  ;;  %v2659_v5 = vadd.f32 %v2653_v12, %v2404_v11  ;;  %v5851_v11 = vld [vmem:[%s7433_s3 + $0x70] ss:$8 sps:$4 sm:$0xff]  }
 0xf34   :  { %2752 = vmatpush1.bf16.msra.mxu0 %v5851_v11 }
 0xf35   :  { %v2656_v20 = vadd.f32 %v5279_v3, %v2521_v28  ;;  %v2661_v61 = vsel %vm249_vm0, %v2659_v5, 0.0 }
 0xf36   :  { %2662 = vadd.xlane.f32.xlu0 %v2661_v61 }
 0xf37   :  { %v2660_v13 = vadd.f32 %v2656_v20, %v2405_v62  ;;  %v5856_v62 = vld [vmem:[%s7433_s3 + $0x64] ss:$8 sps:$4 sm:$0xff]  }
 0xf38   :  { %2753 = vmatprep.subr.bf16.mxu0 %v5856_v62 }
 0xf39   :  { %v2664_v14 = vsel %vm249_vm0, %v2660_v13, 0.0  ;;  %2754 = vmatpush1.bf16.msra.mxu0 %v5854_v37 }
 0xf3a   :  { %2665 = vadd.xlane.f32.xlu1 %v2664_v14  ;;  %2755 = vmatprep.subr.bf16.mxu0 %v5859_v39 }
 0xf3d   :  { %2756 = vmatpush1.bf16.msra.mxu0 %v5857_v22 }
 0xf3e   :  { %2757 = vmatprep.subr.bf16.mxu0 %v5862_v44 }
 0xf41   :  { %2758 = vmatpush1.bf16.msra.mxu0 %v5860_v45 }
 0xf42   :  { %5575 = vmatprep.subr.bf16.mxu0 %v6141_v56 }
 0xfbf   :  { %v2663_v10 = vpop.xlane.xlu0 %2662 }
 0xfc0   :  { %v2667_v9 = vmul.f32 0.015625, %v2663_v10 }
 0xfc2   :  { %v2669_v16 = vsub.f32 %v2659_v5, %v2667_v9 }
 0xfc3   :  { %v2666_v17 = vpop.xlane.xlu1 %2665 }
 0xfc4   :  { %v2668_v59 = vmul.f32 0.015625, %v2666_v17  ;;  %v2671_v63 = vmul.f32 %v2669_v16, %v2669_v16 }
 0xfc6   :  { %v2670_v23 = vsub.f32 %v2660_v13, %v2668_v59  ;;  %v2673_v19 = vsel %vm249_vm0, %v2671_v63, 0.0 }
 0xfc7   :  { %2674 = vadd.xlane.f32.xlu0 %v2673_v19 }
 0xfc8   :  { %v2672_v21 = vmul.f32 %v2670_v23, %v2670_v23 }
 0xfca   :  { %v2676_v24 = vsel %vm249_vm0, %v2672_v21, 0.0 }
 0xfcb   :  { %2677 = vadd.xlane.f32.xlu1 %v2676_v24 }
0x1050   :  { %v2675_v46 = vpop.xlane.xlu0 %2674 }
0x1051   :  { %v2679_v47 = vmul.f32 0.015625, %v2675_v46 }
0x1053   :  { %v2681_v29 = vadd.f32 1e-05, %v2679_v47 }
0x1054   :  { %v2678_v49 = vpop.xlane.xlu1 %2677 }
0x1055   :  { %5971 = vrsqrt.f32 %v2681_v29  ;;  %v2680_v32 = vmul.f32 0.015625, %v2678_v49 }
0x1057   :  { %v2682_v48 = vadd.f32 1e-05, %v2680_v32 }
0x1059   :  { %5973 = vrsqrt.f32 %v2682_v48 }
0x1062   :  { %v5972_v52 = vpop.eup %5971 }
0x1063   :  { %v2685_v54 = vmul.f32 %v5972_v52, %v2669_v16 }
0x1065   :  { %v2691_v38 = vmul.f32 %v2690_v55, %v2685_v54 }
0x1066   :  { %v5974_v58 = vpop.eup %5973 }
0x1067   :  { %v2686_v60 = vmul.f32 %v5974_v58, %v2670_v23  ;;  %v6889_v1 = vadd.f32 %v2696_v0, %v2691_v38 }
0x1069   :  { %v2692_v41 = vmul.f32 %v2690_v55, %v2686_v60 }
0x106b   :  { %v6891_v53 = vadd.f32 %v2696_v0, %v2692_v41 }
0x106d   :  { %v2699_v26 = vpack.c.bf16 %v6891_v53, %v6889_v1 }
0x106f   :  { %5126 = vmatmul.mubr.msk.bf16.vlgmr.msra.gmra.mxu0 %vm249_vm0, %v2699_v26 }
0x1070   :  { %5577 = vmatprep.mubr.msk.bf16.mxu0 %vm6143_vm1, %v6141_v56 }
0x112f   :  { %v2777_v2 = vpop.f32.mrf.mxu0 }
0x1130   :  { %v2786_v57 = vpack.c.bf16 %v2777_v2, %v2777_v2 }
0x1131   :  { %v2779_v4 = vpop.f32.mrf.mxu0 }
0x1132   :  { %2792 = vrot.lane.b32.xlu0 %v2786_v57, %s6142_s12  ;;  %v6941_v33 = vpack.c.bf16 %v2779_v4, %v2779_v4 }
0x1133   :  { %v2781_v43 = vpop.f32.mrf.mxu0 }
0x1134   :  { %v2787_v28 = vpack.c.bf16 %v2781_v43, %v2781_v43  ;;  %v3310_v22 = vsel %vm949_vm3, %v6941_v33, 0 }
0x1135   :  { %v2783_v62 = vpop.f32.mrf.mxu0 }
0x1136   :  { %2800 = vrot.lane.b32.xlu0 %v2786_v57, %s6144_s5  ;;  %2794 = vrot.lane.b32.xlu1 %v2787_v28, %s6142_s12  ;;  %v6948_v37 = vpack.c.bf16 %v2783_v62, %v2783_v62 }
0x1138   :  { %v3356_v39 = vsel %vm949_vm3, %v6948_v37, 0 }
0x113a   :  { %2818 = vrot.lane.b32.xlu0 %v2786_v57, %s6145_s13  ;;  %2796 = vrot.lane.b32.xlu1 %v2786_v57, %s6146_s16 }
0x113e   :  { %2798 = vrot.lane.b32.xlu1 %v2787_v28, %s6146_s16 }
0x1142   :  { %2802 = vrot.lane.b32.xlu1 %v2787_v28, %s6144_s5 }
0x1146   :  { %2866 = vrot.lane.b32.xlu1 %v2787_v28, %s6145_s13 }
0x11a4   :  { %v2793_v6 = vpop.permute.xlu0 %2792 }
0x11a5   :  { %2914 = vrot.lane.b32.xlu0 %v2793_v6, %s6145_s13 }
0x11a8   :  { %v2801_v7 = vpop.permute.xlu0 %2800  ;;  %v2795_v8 = vpop.permute.xlu1 %2794 }
0x11a9   :  { %2962 = vrot.lane.b32.xlu1 %v2795_v8, %s6145_s13 }
0x11ac   :  { %v2819_v12 = vpop.permute.xlu0 %2818  ;;  %v2797_v51 = vpop.permute.xlu1 %2796 }
0x11ad   :  { %v2824_v3 = vsel %vm456_vm2, %v2819_v12, 0  ;;  %3010 = vrot.lane.b32.xlu0 %v2797_v51, %s6145_s13 }
0x11ae   :  { %5576 = vmatpush3.bf16.xpose.msra.mxu0 %v2824_v3 }
0x11af   :  { %5587 = vmatprep.subr.bf16.mxu0 %v6141_v56 }
0x11b0   :  { %v2799_v5 = vpop.permute.xlu1 %2798 }
0x11b1   :  { %3106 = vrot.lane.b32.xlu0 %v2801_v7, %s6145_s13  ;;  %3058 = vrot.lane.b32.xlu1 %v2799_v5, %s6145_s13 }
0x11b4   :  { %v2803_v20 = vpop.permute.xlu1 %2802 }
0x11b5   :  { %5578 = vmatmul.mubr.msk.bf16.vlgmr.msra.gmra.mxu0 %vm456_vm2, %v2786_v57  ;;  %3154 = vrot.lane.b32.xlu1 %v2803_v20, %s6145_s13 }
0x11b6   :  { %5589 = vmatprep.mubr.msk.bf16.mxu0 %vm6143_vm1, %v6141_v56 }
0x11b8   :  { %v2867_v61 = vpop.permute.xlu1 %2866 }
0x11b9   :  { %v2872_v13 = vsel %vm456_vm2, %v2867_v61, 0 }
0x11ba   :  { %5582 = vmatpush3.bf16.xpose.msra.mxu1 %v2872_v13 }
0x11bb   :  { %5593 = vmatprep.subr.bf16.mxu1 %v6141_v56 }
0x11c1   :  { %5584 = vmatmul.mubr.msk.bf16.vlgmr.msra.gmra.mxu1 %vm456_vm2, %v2787_v28 }
0x11c2   :  { %5595 = vmatprep.mubr.msk.bf16.mxu1 %vm6143_vm1, %v6141_v56 }
0x1217   :  { %v2915_v14 = vpop.permute.xlu0 %2914 }
0x1218   :  { %v2920_v10 = vsel %vm456_vm2, %v2915_v14, 0 }
0x1219   :  { %5588 = vmatpush3.bf16.xpose.msra.mxu0 %v2920_v10 }
0x121a   :  { %5599 = vmatprep.subr.bf16.mxu0 %v6141_v56 }
0x121b   :  { %v2963_v9 = vpop.permute.xlu1 %2962 }
0x121c   :  { %v2968_v16 = vsel %vm456_vm2, %v2963_v9, 0 }
0x121d   :  { %5594 = vmatpush3.bf16.xpose.msra.mxu1 %v2968_v16 }
0x121e   :  { %5605 = vmatprep.subr.bf16.mxu1 %v6141_v56 }
0x121f   :  { %v3011_v17 = vpop.permute.xlu0 %3010 }
0x1220   :  { %v3016_v59 = vsel %vm456_vm2, %v3011_v17, 0  ;;  %5590 = vmatmul.mubr.msk.bf16.vlgmr.msra.gmra.mxu0 %vm456_vm2, %v2793_v6 }
0x1221   :  { %5600 = vmatpush3.bf16.xpose.msra.mxu0 %v3016_v59  ;;  %5601 = vmatprep.mubr.msk.bf16.mxu0 %vm6143_vm1, %v6141_v56 }
0x1222   :  { %5611 = vmatprep.subr.bf16.mxu0 %v6141_v56 }
0x1223   :  { %v3059_v63 = vpop.permute.xlu1 %3058  ;;  %v3107_v19 = vpop.permute.xlu0 %3106 }
0x1224   :  { %v3064_v23 = vsel %vm456_vm2, %v3059_v63, 0  ;;  %5596 = vmatmul.mubr.msk.bf16.vlgmr.msra.gmra.mxu1 %vm456_vm2, %v2795_v8  ;;  %v3112_v21 = vsel %vm456_vm2, %v3107_v19, 0 }
0x1225   :  { %5606 = vmatpush3.bf16.xpose.msra.mxu1 %v3064_v23  ;;  %5607 = vmatprep.mubr.msk.bf16.mxu1 %vm6143_vm1, %v6141_v56 }
0x1226   :  { %5617 = vmatprep.subr.bf16.mxu1 %v6141_v56 }
0x1227   :  { %v3155_v24 = vpop.permute.xlu1 %3154 }
0x1228   :  { %5602 = vmatmul.mubr.msk.bf16.vlgmr.msra.gmra.mxu0 %vm456_vm2, %v2797_v51  ;;  %v3160_v11 = vsel %vm456_vm2, %v3155_v24, 0 }
0x1229   :  { %5612 = vmatpush3.bf16.xpose.msra.mxu0 %v3112_v21  ;;  %5613 = vmatprep.mubr.msk.bf16.mxu0 %vm6143_vm1, %v6141_v56 }
0x122a   :  { %5623 = vmatprep.subr.bf16.mxu0 %v6141_v56 }
0x122c   :  { %5608 = vmatmul.mubr.msk.bf16.vlgmr.msra.gmra.mxu1 %vm456_vm2, %v2799_v5 }
0x122d   :  { %5618 = vmatpush3.bf16.xpose.msra.mxu1 %v3160_v11  ;;  %5619 = vmatprep.mubr.msk.bf16.mxu1 %vm6143_vm1, %v6141_v56 }
0x122e   :  { %5629 = vmatprep.subr.bf16.mxu1 %v6141_v56 }
0x1230   :  { %5614 = vmatmul.mubr.msk.bf16.vlgmr.msra.gmra.mxu0 %vm456_vm2, %v2801_v7 }
0x1231   :  { %5624 = vmatpush3.bf16.msra.mxu0 %v3310_v22  ;;  %5625 = vmatprep.mubr.msk.bf16.mxu0 %vm6143_vm1, %v6141_v56 }
0x1232   :  { %5635 = vmatprep.subr.bf16.mxu0 %v6141_v56 }
0x1234   :  { %5620 = vmatmul.mubr.msk.bf16.vlgmr.msra.gmra.mxu1 %vm456_vm2, %v2803_v20 }
0x1235   :  { %5630 = vmatpush3.bf16.msra.mxu1 %v3356_v39  ;;  %5631 = vmatprep.mubr.msk.bf16.mxu1 %vm6143_vm1, %v6141_v56 }
0x1236   :  { %5641 = vmatprep.subr.bf16.mxu1 %v6141_v56 }
0x1275   :  { %v2860_v44 = vpop.f32.mrf.mxu0 }
0x1276   :  { %v3202_v45 = vsel %vm6380_vm4, %v2860_v44, -1e+30 }
0x1277   :  { %v3210_v46 = vsel %vm849_vm5, %v3202_v45, -inf  ;;  %v5579_v47 = vpop.f32.mrf.mxu0 }
0x1278   :  { %3211 = vmax.xlane.f32.xlu0 %v3210_v46 }
0x1279   :  { %v2863_v29 = vpop.f32.mrf.mxu0 }
0x127b   :  { %v5580_v49 = vpop.f32.mrf.mxu0 }
0x1281   :  { %v2908_v32 = vpop.f32.mrf.mxu1 }
0x1282   :  { %v3203_v48 = vsel %vm6380_vm4, %v2908_v32, -1e+30 }
0x1283   :  { %v3213_v52 = vsel %vm849_vm5, %v3203_v48, -inf  ;;  %v5585_v54 = vpop.f32.mrf.mxu1 }
0x1284   :  { %3214 = vmax.xlane.f32.xlu1 %v3213_v52 }
0x1285   :  { %v2911_v55 = vpop.f32.mrf.mxu1 }
0x1287   :  { %v5586_v58 = vpop.f32.mrf.mxu1 }
0x12e0   :  { %v2956_v60 = vpop.f32.mrf.mxu0 }
0x12e1   :  { %v3204_v38 = vsel %vm6380_vm4, %v2956_v60, -1e+30 }
0x12e2   :  { %v3216_v0 = vsel %vm849_vm5, %v3204_v38, -inf  ;;  %v5591_v41 = vpop.f32.mrf.mxu0 }
0x12e3   :  { %3217 = vmax.xlane.f32.xlu0 %v3216_v0 }
0x12e4   :  { %v2959_v26 = vpop.f32.mrf.mxu0  ;;  %v3004_v2 = vpop.f32.mrf.mxu1 }
0x12e5   :  { %v3205_v57 = vsel %vm6380_vm4, %v3004_v2, -1e+30 }
0x12e6   :  { %v3219_v4 = vsel %vm849_vm5, %v3205_v57, -inf  ;;  %v5592_v43 = vpop.f32.mrf.mxu0  ;;  %v5597_v28 = vpop.f32.mrf.mxu1 }
0x12e7   :  { %3220 = vmax.xlane.f32.xlu0 %v3219_v4 }
0x12e8   :  { %v3007_v6 = vpop.f32.mrf.mxu1  ;;  %v3052_v7 = vpop.f32.mrf.mxu0 }
0x12e9   :  { %v6976_v8 = vsel %vm6380_vm4, %v3052_v7, -1e+30 }
0x12ea   :  { %v3222_v12 = vsel %vm849_vm5, %v6976_v8, -inf  ;;  %v5598_v51 = vpop.f32.mrf.mxu1  ;;  %v5603_v3 = vpop.f32.mrf.mxu0 }
0x12eb   :  { %3223 = vmax.xlane.f32.xlu0 %v3222_v12 }
0x12ec   :  { %v3055_v5 = vpop.f32.mrf.mxu0  ;;  %v3100_v20 = vpop.f32.mrf.mxu1 }
0x12ed   :  { %v3207_v61 = vsel %vm6380_vm4, %v3100_v20, -1e+30 }
0x12ee   :  { %v3225_v13 = vsel %vm849_vm5, %v3207_v61, -inf  ;;  %v5604_v14 = vpop.f32.mrf.mxu0  ;;  %v5609_v10 = vpop.f32.mrf.mxu1 }
0x12ef   :  { %3226 = vmax.xlane.f32.xlu1 %v3225_v13 }
0x12f0   :  { %v3103_v9 = vpop.f32.mrf.mxu1  ;;  %v3148_v16 = vpop.f32.mrf.mxu0 }
0x12f1   :  { %v6985_v17 = vsel %vm6380_vm4, %v3148_v16, -1e+30 }
0x12f2   :  { %v3228_v59 = vsel %vm849_vm5, %v6985_v17, -inf  ;;  %v5610_v63 = vpop.f32.mrf.mxu1  ;;  %v5615_v23 = vpop.f32.mrf.mxu0 }
0x12f3   :  { %3229 = vmax.xlane.f32.xlu0 %v3228_v59 }
0x12f4   :  { %v3151_v19 = vpop.f32.mrf.mxu0  ;;  %v3196_v21 = vpop.f32.mrf.mxu1 }
0x12f5   :  { %v3209_v24 = vsel %vm6380_vm4, %v3196_v21, -1e+30 }
0x12f6   :  { %v3231_v11 = vsel %vm849_vm5, %v3209_v24, -inf  ;;  %v5616_v62 = vpop.f32.mrf.mxu0  ;;  %v5621_v22 = vpop.f32.mrf.mxu1 }
0x12f7   :  { %3232 = vmax.xlane.f32.xlu1 %v3231_v11 }
0x12f8   :  { %v3199_v39 = vpop.f32.mrf.mxu1 }
0x12fa   :  { %v5622_v44 = vpop.f32.mrf.mxu1 }
0x1301   :  { %v3212_v46 = vpop.xlane.xlu0 %3211 }
0x1302   :  { %v3234_v47 = vsub.f32 %v3202_v45, %v3212_v46 }
0x1304   :  { %v3242_v29 = vmul.f32 1.442695, %v3234_v47 }
0x1306   :  { %5975 = vpow2.f32 %v3242_v29 }
0x130d   :  { %v3215_v49 = vpop.xlane.xlu1 %3214 }
0x130e   :  { %v3235_v32 = vsub.f32 %v3203_v48, %v3215_v49 }
0x1310   :  { %v3244_v52 = vmul.f32 1.442695, %v3235_v32 }
0x1312   :  { %5977 = vpow2.f32 %v3244_v52 }
0x1313   :  { %v5976_v54 = vpop.eup %5975 }
0x1314   :  { %v3258_v55 = vsel %vm849_vm5, %v5976_v54, 0.0 }
0x1315   :  { %3259 = vadd.xlane.f32.xlu0 %v3258_v55 }
0x131f   :  { %v5978_v35 = vpop.eup %5977 }
0x1320   :  { %v3261_v58 = vsel %vm849_vm5, %v5978_v35, 0.0 }
0x1321   :  { %3262 = vadd.xlane.f32.xlu1 %v3261_v58 }
0x1332   :  { %2808 = vrot.lane.b32.xlu1 %v6948_v37, %s6142_s12 }
0x1336   :  { %2810 = vrot.lane.b32.xlu1 %v6941_v33, %s6146_s16 }
0x133a   :  { %2812 = vrot.lane.b32.xlu1 %v6948_v37, %s6146_s16 }
0x136c   :  { %v3218_v45 = vpop.xlane.xlu0 %3217 }
0x136d   :  { %v3236_v48 = vsub.f32 %v3204_v38, %v3218_v45 }
0x136f   :  { %v3246_v60 = vmul.f32 1.442695, %v3236_v48 }
0x1370   :  { %v3221_v0 = vpop.xlane.xlu0 %3220 }
0x1371   :  { %5979 = vpow2.f32 %v3246_v60  ;;  %v3237_v41 = vsub.f32 %v3205_v57, %v3221_v0 }
0x1373   :  { %v3248_v26 = vmul.f32 1.442695, %v3237_v41 }
0x1374   :  { %v3224_v13 = vpop.xlane.xlu0 %3223 }
0x1375   :  { %5981 = vpow2.f32 %v3248_v26  ;;  %v3238_v10 = vsub.f32 %v6976_v8, %v3224_v13 }
0x1377   :  { %v3250_v16 = vmul.f32 1.442695, %v3238_v10 }
0x1378   :  { %v3227_v2 = vpop.xlane.xlu1 %3226 }
0x1379   :  { %v3239_v4 = vsub.f32 %v3207_v61, %v3227_v2 }
0x137b   :  { %v3252_v43 = vmul.f32 1.442695, %v3239_v4 }
0x137c   :  { %v3230_v14 = vpop.xlane.xlu0 %3229 }
0x137d   :  { %5983 = vpow2.f32 %v3252_v43  ;;  %v3240_v59 = vsub.f32 %v6985_v17, %v3230_v14 }
0x137e   :  { %v7000_v28 = vpop.eup %5979 }
0x137f   :  { %v3264_v6 = vsel %vm849_vm5, %v7000_v28, 0.0  ;;  %v3254_v63 = vmul.f32 1.442695, %v3240_v59 }
0x1380   :  { %v3233_v7 = vpop.xlane.xlu1 %3232  ;;  %3265 = vadd.xlane.f32.xlu0 %v3264_v6 }
0x1381   :  { %v3241_v12 = vsub.f32 %v3209_v24, %v3233_v7 }
0x1382   :  { %v7004_v51 = vpop.eup %5981 }
0x1383   :  { %v3256_v38 = vmul.f32 1.442695, %v3241_v12  ;;  %v3267_v57 = vsel %vm849_vm5, %v7004_v51, 0.0  ;;  %v7062_v12 = vpack.c.bf16 %v6372_v27, %v6372_v27 }
0x1384   :  { %3268 = vadd.xlane.f32.xlu1 %v3267_v57 }
0x1385   :  { %5985 = vpow2.f32 %v3256_v38  ;;  %v3849_v57 = vsel %vm456_vm2, %v7062_v12, 0 }
0x138a   :  { %v7008_v3 = vpop.eup %5983 }
0x138b   :  { %v3273_v5 = vsel %vm849_vm5, %v7008_v3, 0.0 }
0x138c   :  { %3274 = vadd.xlane.f32.xlu1 %v3273_v5 }
0x1392   :  { %v7012_v20 = vpop.eup %5985 }
0x1393   :  { %v3279_v61 = vsel %vm849_vm5, %v7012_v20, 0.0 }
0x1394   :  { %3280 = vadd.xlane.f32.xlu1 %v3279_v61 }
0x1396   :  { %2806 = vrot.lane.b32.xlu0 %v6941_v33, %s6142_s12 }
0x139e   :  { %v3260_v9 = vpop.xlane.xlu0 %3259 }
0x139f   :  { %5987 = vrcp.f32 %v3260_v9 }
0x13a0   :  { %5989 = vpow2.f32 %v3250_v16 }
0x13a1   :  { %5991 = vpow2.f32 %v3254_v63 }
0x13a5   :  { %2816 = vrot.lane.b32.xlu1 %v6948_v37, %s6144_s5 }
0x13aa   :  { %v3263_v23 = vpop.xlane.xlu1 %3262 }
0x13ab   :  { %5993 = vrcp.f32 %v3263_v23 }
0x13ac   :  { %v5988_v19 = vpop.eup %5987 }
0x13ad   :  { %v3283_v21 = vmul.f32 %v5988_v19, %v5976_v54  ;;  %v7022_v11 = vpop.eup %5989 }
0x13ae   :  { %v3270_v8 = vsel %vm849_vm5, %v7022_v11, 0.0  ;;  %v7029_v17 = vpop.eup %5991  ;;  %v2809_v39 = vpop.permute.xlu1 %2808 }
0x13af   :  { %v3298_v24 = vpack.c.bf16 %v3283_v21, %v3283_v21  ;;  %v3276_v62 = vsel %vm849_vm5, %v7029_v17, 0.0  ;;  %v3448_v46 = vsel %vm949_vm3, %v2809_v39, 0 }
0x13b1   :  { %5626 = vmatmul.mubr.msk.bf16.vlgmr.msra.gmra.mxu0 %vm849_vm5, %v3298_v24 }
0x13b2   :  { %5637 = vmatprep.mubr.msk.bf16.mxu0 %vm6143_vm1, %v6141_v56  ;;  %v2811_v47 = vpop.permute.xlu1 %2810 }
0x13b5   :  { %3271 = vadd.xlane.f32.xlu0 %v3270_v8 }
0x13b6   :  { %v2813_v29 = vpop.permute.xlu1 %2812 }
0x13b7   :  { %v3540_v26 = vsel %vm949_vm3, %v2813_v29, 0 }
0x13b8   :  { %v5994_v37 = vpop.eup %5993 }
0x13b9   :  { %3277 = vadd.xlane.f32.xlu0 %v3276_v62  ;;  %v3285_v22 = vmul.f32 %v5994_v37, %v5978_v35 }
0x13bb   :  { %v3299_v44 = vpack.c.bf16 %v3285_v22, %v3285_v22 }
0x13bd   :  { %5632 = vmatmul.mubr.msk.bf16.vlgmr.msra.gmra.mxu1 %vm849_vm5, %v3299_v44 }
0x13be   :  { %5642 = vmatpush3.bf16.msra.mxu1 %v3448_v46  ;;  %5643 = vmatprep.mubr.msk.bf16.mxu1 %vm6143_vm1, %v6141_v56 }
0x13bf   :  { %5653 = vmatprep.subr.bf16.mxu1 %v6141_v56 }
0x13cf   :  { %2814 = vrot.lane.b32.xlu0 %v6941_v33, %s6144_s5  ;;  %v3494_v33 = vsel %vm949_vm3, %v2811_v47, 0 }
0x1409   :  { %v3266_v49 = vpop.xlane.xlu0 %3265 }
0x140a   :  { %5995 = vrcp.f32 %v3266_v49 }
0x140d   :  { %v2807_v32 = vpop.permute.xlu0 %2806  ;;  %v3269_v52 = vpop.xlane.xlu1 %3268 }
0x140e   :  { %v3402_v54 = vsel %vm949_vm3, %v2807_v32, 0  ;;  %5997 = vrcp.f32 %v3269_v52 }
0x140f   :  { %5636 = vmatpush3.bf16.msra.mxu0 %v3402_v54 }
0x1410   :  { %5647 = vmatprep.subr.bf16.mxu0 %v6141_v56 }
0x1415   :  { %v3275_v55 = vpop.xlane.xlu1 %3274 }
0x1416   :  { %5999 = vrcp.f32 %v3275_v55 }
0x1417   :  { %v5996_v35 = vpop.eup %5995 }
0x1418   :  { %v3287_v58 = vmul.f32 %v5996_v35, %v7000_v28 }
0x141a   :  { %v3300_v45 = vpack.c.bf16 %v3287_v58, %v3287_v58 }
0x141b   :  { %v5998_v48 = vpop.eup %5997 }
0x141c   :  { %5638 = vmatmul.mubr.msk.bf16.vlgmr.msra.gmra.mxu0 %vm849_vm5, %v3300_v45  ;;  %v3289_v60 = vmul.f32 %v5998_v48, %v7004_v51 }
0x141d   :  { %5648 = vmatpush3.bf16.msra.mxu0 %v3494_v33  ;;  %v3281_v0 = vpop.xlane.xlu1 %3280  ;;  %5649 = vmatprep.mubr.msk.bf16.mxu0 %vm6143_vm1, %v6141_v56 }
0x141e   :  { %6001 = vrcp.f32 %v3281_v0  ;;  %v3301_v41 = vpack.c.bf16 %v3289_v60, %v3289_v60  ;;  %5659 = vmatprep.subr.bf16.mxu0 %v6141_v56 }
0x1420   :  { %5644 = vmatmul.mubr.msk.bf16.vlgmr.msra.gmra.mxu1 %vm849_vm5, %v3301_v41 }
0x1421   :  { %5654 = vmatpush3.bf16.msra.mxu1 %v3540_v26  ;;  %5655 = vmatprep.mubr.msk.bf16.mxu1 %vm6143_vm1, %v6141_v56  ;;  %v2817_v43 = vpop.permute.xlu1 %2816 }
0x1422   :  { %5665 = vmatprep.subr.bf16.mxu1 %v6141_v56  ;;  %v3632_v6 = vsel %vm949_vm3, %v2817_v43, 0 }
0x1423   :  { %v6000_v2 = vpop.eup %5999 }
0x1424   :  { %v3293_v4 = vmul.f32 %v6000_v2, %v7008_v3 }
0x1426   :  { %v3303_v28 = vpack.c.bf16 %v3293_v4, %v3293_v4 }
0x1428   :  { %5656 = vmatmul.mubr.msk.bf16.vlgmr.msra.gmra.mxu1 %vm849_vm5, %v3303_v28 }
0x1429   :  { %5666 = vmatpush3.bf16.msra.mxu1 %v3632_v6  ;;  %5667 = vmatprep.mubr.msk.bf16.mxu1 %vm6143_vm1, %v6141_v56 }
0x142a   :  { %5683 = vmatprep.subr.bf16.mxu1 %v6141_v56 }
0x142b   :  { %v6002_v7 = vpop.eup %6001 }
0x142c   :  { %v3297_v51 = vmul.f32 %v6002_v7, %v7012_v20 }
0x142e   :  { %v3305_v38 = vpack.c.bf16 %v3297_v51, %v3297_v51 }
0x1430   :  { %5668 = vmatmul.mubr.msk.bf16.vlgmr.msra.gmra.mxu1 %vm849_vm5, %v3305_v38 }
0x1431   :  { %5684 = vmatpush3.bf16.xpose.msra.mxu1 %v3849_v57  ;;  %5685 = vmatprep.mubr.msk.bf16.mxu1 %vm6143_vm1, %v6141_v56 }
0x1432   :  { %5689 = vmatprep.subr.bf16.mxu1 %v6141_v56 }
0x143e   :  { %v3272_v3 = vpop.xlane.xlu0 %3271 }
0x143f   :  { %6003 = vrcp.f32 %v3272_v3  ;;  %v7094_v3 = vpack.c.bf16 %v6377_v34, %v6377_v34 }
0x1442   :  { %v3278_v5 = vpop.xlane.xlu0 %3277 }
0x1443   :  { %6005 = vrcp.f32 %v3278_v5 }
0x1446   :  { %v2815_v20 = vpop.permute.xlu0 %2814 }
0x1447   :  { %v3586_v10 = vsel %vm949_vm3, %v2815_v20, 0 }
0x144c   :  { %v6004_v27 = vpop.eup %6003 }
0x144d   :  { %v3291_v61 = vmul.f32 %v6004_v27, %v7022_v11 }
0x144f   :  { %v3302_v13 = vpack.c.bf16 %v3291_v61, %v3291_v61 }
0x1450   :  { %v6006_v14 = vpop.eup %6005 }
0x1451   :  { %5650 = vmatmul.mubr.msk.bf16.vlgmr.msra.gmra.mxu0 %vm849_vm5, %v3302_v13  ;;  %v3295_v9 = vmul.f32 %v6006_v14, %v7029_v17 }
0x1452   :  { %5660 = vmatpush3.bf16.msra.mxu0 %v3586_v10  ;;  %5661 = vmatprep.mubr.msk.bf16.mxu0 %vm6143_vm1, %v6141_v56 }
0x1453   :  { %5671 = vmatprep.subr.bf16.mxu0 %v6141_v56  ;;  %v3304_v16 = vpack.c.bf16 %v3295_v9, %v3295_v9 }
0x1459   :  { %5662 = vmatmul.mubr.msk.bf16.vlgmr.msra.gmra.mxu0 %vm849_vm5, %v3304_v16 }
0x145a   :  { %5679 = vmatprep.mubr.msk.bf16.mxu0 %vm6143_vm1, %v6141_v56 }
0x1471   :  { %v3346_v59 = vpop.f32.mrf.mxu0 }
0x1473   :  { %v5627_v63 = vpop.f32.mrf.mxu0 }
0x1475   :  { %v3349_v23 = vpop.f32.mrf.mxu0 }
0x1477   :  { %v5628_v19 = vpop.f32.mrf.mxu0 }
0x147d   :  { %v3392_v21 = vpop.f32.mrf.mxu1 }
0x147f   :  { %v5633_v24 = vpop.f32.mrf.mxu1 }
0x1481   :  { %v3395_v11 = vpop.f32.mrf.mxu1 }
0x1483   :  { %v5634_v8 = vpop.f32.mrf.mxu1 }
0x1484   :  { %v5864_v8 = vld [vmem:[%s7434_s4 + $0x30] sm:$0xff]  }
0x14dc   :  { %v3438_v37 = vpop.f32.mrf.mxu0 }
0x14dd   :  { %3676 = vrot.lane.b32.xlu0 %v3438_v37, %s6147_s17  ;;  %v5865_v37 = vld [vmem:[%s7434_s4 + $0x28] sm:$0xff]  }
0x14de   :  { %v5639_v17 = vpop.f32.mrf.mxu0 }
0x14df   :  { %v5866_v17 = vld [vmem:[%s7434_s4 + $0x20] sm:$0xff]  }
0x14e0   :  { %v3441_v62 = vpop.f32.mrf.mxu0  ;;  %v3484_v22 = vpop.f32.mrf.mxu1 }
0x14e1   :  { %3678 = vrot.lane.b32.xlu1 %v3484_v22, %s6147_s17 }
0x14e2   :  { %v5640_v39 = vpop.f32.mrf.mxu0  ;;  %v5645_v44 = vpop.f32.mrf.mxu1 }
0x14e4   :  { %v3487_v46 = vpop.f32.mrf.mxu1 }
0x14e6   :  { %v5646_v47 = vpop.f32.mrf.mxu1 }
0x14e8   :  { %v3576_v29 = vpop.f32.mrf.mxu1 }
0x14e9   :  { %3686 = vrot.lane.b32.xlu1 %v3576_v29, %s6148_s18 }
0x14ea   :  { %v5657_v49 = vpop.f32.mrf.mxu1 }
0x14eb   :  { %v3735_v49 = vrot.slane %v6883_v50, %v6550_v25 }
0x14ec   :  { %v3579_v32 = vpop.f32.mrf.mxu1 }
0x14ee   :  { %v5658_v52 = vpop.f32.mrf.mxu1 }
0x14f0   :  { %v3668_v54 = vpop.f32.mrf.mxu1 }
0x14f1   :  { %3694 = vrot.lane.b32.xlu1 %v3668_v54, %s6149_s19  ;;  %v3741_v54 = vrot.slane %v6883_v50, %v1383_v40 }
0x14f2   :  { %v5669_v55 = vpop.f32.mrf.mxu1 }
0x14f4   :  { %v3671_v35 = vpop.f32.mrf.mxu1 }
0x14f6   :  { %v5670_v58 = vpop.f32.mrf.mxu1 }
0x1511   :  { %v3530_v45 = vpop.f32.mrf.mxu0 }
0x1512   :  { %3684 = vrot.lane.b32.xlu0 %v3530_v45, %s6148_s18 }
0x1513   :  { %v5651_v48 = vpop.f32.mrf.mxu0 }
0x1515   :  { %v3533_v33 = vpop.f32.mrf.mxu0 }
0x1517   :  { %v5652_v60 = vpop.f32.mrf.mxu0 }
0x1519   :  { %v3622_v0 = vpop.f32.mrf.mxu0 }
0x151a   :  { %3692 = vrot.lane.b32.xlu0 %v3622_v0, %s6149_s19 }
0x151b   :  { %v5663_v41 = vpop.f32.mrf.mxu0 }
0x151d   :  { %v3625_v26 = vpop.f32.mrf.mxu0 }
0x151e   :  { %v3895_v26 = vsel %vm456_vm2, %v7094_v3, 0 }
0x151f   :  { %v5664_v2 = vpop.f32.mrf.mxu0 }
0x154f   :  { %v3677_v5 = vpop.permute.xlu0 %3676 }
0x1550   :  { %v3698_v61 = vsel %vm456_vm2, %v3346_v59, %v3677_v5 }
0x1553   :  { %v3679_v4 = vpop.permute.xlu1 %3678 }
0x1554   :  { %v3699_v28 = vsel %vm456_vm2, %v3392_v21, %v3679_v4 }
0x155b   :  { %v3687_v43 = vpop.permute.xlu1 %3686 }
0x155c   :  { %v3701_v6 = vsel %vm1341_vm6, %v3699_v28, %v3687_v43 }
0x1563   :  { %v3695_v7 = vpop.permute.xlu1 %3694 }
0x1564   :  { %v3703_v51 = vsel %vm1344_vm7, %v3701_v6, %v3695_v7 }
0x1565   :  { %v3705_v38 = vadd.f32 %v3703_v51, %v6891_v53 }
0x1567   :  { %v3709_v57 = vsel %vm249_vm0, %v3705_v38, 0.0 }
0x1568   :  { %3710 = vadd.xlane.f32.xlu1 %v3709_v57 }
0x1579   :  { %3835 = vrot.lane.b32.xlu1 %v7094_v3, %s6142_s12 }
0x157d   :  { %3839 = vrot.lane.b32.xlu1 %v7094_v3, %s6146_s16 }
0x1584   :  { %v3685_v27 = vpop.permute.xlu0 %3684 }
0x1585   :  { %v3700_v20 = vsel %vm1341_vm6, %v3698_v61, %v3685_v27 }
0x158c   :  { %v3693_v53 = vpop.permute.xlu0 %3692 }
0x158d   :  { %v3702_v13 = vsel %vm1344_vm7, %v3700_v20, %v3693_v53 }
0x158e   :  { %v3704_v14 = vadd.f32 %v3702_v13, %v6889_v1  ;;  %v5863_v1 = vld [vmem:[%s7434_s4 + $0x38] sm:$0xff]  }
0x158f   :  { %5672 = vmatpush3.bf16.msra.mxu0 %v5863_v1 }
0x1590   :  { %v3706_v34 = vsel %vm249_vm0, %v3704_v14, 0.0  ;;  %5673 = vmatprep.subr.bf16.mxu0 %v6141_v56 }
0x1591   :  { %3707 = vadd.xlane.f32.xlu0 %v3706_v34 }
0x1593   :  { %5674 = vmatpush3.bf16.msra.mxu0 %v5864_v8 }
0x1594   :  { %5675 = vmatprep.subr.bf16.mxu0 %v6141_v56 }
0x1597   :  { %5676 = vmatpush3.bf16.msra.mxu0 %v5865_v37 }
0x1598   :  { %5677 = vmatprep.subr.bf16.mxu0 %v6141_v56 }
0x159b   :  { %5678 = vmatpush3.bf16.msra.mxu0 %v5866_v17 }
0x159c   :  { %5695 = vmatprep.subr.bf16.mxu0 %v6141_v56 }
0x15f1   :  { %v3711_v10 = vpop.xlane.xlu1 %3710 }
0x15f2   :  { %v3713_v9 = vmul.f32 0.015625, %v3711_v10 }
0x15f4   :  { %v3715_v23 = vsub.f32 %v3705_v38, %v3713_v9 }
0x15f5   :  { %v7157_v28 = vpop.permute.xlu1 %3835 }
0x15f6   :  { %v3717_v59 = vmul.f32 %v3715_v23, %v3715_v23  ;;  %v3987_v6 = vsel %vm456_vm2, %v7157_v28, 0 }
0x15f8   :  { %v3721_v11 = vsel %vm249_vm0, %v3717_v59, 0.0 }
0x15f9   :  { %v7170_v7 = vpop.permute.xlu1 %3839 }
0x15fa   :  { %v4079_v61 = vsel %vm456_vm2, %v7170_v7, 0 }
0x161a   :  { %v3708_v16 = vpop.xlane.xlu0 %3707 }
0x161b   :  { %v3712_v63 = vmul.f32 0.015625, %v3708_v16 }
0x161d   :  { %v3714_v19 = vsub.f32 %v3704_v14, %v3712_v63 }
0x161f   :  { %v3716_v21 = vmul.f32 %v3714_v19, %v3714_v19 }
0x1621   :  { %v3718_v24 = vsel %vm249_vm0, %v3716_v21, 0.0 }
0x1622   :  { %3719 = vadd.xlane.f32.xlu0 %v3718_v24 }
0x1626   :  { %3722 = vadd.xlane.f32.xlu0 %v3721_v11 }
0x163c   :  { %3833 = vrot.lane.b32.xlu0 %v7062_v12, %s6142_s12 }
0x1640   :  { %3837 = vrot.lane.b32.xlu0 %v7062_v12, %s6146_s16 }
0x16ab   :  { %v3720_v62 = vpop.xlane.xlu0 %3719 }
0x16ac   :  { %v3724_v22 = vmul.f32 0.015625, %v3720_v62 }
0x16ae   :  { %v3726_v39 = vadd.f32 1e-05, %v3724_v22 }
0x16af   :  { %v3723_v44 = vpop.xlane.xlu0 %3722 }
0x16b0   :  { %6007 = vrsqrt.f32 %v3726_v39  ;;  %v3725_v46 = vmul.f32 0.015625, %v3723_v44 }
0x16b2   :  { %v3727_v47 = vadd.f32 1e-05, %v3725_v46 }
0x16b3   :  { %v7136_v33 = vpop.permute.xlu0 %3833 }
0x16b4   :  { %6009 = vrsqrt.f32 %v3727_v47  ;;  %v3941_v0 = vsel %vm456_vm2, %v7136_v33, 0 }
0x16b7   :  { %v7172_v51 = vpop.permute.xlu0 %3837 }
0x16b8   :  { %v4033_v5 = vsel %vm456_vm2, %v7172_v51, 0 }
0x16bd   :  { %v6008_v29 = vpop.eup %6007 }
0x16be   :  { %v3730_v32 = vmul.f32 %v6008_v29, %v3714_v19 }
0x16c0   :  { %v3736_v55 = vmul.f32 %v3735_v49, %v3730_v32 }
0x16c1   :  { %v6010_v52 = vpop.eup %6009 }
0x16c2   :  { %v3731_v35 = vmul.f32 %v6010_v52, %v3715_v23  ;;  %v7132_v45 = vadd.f32 %v3741_v54, %v3736_v55 }
0x16c4   :  { %v3737_v58 = vmul.f32 %v3735_v49, %v3731_v35 }
0x16c6   :  { %v7134_v48 = vadd.f32 %v3741_v54, %v3737_v58 }
0x16c8   :  { %v3744_v60 = vpack.c.bf16 %v7134_v48, %v7132_v45 }
0x16ca   :  { %5680 = vmatmul.mubr.msk.bf16.vlgmr.msra.gmra.mxu0 %vm249_vm0, %v3744_v60 }
0x16cb   :  { %5696 = vmatpush3.bf16.xpose.msra.mxu0 %v3941_v0  ;;  %5697 = vmatprep.mubr.msk.bf16.mxu0 %vm6143_vm1, %v6141_v56 }
0x16cc   :  { %5707 = vmatprep.subr.bf16.mxu0 %v6141_v56 }
0x178a   :  { %v3806_v40 = vpop.f32.mrf.mxu0 }
0x178b   :  { %v3813_v50 = vpack.c.bf16 %v3806_v40, %v3806_v40 }
0x178c   :  { %v5681_v41 = vpop.f32.mrf.mxu0 }
0x178d   :  { %3823 = vrot.lane.b32.xlu0 %v3813_v50, %s6146_s16  ;;  %3819 = vrot.lane.b32.xlu1 %v3813_v50, %s6142_s12 }
0x178e   :  { %5686 = vmatmul.mubr.msk.bf16.vlgmr.msra.gmra.mxu1 %vm456_vm2, %v3813_v50  ;;  %v3809_v2 = vpop.f32.mrf.mxu0 }
0x178f   :  { %5690 = vmatpush3.bf16.xpose.msra.mxu1 %v3895_v26  ;;  %v3814_v4 = vpack.c.bf16 %v3809_v2, %v3809_v2  ;;  %5691 = vmatprep.mubr.msk.bf16.mxu1 %vm6143_vm1, %v6141_v56 }
0x1790   :  { %v5682_v43 = vpop.f32.mrf.mxu0  ;;  %5701 = vmatprep.subr.bf16.mxu1 %v6141_v56 }
0x1791   :  { %3841 = vrot.lane.b32.xlu0 %v7062_v12, %s6144_s5  ;;  %3821 = vrot.lane.b32.xlu1 %v3814_v4, %s6142_s12 }
0x1795   :  { %3827 = vrot.lane.b32.xlu0 %v3813_v50, %s6144_s5  ;;  %3825 = vrot.lane.b32.xlu1 %v3814_v4, %s6146_s16 }
0x1796   :  { %5692 = vmatmul.mubr.msk.bf16.vlgmr.msra.gmra.mxu1 %vm456_vm2, %v3814_v4 }
0x1797   :  { %5702 = vmatpush3.bf16.xpose.msra.mxu1 %v3987_v6  ;;  %5703 = vmatprep.mubr.msk.bf16.mxu1 %vm6143_vm1, %v6141_v56 }
0x1798   :  { %5713 = vmatprep.subr.bf16.mxu1 %v6141_v56 }
0x1799   :  { %3843 = vrot.lane.b32.xlu1 %v7094_v3, %s6144_s5 }
0x179d   :  { %3829 = vrot.lane.b32.xlu1 %v3814_v4, %s6144_s5 }
0x17ff   :  { %v3824_v38 = vpop.permute.xlu0 %3823  ;;  %v3820_v57 = vpop.permute.xlu1 %3819 }
0x1800   :  { %5698 = vmatmul.mubr.msk.bf16.vlgmr.msra.gmra.mxu0 %vm456_vm2, %v3820_v57 }
0x1801   :  { %5708 = vmatpush3.bf16.xpose.msra.mxu0 %v4033_v5  ;;  %5709 = vmatprep.mubr.msk.bf16.mxu0 %vm6143_vm1, %v6141_v56 }
0x1802   :  { %5719 = vmatprep.subr.bf16.mxu0 %v6141_v56 }
0x1803   :  { %v3822_v27 = vpop.permute.xlu1 %3821  ;;  %v7183_v20 = vpop.permute.xlu0 %3841 }
0x1804   :  { %5704 = vmatmul.mubr.msk.bf16.vlgmr.msra.gmra.mxu1 %vm456_vm2, %v3822_v27  ;;  %v4125_v13 = vsel %vm456_vm2, %v7183_v20, 0 }
0x1805   :  { %5714 = vmatpush3.bf16.xpose.msra.mxu1 %v4079_v61  ;;  %5715 = vmatprep.mubr.msk.bf16.mxu1 %vm6143_vm1, %v6141_v56 }
0x1806   :  { %5725 = vmatprep.subr.bf16.mxu1 %v6141_v56 }
0x1807   :  { %v3826_v53 = vpop.permute.xlu1 %3825  ;;  %v3828_v10 = vpop.permute.xlu0 %3827 }
0x1808   :  { %5710 = vmatmul.mubr.msk.bf16.vlgmr.msra.gmra.mxu0 %vm456_vm2, %v3824_v38 }
0x1809   :  { %5720 = vmatpush3.bf16.xpose.msra.mxu0 %v4125_v13  ;;  %5721 = vmatprep.mubr.msk.bf16.mxu0 %vm6143_vm1, %v6141_v56 }
0x180a   :  { %5731 = vmatprep.subr.bf16.mxu0 %v6141_v56 }
0x180b   :  { %v7194_v14 = vpop.permute.xlu1 %3843 }
0x180c   :  { %v4171_v34 = vsel %vm456_vm2, %v7194_v14, 0  ;;  %5716 = vmatmul.mubr.msk.bf16.vlgmr.msra.gmra.mxu1 %vm456_vm2, %v3826_v53 }
0x180d   :  { %5726 = vmatpush3.bf16.xpose.msra.mxu1 %v4171_v34  ;;  %5727 = vmatprep.mubr.msk.bf16.mxu1 %vm6143_vm1, %v6141_v56 }
0x180e   :  { %5737 = vmatprep.subr.bf16.mxu1 %v6141_v56 }
0x180f   :  { %v3830_v9 = vpop.permute.xlu1 %3829 }
0x1810   :  { %5722 = vmatmul.mubr.msk.bf16.vlgmr.msra.gmra.mxu0 %vm456_vm2, %v3828_v10 }
0x1811   :  { %5733 = vmatprep.mubr.msk.bf16.mxu0 %vm6143_vm1, %v6141_v56 }
0x1814   :  { %5728 = vmatmul.mubr.msk.bf16.vlgmr.msra.gmra.mxu1 %vm456_vm2, %v3830_v9 }
0x1815   :  { %5739 = vmatprep.mubr.msk.bf16.mxu1 %vm6143_vm1, %v6141_v56 }
0x184e   :  { %v3885_v16 = vpop.f32.mrf.mxu1 }
0x184f   :  { %v4213_v63 = vsel %vm849_vm5, %v3885_v16, -inf }
0x1850   :  { %4214 = vmax.xlane.f32.xlu0 %v4213_v63  ;;  %v5687_v23 = vpop.f32.mrf.mxu1 }
0x1852   :  { %v3888_v19 = vpop.f32.mrf.mxu1 }
0x1854   :  { %v5688_v21 = vpop.f32.mrf.mxu1 }
0x1856   :  { %v3931_v24 = vpop.f32.mrf.mxu1 }
0x1857   :  { %v4216_v59 = vsel %vm849_vm5, %v3931_v24, -inf }
0x1858   :  { %4217 = vmax.xlane.f32.xlu1 %v4216_v59  ;;  %v5693_v11 = vpop.f32.mrf.mxu1 }
0x185a   :  { %v3934_v1 = vpop.f32.mrf.mxu1 }
0x185c   :  { %v5694_v8 = vpop.f32.mrf.mxu1 }
0x18c0   :  { %v3977_v37 = vpop.f32.mrf.mxu0 }
0x18c1   :  { %v4219_v17 = vsel %vm849_vm5, %v3977_v37, -inf }
0x18c2   :  { %v5699_v62 = vpop.f32.mrf.mxu0  ;;  %4220 = vmax.xlane.f32.xlu0 %v4219_v17 }
0x18c4   :  { %v3980_v22 = vpop.f32.mrf.mxu0  ;;  %v4023_v39 = vpop.f32.mrf.mxu1 }
0x18c5   :  { %v4222_v44 = vsel %vm849_vm5, %v4023_v39, -inf }
0x18c6   :  { %v5700_v46 = vpop.f32.mrf.mxu0  ;;  %4223 = vmax.xlane.f32.xlu0 %v4222_v44  ;;  %v5705_v47 = vpop.f32.mrf.mxu1 }
0x18c8   :  { %v4026_v29 = vpop.f32.mrf.mxu1  ;;  %v7212_v49 = vpop.f32.mrf.mxu0 }
0x18c9   :  { %v4225_v32 = vsel %vm849_vm5, %v7212_v49, -inf }
0x18ca   :  { %v5711_v52 = vpop.f32.mrf.mxu0  ;;  %4226 = vmax.xlane.f32.xlu0 %v4225_v32  ;;  %v5706_v54 = vpop.f32.mrf.mxu1 }
0x18cc   :  { %v4072_v55 = vpop.f32.mrf.mxu0  ;;  %v4115_v35 = vpop.f32.mrf.mxu1 }
0x18cd   :  { %v4228_v58 = vsel %vm849_vm5, %v4115_v35, -inf }
0x18ce   :  { %v5712_v60 = vpop.f32.mrf.mxu0  ;;  %4229 = vmax.xlane.f32.xlu1 %v4228_v58  ;;  %v5717_v0 = vpop.f32.mrf.mxu1 }
0x18d0   :  { %v4118_v40 = vpop.f32.mrf.mxu1  ;;  %v7217_v50 = vpop.f32.mrf.mxu0 }
0x18d1   :  { %v4231_v41 = vsel %vm849_vm5, %v7217_v50, -inf }
0x18d2   :  { %v5723_v26 = vpop.f32.mrf.mxu0  ;;  %4232 = vmax.xlane.f32.xlu0 %v4231_v41  ;;  %v5718_v2 = vpop.f32.mrf.mxu1 }
0x18d4   :  { %v4164_v4 = vpop.f32.mrf.mxu0  ;;  %v7221_v43 = vpop.f32.mrf.mxu1 }
0x18d5   :  { %v4234_v10 = vsel %vm849_vm5, %v7221_v43, -inf }
0x18d6   :  { %v5724_v6 = vpop.f32.mrf.mxu0  ;;  %v5729_v38 = vpop.f32.mrf.mxu1 }
0x18d8   :  { %v4210_v57 = vpop.f32.mrf.mxu1 }
0x18d9   :  { %v4215_v27 = vpop.xlane.xlu0 %4214 }
0x18da   :  { %v5730_v5 = vpop.f32.mrf.mxu1  ;;  %v4237_v61 = vsub.f32 %v3885_v16, %v4215_v27 }
0x18dc   :  { %v4245_v53 = vmul.f32 1.442695, %v4237_v61 }
0x18de   :  { %6011 = vpow2.f32 %v4245_v53 }
0x18df   :  { %4357 = vrot.lane.b32.xlu1 %v7094_v3, %s6145_s13 }
0x18e1   :  { %v4218_v3 = vpop.xlane.xlu1 %4217 }
0x18e3   :  { %4405 = vrot.lane.b32.xlu1 %v7136_v33, %s6145_s13  ;;  %v4238_v33 = vsub.f32 %v3931_v24, %v4218_v3 }
0x18e8   :  { %4309 = vrot.lane.b32.xlu0 %v7062_v12, %s6145_s13  ;;  %v4247_v12 = vmul.f32 1.442695, %v4238_v33 }
0x18ea   :  { %6013 = vpow2.f32 %v4247_v12 }
0x18eb   :  { %v7229_v13 = vpop.eup %6011 }
0x18ec   :  { %v4261_v34 = vsel %vm849_vm5, %v7229_v13, 0.0 }
0x18f7   :  { %v7237_v9 = vpop.eup %6013 }
0x18f8   :  { %v4264_v16 = vsel %vm849_vm5, %v7237_v9, 0.0 }
0x1907   :  { %4262 = vadd.xlane.f32.xlu0 %v4261_v34  ;;  %4235 = vmax.xlane.f32.xlu1 %v4234_v10 }
0x1918   :  { %4453 = vrot.lane.b32.xlu1 %v7157_v28, %s6145_s13 }
0x193c   :  { %4265 = vadd.xlane.f32.xlu1 %v4264_v16 }
0x194b   :  { %v4221_v63 = vpop.xlane.xlu0 %4220 }
0x194c   :  { %v4239_v23 = vsub.f32 %v3977_v37, %v4221_v63 }
0x194d   :  { %4549 = vrot.lane.b32.xlu1 %v7170_v7, %s6145_s13 }
0x194e   :  { %v4249_v19 = vmul.f32 1.442695, %v4239_v23 }
0x194f   :  { %v4224_v21 = vpop.xlane.xlu0 %4223 }
0x1950   :  { %6015 = vpow2.f32 %v4249_v19  ;;  %v4240_v11 = vsub.f32 %v4023_v39, %v4224_v21 }
0x1952   :  { %v4251_v8 = vmul.f32 1.442695, %v4240_v11 }
0x1953   :  { %v4227_v59 = vpop.xlane.xlu0 %4226 }
0x1954   :  { %6017 = vpow2.f32 %v4251_v8  ;;  %v4241_v52 = vsub.f32 %v7212_v49, %v4227_v59 }
0x1956   :  { %v4253_v54 = vmul.f32 1.442695, %v4241_v52 }
0x1957   :  { %v4230_v28 = vpop.xlane.xlu1 %4229 }
0x1958   :  { %v4242_v17 = vsub.f32 %v4115_v35, %v4230_v28 }
0x195a   :  { %v4255_v44 = vmul.f32 1.442695, %v4242_v17 }
0x195b   :  { %v4233_v24 = vpop.xlane.xlu0 %4232  ;;  %v4358_v1 = vpop.permute.xlu1 %4357 }
0x195c   :  { %v4363_v62 = vsel %vm949_vm3, %v4358_v1, 0  ;;  %6019 = vpow2.f32 %v4255_v44  ;;  %v4243_v55 = vsub.f32 %v7217_v50, %v4233_v24 }
0x195d   :  { %v7244_v22 = vpop.eup %6015  ;;  %5738 = vmatpush3.bf16.msra.mxu1 %v4363_v62  ;;  %6021 = vpow2.f32 %v4253_v54 }
0x195e   :  { %v4267_v37 = vsel %vm849_vm5, %v7244_v22, 0.0  ;;  %5749 = vmatprep.subr.bf16.mxu1 %v6141_v56  ;;  %v4257_v35 = vmul.f32 1.442695, %v4243_v55 }
0x195f   :  { %4268 = vadd.xlane.f32.xlu0 %v4267_v37  ;;  %v4310_v7 = vpop.permute.xlu0 %4309  ;;  %v4406_v58 = vpop.permute.xlu1 %4405 }
0x1960   :  { %v4315_v39 = vsel %vm949_vm3, %v4310_v7, 0  ;;  %6023 = vpow2.f32 %v4257_v35 }
0x1961   :  { %5732 = vmatpush3.bf16.msra.mxu0 %v4315_v39  ;;  %v7251_v46 = vpop.eup %6017 }
0x1962   :  { %5743 = vmatprep.subr.bf16.mxu0 %v6141_v56  ;;  %v4270_v47 = vsel %vm849_vm5, %v7251_v46, 0.0 }
0x1969   :  { %v7255_v29 = vpop.eup %6019 }
0x196a   :  { %v4276_v32 = vsel %vm849_vm5, %v7255_v29, 0.0  ;;  %v7263_v60 = vpop.eup %6021 }
0x196d   :  { %v7268_v2 = vpop.eup %6023 }
0x196e   :  { %v4279_v49 = vsel %vm849_vm5, %v7268_v2, 0.0 }
0x1971   :  { %4271 = vadd.xlane.f32.xlu1 %v4270_v47 }
0x1975   :  { %4501 = vrot.lane.b32.xlu0 %v7172_v51, %s6145_s13  ;;  %4277 = vadd.xlane.f32.xlu1 %v4276_v32  ;;  %v4273_v51 = vsel %vm849_vm5, %v7263_v60, 0.0 }
0x1990   :  { %v4263_v0 = vpop.xlane.xlu0 %4262  ;;  %v4236_v40 = vpop.xlane.xlu1 %4235 }
0x1991   :  { %6025 = vrcp.f32 %v4263_v0  ;;  %v4244_v41 = vsub.f32 %v7221_v43, %v4236_v40  ;;  %v4411_v43 = vsel %vm949_vm3, %v4406_v58, 0 }
0x1993   :  { %v4259_v26 = vmul.f32 1.442695, %v4244_v41 }
0x1994   :  { %4274 = vadd.xlane.f32.xlu0 %v4273_v51  ;;  %v4454_v5 = vpop.permute.xlu1 %4453 }
0x1995   :  { %6027 = vpow2.f32 %v4259_v26  ;;  %v4459_v34 = vsel %vm949_vm3, %v4454_v5, 0 }
0x1998   :  { %4280 = vadd.xlane.f32.xlu0 %v4279_v49 }
0x199e   :  { %v6026_v50 = vpop.eup %6025 }
0x199f   :  { %v4286_v4 = vmul.f32 %v6026_v50, %v7229_v13 }
0x19a1   :  { %v4301_v6 = vpack.c.bf16 %v4286_v4, %v4286_v4 }
0x19a2   :  { %v7273_v38 = vpop.eup %6027 }
0x19a3   :  { %5734 = vmatmul.mubr.msk.bf16.vlgmr.msra.gmra.mxu0 %vm849_vm5, %v4301_v6  ;;  %v4282_v57 = vsel %vm849_vm5, %v7273_v38, 0.0 }
0x19a4   :  { %5744 = vmatpush3.bf16.msra.mxu0 %v4411_v43  ;;  %4283 = vadd.xlane.f32.xlu1 %v4282_v57 }
0x19a5   :  { %5745 = vmatprep.mubr.msk.bf16.mxu0 %vm6143_vm1, %v6141_v56  ;;  %5755 = vmatprep.subr.bf16.mxu0 %v6141_v56 }
0x19ae   :  { %4597 = vrot.lane.b32.xlu0 %v7183_v20, %s6145_s13 }
0x19b5   :  { %4645 = vrot.lane.b32.xlu1 %v7194_v14, %s6145_s13 }
0x19c5   :  { %v4266_v27 = vpop.xlane.xlu1 %4265 }
0x19c6   :  { %6029 = vrcp.f32 %v4266_v27 }
0x19c9   :  { %v4550_v10 = vpop.permute.xlu1 %4549 }
0x19ca   :  { %v4555_v28 = vsel %vm949_vm3, %v4550_v10, 0 }
0x19d3   :  { %v6030_v61 = vpop.eup %6029 }
0x19d4   :  { %v4288_v53 = vmul.f32 %v6030_v61, %v7237_v9 }
0x19d6   :  { %v4302_v13 = vpack.c.bf16 %v4288_v53, %v4288_v53 }
0x19d8   :  { %5740 = vmatmul.mubr.msk.bf16.vlgmr.msra.gmra.mxu1 %vm849_vm5, %v4302_v13 }
0x19d9   :  { %5750 = vmatpush3.bf16.msra.mxu1 %v4459_v34  ;;  %5751 = vmatprep.mubr.msk.bf16.mxu1 %vm6143_vm1, %v6141_v56 }
0x19da   :  { %5761 = vmatprep.subr.bf16.mxu1 %v6141_v56 }
0x19e8   :  { %v4269_v20 = vpop.xlane.xlu0 %4268 }
0x19e9   :  { %6031 = vrcp.f32 %v4269_v20 }
0x19ec   :  { %v4502_v33 = vpop.permute.xlu0 %4501 }
0x19ed   :  { %v4507_v16 = vsel %vm949_vm3, %v4502_v33, 0 }
0x19f6   :  { %v6032_v14 = vpop.eup %6031 }
0x19f7   :  { %v4290_v3 = vmul.f32 %v6032_v14, %v7244_v22 }
0x19f9   :  { %v4303_v12 = vpack.c.bf16 %v4290_v3, %v4290_v3 }
0x19fa   :  { %v4272_v9 = vpop.xlane.xlu1 %4271 }
0x19fb   :  { %6033 = vrcp.f32 %v4272_v9  ;;  %5746 = vmatmul.mubr.msk.bf16.vlgmr.msra.gmra.mxu0 %vm849_vm5, %v4303_v12 }
0x19fc   :  { %5756 = vmatpush3.bf16.msra.mxu0 %v4507_v16  ;;  %5757 = vmatprep.mubr.msk.bf16.mxu0 %vm6143_vm1, %v6141_v56 }
0x19fd   :  { %5767 = vmatprep.subr.bf16.mxu0 %v6141_v56 }
0x19fe   :  { %v4278_v63 = vpop.xlane.xlu1 %4277 }
0x19ff   :  { %6035 = vrcp.f32 %v4278_v63 }
0x1a08   :  { %v6034_v23 = vpop.eup %6033 }
0x1a09   :  { %v4292_v19 = vmul.f32 %v6034_v23, %v7251_v46 }
0x1a0b   :  { %v4304_v21 = vpack.c.bf16 %v4292_v19, %v4292_v19 }
0x1a0c   :  { %v6036_v59 = vpop.eup %6035 }
0x1a0d   :  { %5752 = vmatmul.mubr.msk.bf16.vlgmr.msra.gmra.mxu1 %vm849_vm5, %v4304_v21  ;;  %v4296_v11 = vmul.f32 %v6036_v59, %v7255_v29 }
0x1a0e   :  { %5762 = vmatpush3.bf16.msra.mxu1 %v4555_v28  ;;  %5763 = vmatprep.mubr.msk.bf16.mxu1 %vm6143_vm1, %v6141_v56 }
0x1a0f   :  { %5773 = vmatprep.subr.bf16.mxu1 %v6141_v56  ;;  %v4306_v24 = vpack.c.bf16 %v4296_v11, %v4296_v11 }
0x1a15   :  { %5764 = vmatmul.mubr.msk.bf16.vlgmr.msra.gmra.mxu1 %vm849_vm5, %v4306_v24 }
0x1a16   :  { %5775 = vmatprep.mubr.msk.bf16.mxu1 %vm6143_vm1, %v6141_v56 }
0x1a1d   :  { %v4275_v1 = vpop.xlane.xlu0 %4274 }
0x1a1e   :  { %6037 = vrcp.f32 %v4275_v1 }
0x1a21   :  { %v4281_v8 = vpop.xlane.xlu0 %4280 }
0x1a22   :  { %6039 = vrcp.f32 %v4281_v8 }
0x1a25   :  { %v4598_v22 = vpop.permute.xlu0 %4597 }
0x1a26   :  { %v4603_v39 = vsel %vm949_vm3, %v4598_v22, 0 }
0x1a2b   :  { %v6038_v17 = vpop.eup %6037 }
0x1a2c   :  { %v4294_v62 = vmul.f32 %v6038_v17, %v7263_v60 }
0x1a2d   :  { %v4284_v37 = vpop.xlane.xlu1 %4283 }
0x1a2e   :  { %v4305_v7 = vpack.c.bf16 %v4294_v62, %v4294_v62  ;;  %6041 = vrcp.f32 %v4284_v37 }
0x1a2f   :  { %v6040_v44 = vpop.eup %6039 }
0x1a30   :  { %5758 = vmatmul.mubr.msk.bf16.vlgmr.msra.gmra.mxu0 %vm849_vm5, %v4305_v7  ;;  %v4298_v47 = vmul.f32 %v6040_v44, %v7268_v2 }
0x1a31   :  { %5768 = vmatpush3.bf16.msra.mxu0 %v4603_v39  ;;  %v4646_v46 = vpop.permute.xlu1 %4645  ;;  %5769 = vmatprep.mubr.msk.bf16.mxu0 %vm6143_vm1, %v6141_v56 }
0x1a32   :  { %v4651_v29 = vsel %vm949_vm3, %v4646_v46, 0  ;;  %v4307_v32 = vpack.c.bf16 %v4298_v47, %v4298_v47 }
0x1a33   :  { %5774 = vmatpush3.bf16.msra.mxu1 %v4651_v29 }
0x1a38   :  { %5770 = vmatmul.mubr.msk.bf16.vlgmr.msra.gmra.mxu0 %vm849_vm5, %v4307_v32 }
0x1a39   :  { %4858 = vmatprep.mubr.bf16.mxu0 %v6140_v18 }
0x1a3b   :  { %v6042_v52 = vpop.eup %6041 }
0x1a3c   :  { %v4300_v54 = vmul.f32 %v6042_v52, %v7273_v38 }
0x1a3e   :  { %v4308_v55 = vpack.c.bf16 %v4300_v54, %v4300_v54 }
0x1a40   :  { %5776 = vmatmul.mubr.msk.bf16.vlgmr.msra.gmra.mxu1 %vm849_vm5, %v4308_v55 }
0x1a63   :  { %v4351_v35 = vpop.f32.mrf.mxu0 }
0x1a65   :  { %v5735_v58 = vpop.f32.mrf.mxu0 }
0x1a66   :  { %v5867_v58 = vld [vmem:[%s7436_s6 + $0x70] ss:$8 sps:$4 sm:$0xff]  }
0x1a67   :  { %v4354_v60 = vpop.f32.mrf.mxu0 }
0x1a68   :  { %v5872_v60 = vld [vmem:[%s7436_s6 + $0x64] ss:$8 sps:$4 sm:$0xff]  }
0x1a69   :  { %v5736_v56 = vpop.f32.mrf.mxu0 }
0x1a6a   :  { %v5870_v56 = vld [vmem:[%s7436_s6 + $0x60] ss:$8 sps:$4 sm:$0xff]  }
0x1a98   :  { %v4399_v0 = vpop.f32.mrf.mxu1 }
0x1a9a   :  { %v5741_v40 = vpop.f32.mrf.mxu1 }
0x1a9b   :  { %v5873_v40 = vld [vmem:[%s7436_s6 + $0x50] ss:$8 sps:$4 sm:$0xff]  }
0x1a9c   :  { %v4402_v41 = vpop.f32.mrf.mxu1 }
0x1a9d   :  { %v5876_v41 = vld [vmem:[%s7436_s6 + $0x40] ss:$8 sps:$4 sm:$0xff]  }
0x1a9e   :  { %v5742_v26 = vpop.f32.mrf.mxu1 }
0x1a9f   :  { %v5878_v26 = vld [vmem:[%s7436_s6 + $0x44] ss:$8 sps:$4 sm:$0xff]  }
0x1abb   :  { %v4447_v51 = vpop.f32.mrf.mxu0 }
0x1abc   :  { %4695 = vrot.lane.b32.xlu0 %v4447_v51, %s6147_s17  ;;  %v5879_v51 = vld [vmem:[%s7437_s7 + $0xf8] sm:$0xff]  }
0x1abd   :  { %v5747_v2 = vpop.f32.mrf.mxu0  ;;  %5349 = vmatprep.subr.bf16.mxu1 %v5879_v51 }
0x1abe   :  { %v5880_v2 = vld [vmem:[%s7437_s7 + $0xb8] sm:$0xff]  }
0x1abf   :  { %v4450_v49 = vpop.f32.mrf.mxu0  ;;  %5350 = vmatpush3.bf16.msra.mxu1 %v5880_v2 }
0x1ac0   :  { %v5881_v49 = vld [vmem:[%s7437_s7 + $0xf0] sm:$0xff]  }
0x1ac1   :  { %v5748_v18 = vpop.f32.mrf.mxu0  ;;  %5351 = vmatprep.subr.bf16.mxu1 %v5881_v49 }
0x1ac2   :  { %v5882_v18 = vld [vmem:[%s7437_s7 + $0xb0] sm:$0xff]  }
0x1ac3   :  { %5352 = vmatpush3.bf16.msra.mxu1 %v5882_v18 }
0x1acd   :  { %v4495_v50 = vpop.f32.mrf.mxu1 }
0x1ace   :  { %4697 = vrot.lane.b32.xlu1 %v4495_v50, %s6147_s17  ;;  %v5883_v50 = vld [vmem:[%s7437_s7 + $0xe8] sm:$0xff]  }
0x1acf   :  { %v5753_v4 = vpop.f32.mrf.mxu1  ;;  %5353 = vmatprep.subr.bf16.mxu1 %v5883_v50 }
0x1ad0   :  { %v5884_v4 = vld [vmem:[%s7437_s7 + $0xa8] sm:$0xff]  }
0x1ad1   :  { %v4498_v6 = vpop.f32.mrf.mxu1  ;;  %5354 = vmatpush3.bf16.msra.mxu1 %v5884_v4 }
0x1ad2   :  { %v5885_v6 = vld [vmem:[%s7437_s7 + $0xe0] sm:$0xff]  }
0x1ad3   :  { %v5754_v38 = vpop.f32.mrf.mxu1  ;;  %5355 = vmatprep.subr.bf16.mxu1 %v5885_v6 }
0x1ad4   :  { %v5886_v38 = vld [vmem:[%s7437_s7 + $0xa0] sm:$0xff]  }
0x1ad5   :  { %v4591_v43 = vpop.f32.mrf.mxu1  ;;  %5356 = vmatpush3.bf16.msra.mxu1 %v5886_v38 }
0x1ad6   :  { %4705 = vrot.lane.b32.xlu1 %v4591_v43, %s6148_s18  ;;  %v5887_v43 = vld [vmem:[%s7437_s7 + $0xd8] sm:$0xff]  }
0x1ad7   :  { %v5765_v57 = vpop.f32.mrf.mxu1  ;;  %5357 = vmatprep.subr.bf16.mxu1 %v5887_v43 }
0x1ad8   :  { %v5888_v57 = vld [vmem:[%s7437_s7 + $0x98] sm:$0xff]  }
0x1ad9   :  { %v4594_v5 = vpop.f32.mrf.mxu1  ;;  %5358 = vmatpush3.bf16.msra.mxu1 %v5888_v57 }
0x1adb   :  { %v5766_v27 = vpop.f32.mrf.mxu1 }
0x1af0   :  { %v4543_v61 = vpop.f32.mrf.mxu0 }
0x1af1   :  { %4703 = vrot.lane.b32.xlu0 %v4543_v61, %s6148_s18 }
0x1af2   :  { %v5759_v53 = vpop.f32.mrf.mxu0 }
0x1af4   :  { %v4546_v13 = vpop.f32.mrf.mxu0 }
0x1af6   :  { %v5760_v34 = vpop.f32.mrf.mxu0 }
0x1af8   :  { %v4639_v20 = vpop.f32.mrf.mxu0 }
0x1af9   :  { %4711 = vrot.lane.b32.xlu0 %v4639_v20, %s6149_s19 }
0x1afa   :  { %v5771_v14 = vpop.f32.mrf.mxu0 }
0x1afb   :  { %v6048_v14 = vld [vmem:[#allocation7 + $0x8] sm:$0xff] }
0x1afc   :  { %v4642_v10 = vpop.f32.mrf.mxu0 }
0x1afd   :  { %v4754_v10 = vrot.slane %v6048_v14, %v2396_v42  ;;  %v5890_v42 = vld [vmem:[%s7437_s7 + $0x90] sm:$0xff]  }
0x1afe   :  { %v5772_v3 = vpop.f32.mrf.mxu0 }
0x1b00   :  { %v4687_v33 = vpop.f32.mrf.mxu1 }
0x1b01   :  { %4713 = vrot.lane.b32.xlu1 %v4687_v33, %s6149_s19 }
0x1b02   :  { %v5777_v12 = vpop.f32.mrf.mxu1 }
0x1b03   :  { %v4760_v12 = vrot.slane %v6048_v14, %v2402_v15  ;;  %v5892_v15 = vld [vmem:[%s7437_s7 + $0x88] sm:$0xff]  }
0x1b04   :  { %v4690_v9 = vpop.f32.mrf.mxu1 }
0x1b06   :  { %v5778_v16 = vpop.f32.mrf.mxu1 }
0x1b2e   :  { %v4696_v63 = vpop.permute.xlu0 %4695 }
0x1b2f   :  { %v4717_v19 = vsel %vm456_vm2, %v4351_v35, %v4696_v63 }
0x1b40   :  { %v4698_v21 = vpop.permute.xlu1 %4697 }
0x1b41   :  { %v4718_v17 = vsel %vm456_vm2, %v4399_v0, %v4698_v21  ;;  %v5875_v0 = vld [vmem:[%s7436_s6 + $0x54] ss:$8 sps:$4 sm:$0xff]  }
0x1b48   :  { %v4706_v1 = vpop.permute.xlu1 %4705 }
0x1b49   :  { %v4720_v62 = vsel %vm1341_vm6, %v4718_v17, %v4706_v1 }
0x1b63   :  { %v4704_v23 = vpop.permute.xlu0 %4703 }
0x1b64   :  { %v4719_v59 = vsel %vm1341_vm6, %v4717_v19, %v4704_v23 }
0x1b6b   :  { %v4712_v28 = vpop.permute.xlu0 %4711 }
0x1b6c   :  { %v4721_v11 = vsel %vm1344_vm7, %v4719_v59, %v4712_v28  ;;  %v5889_v59 = vld [vmem:[%s7437_s7 + $0xd0] sm:$0xff]   ;;  %v5893_v28 = vld [vmem:[%s7437_s7 + $0xc0] sm:$0xff]  }
0x1b6d   :  { %v4723_v24 = vadd.f32 %v4721_v11, %v7132_v45  ;;  %5359 = vmatprep.subr.bf16.mxu1 %v5889_v59  ;;  %v5894_v11 = vld [vmem:[%s7437_s7 + $0x80] sm:$0xff]   ;;  %s6150_s7 = smov [#allocation8]  }
0x1b6e   :  { %5360 = vmatpush3.bf16.msra.mxu1 %v5890_v42 }
0x1b6f   :  { %v4725_v8 = vsel %vm249_vm0, %v4723_v24, 0.0  ;;  %5361 = vmatprep.subr.bf16.mxu1 %v5891_v30 }
0x1b70   :  { %4726 = vadd.xlane.f32.xlu0 %v4725_v8 }
0x1b72   :  { %5362 = vmatpush3.bf16.msra.mxu1 %v5892_v15 }
0x1b73   :  { %v4714_v22 = vpop.permute.xlu1 %4713  ;;  %5363 = vmatprep.subr.bf16.mxu1 %v5893_v28 }
0x1b74   :  { %v4722_v37 = vsel %vm1344_vm7, %v4720_v62, %v4714_v22 }
0x1b75   :  { %v4724_v7 = vadd.f32 %v4722_v37, %v7134_v48  ;;  %v5869_v48 = vld [vmem:[%s7436_s6 + $0x74] ss:$8 sps:$4 sm:$0xff]  }
0x1b76   :  { %4834 = vmatprep.subr.bf16.mxu0 %v5869_v48  ;;  %5364 = vmatpush3.bf16.msra.mxu1 %v5894_v11 }
0x1b77   :  { %v4728_v44 = vsel %vm249_vm0, %v4724_v7, 0.0  ;;  %4835 = vmatpush1.bf16.msra.mxu0 %v5867_v58 }
0x1b78   :  { %4729 = vadd.xlane.f32.xlu1 %v4728_v44  ;;  %4836 = vmatprep.subr.bf16.mxu0 %v5872_v60 }
0x1b7b   :  { %4837 = vmatpush1.bf16.msra.mxu0 %v5870_v56 }
0x1b7c   :  { %4838 = vmatprep.subr.bf16.mxu0 %v5875_v0 }
0x1b7f   :  { %4839 = vmatpush1.bf16.msra.mxu0 %v5873_v40 }
0x1b80   :  { %4840 = vmatprep.subr.bf16.mxu0 %v5878_v26 }
0x1b83   :  { %4841 = vmatpush1.bf16.msra.mxu0 %v5876_v41 }
0x1bf9   :  { %v4727_v39 = vpop.xlane.xlu0 %4726 }
0x1bfa   :  { %v4731_v46 = vmul.f32 0.015625, %v4727_v39 }
0x1bfc   :  { %v4733_v47 = vsub.f32 %v4723_v24, %v4731_v46  ;;  %v202_v24 = vld [vmem:[%s7438_s8 + $0x4] sm:$0xf]  ;;  %s5025_s8 = sshll.u32 %s6150_s7, 4  ;;  %s5026_s8 = int_to_ptr.vmem [resolvable:$true] %s5025_s8 }
0x1bfd   :  { %v4772_v1 = vrot.slane %v202_v24, %v6550_v25  ;;  %v4768_v8 = vrot.slane %v202_v24, %v6253_v31  ;;  %v4878_v48 = vrot.slane %v202_v24, %v6260_v36  ;;  %s6109_s6 = scalar_lea.vmem %s5026_s8, 256  ;;  %p6114_p2 = scmp.lt.s32.totalorder %s5026_s8, %s5026_s8 }
0x1bfe   :  { %v4735_v45 = vmul.f32 %v4733_v47, %v4733_v47  ;;  %p6110_p1 = scmp.ne.s32.totalorder %s5026_s8, %s6109_s6  ;;  %p6115_p3 = scmp.lt.s32.totalorder %s6109_s6, %s6109_s6 }
0x1bff   :  { %v4782_v62 = vrot.slane %v4772_v1, %v6253_v31  ;;  %v4778_v22 = vrot.slane %v4768_v8, %v6253_v31 }
0x1c00   :  { %v4737_v29 = vsel %vm249_vm0, %v4735_v45, 0.0  ;;  %p6116_p4 = por %p6115_p3, %p6114_p2 }
0x1c01   :  { %4738 = vadd.xlane.f32.xlu0 %v4737_v29  ;;  %v4730_v32 = vpop.xlane.xlu1 %4729 }
0x1c02   :  { %v4732_v52 = vmul.f32 0.015625, %v4730_v32  ;;  %p6117_p5 = pnand %p6116_p4, %p6110_p1 }
0x1c04   :  { %v4734_v54 = vsub.f32 %v4724_v7, %v4732_v52 }
0x1c06   :  { %v4736_v55 = vmul.f32 %v4734_v54, %v4734_v54 }
0x1c08   :  { %v4740_v35 = vsel %vm249_vm0, %v4736_v55, 0.0 }
0x1c09   :  { %4741 = vadd.xlane.f32.xlu0 %v4740_v35 }
0x1c8a   :  { %v4739_v5 = vpop.xlane.xlu0 %4738 }
0x1c8b   :  { %v4743_v27 = vmul.f32 0.015625, %v4739_v5 }
0x1c8d   :  { %v4745_v61 = vadd.f32 1e-05, %v4743_v27 }
0x1c8f   :  { %6043 = vrsqrt.f32 %v4745_v61 }
0x1c92   :  { %v4742_v53 = vpop.xlane.xlu0 %4741 }
0x1c93   :  { %v4744_v13 = vmul.f32 0.015625, %v4742_v53 }
0x1c95   :  { %v4746_v34 = vadd.f32 1e-05, %v4744_v13 }
0x1c97   :  { %6045 = vrsqrt.f32 %v4746_v34 }
0x1c9c   :  { %v6044_v20 = vpop.eup %6043 }
0x1c9d   :  { %v4749_v3 = vmul.f32 %v6044_v20, %v4733_v47 }
0x1c9f   :  { %v4755_v9 = vmul.f32 %v4754_v10, %v4749_v3 }
0x1ca1   :  { %v4761_v19 = vadd.f32 %v4760_v12, %v4755_v9 }
0x1ca4   :  { %v6046_v33 = vpop.eup %6045 }
0x1ca5   :  { %v4750_v16 = vmul.f32 %v6046_v33, %v4734_v54 }
0x1ca7   :  { %v4756_v63 = vmul.f32 %v4754_v10, %v4750_v16 }
0x1ca9   :  { %v4762_v23 = vadd.f32 %v4760_v12, %v4756_v63 }
0x1cab   :  { %v4763_v21 = vpack.c.bf16 %v4762_v23, %v4761_v19 }
0x1cad   :  { %5172 = vmatmul.mubr.msk.bf16.vlgmr.msra.gmra.mxu0 %vm249_vm0, %v4763_v21 }
0x1d6d   :  { %v4860_v17 = vpop.f32.mrf.mxu0 }
0x1d6e   :  { %v4861_v46 = vadd.f32 %v4860_v17, %v4778_v22 }
0x1d6f   :  { %v4862_v37 = vpop.f32.mrf.mxu0 }
0x1d70   :  { %v4863_v44 = vadd.f32 %v4862_v37, %v4782_v62  ;;  %v4869_v54 = vmax.f32 %v4861_v46, 0.0 }
0x1d71   :  { %v4864_v7 = vpop.f32.mrf.mxu0 }
0x1d72   :  { %v4865_v39 = vadd.f32 %v4864_v7, %v4778_v22  ;;  %v4870_v32 = vmax.f32 %v4863_v44, 0.0 }
0x1d73   :  { %v4866_v47 = vpop.f32.mrf.mxu0 }
0x1d74   :  { %v4867_v45 = vadd.f32 %v4866_v47, %v4782_v62  ;;  %v4871_v29 = vmax.f32 %v4865_v39, 0.0 }
0x1d76   :  { %v4872_v52 = vmax.f32 %v4867_v45, 0.0  ;;  %v4873_v25 = vpack.c.bf16 %v4871_v29, %v4869_v54 }
0x1d78   :  { %v4874_v55 = vpack.c.bf16 %v4872_v52, %v4870_v32 }
0x1d7a   :  { %5007 = vmatprep.mubr.bf16.mxu1 %v4874_v55 }
0x1d7b   :  { %5008 = vmatmul.mubr.bf16.vlgmr.msra.gmra.mxu1 %v4873_v25 }
0x1e3b   :  { %v5365_v35 = vpop.f32.mrf.mxu1 }
0x1e3d   :  { %v5366_v58 = vpop.f32.mrf.mxu1 }
0x1e3e   :  { %v5367_v31 = vadd.f32 %v5366_v58, %v5365_v35 }
0x1e3f   :  { %v5368_v60 = vpop.f32.mrf.mxu1 }
0x1e40   :  { %v5010_v56 = vadd.f32 %v5367_v31, %v4878_v48 }
0x1e41   :  { %v5369_v0 = vpop.f32.mrf.mxu1 }
0x1e42   :  { %v5016_v40 = vadd.f32 %v5010_v56, %v4761_v19  ;;  %v5370_v41 = vadd.f32 %v5369_v0, %v5368_v60 }
0x1e44   :  { %5018 = vst.msk [vmem:[#allocation8] sm:$0xff] %vm249_vm0, %v5016_v40  ;;  %v5013_v26 = vadd.f32 %v5370_v41, %v4878_v48 }
0x1e46   :  { %v5017_v51 = vadd.f32 %v5013_v26, %v4762_v23 }
0x1e48   :  { %5019 = vst.msk [vmem:[#allocation8 + $0x8] sm:$0xff] %vm249_vm0, %v5017_v51 }
0x1e49   :  { %6120 = shalt.err (!%p6117_p5)
}
0x1e4a   :  { %5031 = dma.vmem_to_hbm [thread:$0]  %s5026_s8, 256, %s7439_s9, [#allocation4], %s6137_s14, %s6137_s14, %s6138_s15  }
0x1e4b   :  { %6133 = dma.done.wait [#allocation4], 256  }
0x1e4c   :  { %6134 = vsyncadd [#allocation4], 4294967040 }
0x1e4d   :  { %5035 = vsyncpa [#allocation3], 1 }
0x1e4e   :  { %5036 = vsyncpa [#allocation6], 1 }
0x1e4f   :  { %5037 = vsyncpa [#allocation4], 1 }

</bundles_post_ra>
